<compile_context>
chip_gen: v7x
topology: tpu7x:2x2x1
jax: 0.10.0
libtpu: 0.0.40
codegen_flags: <defaults>
</compile_context>

<pallas_src>
import functools

import jax
import jax.numpy as jnp
from jax.experimental import pallas as pl
from jax.experimental.pallas import tpu as pltpu

EPS = 1e-5           # nn.BatchNorm2d default eps
LEAKY_SLOPE = 0.2    # F.leaky_relu negative slope used by the module


# ------------------------------- tile picking --------------------------------
def _pick_tile(n, candidates):
    for t in candidates:
        if n % t == 0:
            return t
    return n          # fall back to the full dim (always a legal block dim)


# ---------------------------------- kernels -----------------------------------
def _conv1_kernel(x_ref, w_ref, b_ref, o_ref):
    # im2col'd 4x4/s2 conv with Cin=1 (K=16) + bias + LeakyReLU(0.2).
    acc = jnp.dot(x_ref[...], w_ref[...], preferred_element_type=jnp.float32)
    acc = acc + b_ref[...]
    o_ref[...] = jnp.where(acc >= 0, acc, LEAKY_SLOPE * acc).astype(o_ref.dtype)


def _conv_s2_stats_kernel(xa_ref, xb_ref, w_ref, o_ref, s1_ref, s2_ref, *, oh, ow):
    # conv2: stride-2 4x4 conv as a stride-1 2x2 conv over the space-to-depth'd
    # input (two row-merged column-phase views).  Per-sample M = OH*OW = 256 rows
    # already fills the MXU; per-channel BN partial sums come straight from the
    # f32 accumulator (no extra HBM read of the activation).
    p = oh * ow
    cout = w_ref.shape[-1]
    acc = jnp.zeros((p, cout), jnp.float32)
    for qh in range(2):                                   # static 2x2 tap loop
        base = qh * ow
        acc = acc + jnp.dot(xa_ref[0, base:base + p, :], w_ref[qh, 0],
                            preferred_element_type=jnp.float32)
        acc = acc + jnp.dot(xb_ref[0, base:base + p, :], w_ref[qh, 1],
                            preferred_element_type=jnp.float32)
    o_ref[0] = acc.astype(o_ref.dtype)
    s1_ref[0] = jnp.sum(acc, axis=0, keepdims=True)
    s2_ref[0] = jnp.sum(acc * acc, axis=0, keepdims=True)


def _mm_lrelu_stats_kernel(x_ref, w_ref, o_ref, s1_ref, s2_ref, acc_ref):
    # conv3/conv4: batch folded into M.  LHS is the im2col of (y_prev - shift);
    # LeakyReLU is applied on load and the deferred BN scale is pre-folded into
    # the weight rows, so this computes conv(lrelu(batchnorm(y_prev))) exactly
    # (train-mode BN, scale > 0).  This layer's own BN partial sums are emitted
    # from the f32 accumulator on the last K step.
    k = pl.program_id(2)

    @pl.when(k == 0)
    def _init():
        acc_ref[...] = jnp.zeros_like(acc_ref)

    x = x_ref[...]
    x = jnp.where(x >= 0, x, LEAKY_SLOPE * x)
    acc_ref[...] += jnp.dot(x, w_ref[...], preferred_element_type=jnp.float32)

    @pl.when(k == pl.num_programs(2) - 1)
    def _finalize():
        acc = acc_ref[...]
        o_ref[...] = acc.astype(o_ref.dtype)
        s1_ref[0] = jnp.sum(acc, axis=0, keepdims=True)
        s2_ref[0] = jnp.sum(acc * acc, axis=0, keepdims=True)


def _conv5_kernel(x_ref, w_ref, b_ref, o_ref, acc_ref):
    # final 4x4 VALID conv (Cout=1) as a K-tiled bf16 MXU matvec, fused with
    # conv4's deferred BN+LReLU, the conv5 bias and the sigmoid.
    k = pl.program_id(1)

    @pl.when(k == 0)
    def _init():
        acc_ref[...] = jnp.zeros_like(acc_ref)

    x = x_ref[...]
    x = jnp.where(x >= 0, x, LEAKY_SLOPE * x)
    acc_ref[...] += jnp.dot(x, w_ref[...], preferred_element_type=jnp.float32)

    @pl.when(k == pl.num_programs(1) - 1)
    def _finalize():
        z = acc_ref[...] + b_ref[...]
        o_ref[...] = 1.0 / (1.0 + jnp.exp(-z))


# ------------------------------ JAX glue (cheap) -------------------------------
def _s2_phase_views(x):
    """x: (N,H,W,C) NHWC (H,W even) -> two (N,(OH+1)*OW,4C) column-phase views."""
    n, h, w, c = x.shape
    oh, ow = h // 2, w // 2
    xp = jnp.pad(x, ((0, 0), (1, 1), (1, 1), (0, 0)))            # pad = 1
    xs = xp.reshape(n, oh + 1, 2, ow + 1, 2, c)
    xs = xs.transpose(0, 1, 3, 2, 4, 5).reshape(n, oh + 1, ow + 1, 4 * c)
    xa = xs[:, :, :ow, :].reshape(n, (oh + 1) * ow, 4 * c)       # qw = 0 phase
    xb = xs[:, :, 1:, :].reshape(n, (oh + 1) * ow, 4 * c)        # qw = 1 phase
    return xa, xb, oh, ow


def _s2_weight(w_pt):
    """PyTorch Conv2d weight (Cout, Cin, 4, 4) -> (2, 2, 4*Cin, Cout) bf16."""
    co, ci = w_pt.shape[0], w_pt.shape[1]
    w = w_pt.reshape(co, ci, 2, 2, 2, 2)           # (co, ci, qh, ph, qw, pw)
    w = w.transpose(2, 4, 3, 5, 1, 0)              # (qh, qw, ph, pw, ci, co)
    return w.reshape(2, 2, 4 * ci, co).astype(jnp.bfloat16)


def _im2col_s2(x):
    """(N,H,W,C), 4x4 kernel, stride 2, pad 1 -> (N*OH*OW, 16*C), (kh,kw,ci) order."""
    n, h, w, c = x.shape
    oh, ow = h // 2, w // 2
    xp = jnp.pad(x, ((0, 0), (1, 1), (1, 1), (0, 0)))
    cols = [xp[:, kh:kh + 2 * oh:2, kw:kw + 2 * ow:2, :]
            for kh in range(4) for kw in range(4)]
    x16 = jnp.concatenate(cols, axis=-1)                          # (N, OH, OW, 16C)
    return x16.reshape(n * oh * ow, 16 * c), oh, ow


def _w_matrix(w_pt, in_scale=None):
    """PyTorch (Cout,Cin,4,4) -> (16*Cin, Cout) bf16 in (kh,kw,ci) row order,
    optionally scaled per input channel (folds the deferred BN gamma*inv_std)."""
    cout, cin = w_pt.shape[0], w_pt.shape[1]
    w = jnp.transpose(w_pt, (2, 3, 1, 0)).reshape(16 * cin, cout)
    if in_scale is not None:
        w = w * jnp.tile(in_scale, 16)[:, None]
    return w.astype(jnp.bfloat16)


# -------------------------------- layer wrappers -------------------------------
def conv1_lrelu(x_img, w_pt, b):
    n = x_img.shape[0]
    cout = w_pt.shape[0]
    xc, oh, ow = _im2col_s2(x_img)                                # (N*OH*OW, 16)
    m, k = xc.shape
    wmat = _w_matrix(w_pt)                                        # (16, d)
    b2 = b.reshape(1, cout).astype(jnp.float32)
    m_t = _pick_tile(m, (512, 256, 128, 64, 32, 16, 8))
    out = pl.pallas_call(
        _conv1_kernel,
        out_shape=jax.ShapeDtypeStruct((m, cout), jnp.bfloat16),
        grid_spec=pltpu.PrefetchScalarGridSpec(
            num_scalar_prefetch=0,
            grid=(m // m_t,),
            in_specs=[pl.BlockSpec((m_t, k), lambda i: (i, 0)),
                      pl.BlockSpec((k, cout), lambda i: (0, 0)),
                      pl.BlockSpec((1, cout), lambda i: (0, 0))],
            out_specs=pl.BlockSpec((m_t, cout), lambda i: (i, 0))),
        compiler_params=pltpu.CompilerParams(dimension_semantics=("parallel",)),
    )(xc, wmat, b2)
    return out.reshape(n, oh, ow, cout)


def conv2_stats(x, w_pt):
    # Conv bias intentionally omitted: it cancels exactly under train-mode BN.
    n = x.shape[0]
    cout = w_pt.shape[0]
    xa, xb, oh, ow = _s2_phase_views(x)
    c4 = xa.shape[-1]
    w2 = _s2_weight(w_pt)
    y, s1, s2 = pl.pallas_call(
        functools.partial(_conv_s2_stats_kernel, oh=oh, ow=ow),
        out_shape=(jax.ShapeDtypeStruct((n, oh * ow, cout), jnp.bfloat16),
                   jax.ShapeDtypeStruct((n, 1, cout), jnp.float32),
                   jax.ShapeDtypeStruct((n, 1, cout), jnp.float32)),
        grid_spec=pltpu.PrefetchScalarGridSpec(
            num_scalar_prefetch=0,
            grid=(n,),
            in_specs=[pl.BlockSpec((1, (oh + 1) * ow, c4), lambda i: (i, 0, 0)),
                      pl.BlockSpec((1, (oh + 1) * ow, c4), lambda i: (i, 0, 0)),
                      pl.BlockSpec((2, 2, c4, cout), lambda i: (0, 0, 0, 0))],
            out_specs=(pl.BlockSpec((1, oh * ow, cout), lambda i: (i, 0, 0)),
                       pl.BlockSpec((1, 1, cout), lambda i: (i, 0, 0)),
                       pl.BlockSpec((1, 1, cout), lambda i: (i, 0, 0)))),
        compiler_params=pltpu.CompilerParams(
            dimension_semantics=("parallel",),
            vmem_limit_bytes=32 * 1024 * 1024),
    )(xa, xb, w2)
    return y.reshape(n, oh, ow, cout), s1, s2


def conv_bn_lrelu_matmul(y_prev, shift, scale, w_pt):
    # conv3 / conv4: previous layer's BN+LReLU deferred into this layer.
    # Mean shift fused by XLA into the im2col copy (zero padding therefore pads
    # the BN+LReLU'd activation with exact zeros); LReLU applied in-kernel;
    # gamma*inv_std folded into the weight rows; batch folded into M.
    n = y_prev.shape[0]
    cout = w_pt.shape[0]
    u = (y_prev.astype(jnp.float32) - shift).astype(jnp.bfloat16)
    xc, oh, ow = _im2col_s2(u)
    m, k = xc.shape
    wmat = _w_matrix(w_pt, in_scale=scale)

    m_t = _pick_tile(m, (512, 256, 128, 64, 32, 16, 8))
    c_t = cout if cout <= 512 else _pick_tile(cout, (512, 256, 128))
    k_t = k if k <= 2048 else _pick_tile(k, (2048, 1024, 512, 256, 128))

    y, s1, s2 = pl.pallas_call(
        _mm_lrelu_stats_kernel,
        out_shape=(jax.ShapeDtypeStruct((m, cout), jnp.bfloat16),
                   jax.ShapeDtypeStruct((m // m_t, 1, cout), jnp.float32),
                   jax.ShapeDtypeStruct((m // m_t, 1, cout), jnp.float32)),
        grid_spec=pltpu.PrefetchScalarGridSpec(
            num_scalar_prefetch=0,
            grid=(m // m_t, cout // c_t, k // k_t),
            in_specs=[pl.BlockSpec((m_t, k_t), lambda i, j, kk: (i, kk)),
                      pl.BlockSpec((k_t, c_t), lambda i, j, kk: (kk, j))],
            out_specs=(pl.BlockSpec((m_t, c_t), lambda i, j, kk: (i, j)),
                       pl.BlockSpec((1, 1, c_t), lambda i, j, kk: (i, 0, j)),
                       pl.BlockSpec((1, 1, c_t), lambda i, j, kk: (i, 0, j))),
            scratch_shapes=[pltpu.VMEM((m_t, c_t), jnp.float32)]),
        compiler_params=pltpu.CompilerParams(
            dimension_semantics=("parallel", "parallel", "arbitrary"),
            vmem_limit_bytes=32 * 1024 * 1024),
    )(xc, wmat)
    return y.reshape(n, oh, ow, cout), s1, s2


def conv5_sigmoid(y_prev, shift, scale, w_pt, b):
    n = y_prev.shape[0]
    k = y_prev.shape[1] * y_prev.shape[2] * y_prev.shape[3]
    u = (y_prev.astype(jnp.float32) - shift).astype(jnp.bfloat16).reshape(n, k)
    wmat = jnp.transpose(w_pt, (2, 3, 1, 0)).reshape(k, 1)       # (kh,kw,ci) rows
    wmat = (wmat * jnp.tile(scale, 16)[:, None]).astype(jnp.bfloat16)
    b2 = b.reshape(1, 1).astype(jnp.float32)

    m_t = _pick_tile(n, (256, 128, 64, 32, 16, 8))
    k_t = k if k <= 4096 else _pick_tile(k, (4096, 2048, 1024, 512, 256, 128))

    return pl.pallas_call(
        _conv5_kernel,
        out_shape=jax.ShapeDtypeStruct((n, 1), jnp.float32),
        grid_spec=pltpu.PrefetchScalarGridSpec(
            num_scalar_prefetch=0,
            grid=(n // m_t, k // k_t),
            in_specs=[pl.BlockSpec((m_t, k_t), lambda i, kk: (i, kk)),
                      pl.BlockSpec((k_t, 1), lambda i, kk: (kk, 0)),
                      pl.BlockSpec((1, 1), lambda i, kk: (0, 0))],
            out_specs=pl.BlockSpec((m_t, 1), lambda i, kk: (i, 0)),
            scratch_shapes=[pltpu.VMEM((m_t, 1), jnp.float32)]),
        compiler_params=pltpu.CompilerParams(
            dimension_semantics=("parallel", "arbitrary")),
    )(u, wmat, b2)


# ----------------------------------- BN fold -----------------------------------
def _bn_fold(s1_parts, s2_parts, count, gamma, beta):
    # Per-channel batch statistics from the kernels' partial sums (train-mode BN,
    # biased variance, like PyTorch).  Returns (shift, scale) so the next layer
    # applies lrelu(scale * (y - shift)) == lrelu(BN(y)).
    c = s1_parts.shape[-1]
    s1 = jnp.sum(s1_parts.reshape(-1, c), axis=0)
    s2 = jnp.sum(s2_parts.reshape(-1, c), axis=0)
    mean = s1 / count
    var = jnp.maximum(s2 / count - mean * mean, 0.0)
    inv_std = jax.lax.rsqrt(var + EPS)
    scale = gamma * inv_std
    # TODO(synk): trained params with gamma <= 0 break folding `scale` into the
    # next conv's weights (lrelu(s*x) == s*lrelu(x) only for s > 0).
    shift = mean - beta / scale
    return shift, scale


# ----------------------------------- forward -----------------------------------
def discriminator_forward(params, x_nchw):
    n = x_nchw.shape[0]
    h = jnp.transpose(x_nchw, (0, 2, 3, 1)).astype(jnp.bfloat16)     # NHWC, bf16

    h1 = conv1_lrelu(h, params["w1"], params["b1"])                  # (N,32,32,d)

    # conv2..conv4 biases are mathematical no-ops under train-mode BatchNorm
    # (per-channel mean subtraction cancels them), so they are not used.
    y2, s1, s2 = conv2_stats(h1, params["w2"])                       # (N,16,16,2d) raw
    sh2, sc2 = _bn_fold(s1, s2, n * y2.shape[1] * y2.shape[2],
                        params["g2"], params["be2"])

    y3, s1, s2 = conv_bn_lrelu_matmul(y2, sh2, sc2, params["w3"])    # (N,8,8,4d) raw
    sh3, sc3 = _bn_fold(s1, s2, n * y3.shape[1] * y3.shape[2],
                        params["g3"], params["be3"])

    y4, s1, s2 = conv_bn_lrelu_matmul(y3, sh3, sc3, params["w4"])    # (N,4,4,8d) raw
    sh4, sc4 = _bn_fold(s1, s2, n * y4.shape[1] * y4.shape[2],
                        params["g4"], params["be4"])

    out = conv5_sigmoid(y4, sh4, sc4, params["w5"], params["b5"])    # (N,1)
    return out.reshape(n, 1, 1, 1)                                   # NCHW (N,1,1,1)


# ------------------------- pure-JAX reference (f32) ----------------------------
def _reference_forward(params, x):
    def conv(h, w, b, stride, pad):
        out = jax.lax.conv_general_dilated(
            h, w, window_strides=(stride, stride),
            padding=((pad, pad), (pad, pad)),
            dimension_numbers=("NCHW", "OIHW", "NCHW"))
        return out + b.reshape(1, -1, 1, 1)

    def bn(h, gamma, beta):
        mean = jnp.mean(h, axis=(0, 2, 3), keepdims=True)
        var = jnp.mean((h - mean) ** 2, axis=(0, 2, 3), keepdims=True)
        hn = (h - mean) * jax.lax.rsqrt(var + EPS)
        return gamma.reshape(1, -1, 1, 1) * hn + beta.reshape(1, -1, 1, 1)

    def lrelu(h):
        return jnp.where(h >= 0, h, LEAKY_SLOPE * h)

    h = lrelu(conv(x, params["w1"], params["b1"], 2, 1))
    h = lrelu(bn(conv(h, params["w2"], params["b2"], 2, 1), params["g2"], params["be2"]))
    h = lrelu(bn(conv(h, params["w3"], params["b3"], 2, 1), params["g3"], params["be3"]))
    h = lrelu(bn(conv(h, params["w4"], params["b4"], 2, 1), params["g4"], params["be4"]))
    z = conv(h, params["w5"], params["b5"], 1, 0)
    return jax.nn.sigmoid(z)


# ------------------- parameters (deterministic, DCGAN init) --------------------
def init_params(key, d=16):
    # normal_init(mean=0, std=0.02) on conv weights, zero biases;
    # BatchNorm affine params at nn.BatchNorm2d defaults (gamma=1, beta=0).
    dims = [(1, d), (d, 2 * d), (2 * d, 4 * d), (4 * d, 8 * d), (8 * d, 1)]
    ks = jax.random.split(key, len(dims))
    params = {}
    for i, (cin, cout) in enumerate(dims):
        params[f"w{i + 1}"] = 0.02 * jax.random.normal(
            ks[i], (cout, cin, 4, 4), jnp.float32)   # PyTorch (Cout, Cin, KH, KW)
        params[f"b{i + 1}"] = jnp.zeros((cout,), jnp.float32)
    for i in (2, 3, 4):
        c = dims[i - 1][1]
        params[f"g{i}"] = jnp.ones((c,), jnp.float32)
        params[f"be{i}"] = jnp.zeros((c,), jnp.float32)
    return params


if __name__ == "__main__":
    d = 16  # small width (module default d=128); channel ratios 1->d->2d->4d->8d->1 kept
    key = jax.random.PRNGKey(0)
    kp, kx = jax.random.split(key)
    params = init_params(kp, d=d)
    # 64x64 single-channel input, as the DCGAN-MNIST script feeds the discriminator
    x = jax.random.normal(kx, (2, 1, 64, 64), jnp.float32)

    out = jax.jit(discriminator_forward)(params, x)
    out = jax.block_until_ready(out)
    assert out.shape == (2, 1, 1, 1) and out.dtype == jnp.float32
    assert bool(jnp.all(jnp.isfinite(out)))
    assert bool(jnp.all((out >= 0.0) & (out <= 1.0)))

    # bf16 kernels vs f32 reference: loose tolerance.
    ref = _reference_forward(params, x)
    assert bool(jnp.all(jnp.abs(out - ref) < 5e-2))
    print("KERNEL_OK")
</pallas_src>

<mosaic_0001>
module attributes {stable_mosaic.version = 11 : i64} {
  func.func @_conv1_kernel(%arg0: i32, %arg1: memref<512x16xbf16, #tpu.memory_space<vmem>>, %arg2: memref<16x16xbf16, #tpu.memory_space<vmem>>, %arg3: memref<1x16xf32, #tpu.memory_space<vmem>>, %arg4: memref<512x16xbf16, #tpu.memory_space<vmem>>) attributes {dimension_semantics = [#tpu.dimension_semantics<parallel>], iteration_bounds = array<i64: 4>, scalar_prefetch = 0 : i64, scratch_operands = 0 : i64, tpu.core_type = #tpu.core_type<tc>, window_params = [{transform_indices = @transform_0, window_bounds = array<i64: 512, 16>}, {pipeline_mode = #tpu.pipeline_mode<synchronous>, transform_indices = @transform_1, window_bounds = array<i64: 16, 16>}, {pipeline_mode = #tpu.pipeline_mode<synchronous>, transform_indices = @transform_2, window_bounds = array<i64: 1, 16>}, {transform_indices = @transform_3, window_bounds = array<i64: 512, 16>}]} {
    %c0 = arith.constant 0 : index
    %c0_0 = arith.constant 0 : index
    %0 = vector.load %arg1[%c0, %c0_0] : memref<512x16xbf16, #tpu.memory_space<vmem>>, vector<512x16xbf16>
    %c0_1 = arith.constant 0 : index
    %c0_2 = arith.constant 0 : index
    %1 = vector.load %arg2[%c0_1, %c0_2] : memref<16x16xbf16, #tpu.memory_space<vmem>>, vector<16x16xbf16>
    %cst = arith.constant dense<0.000000e+00> : vector<512x16xf32>
    %2 = tpu.matmul %0, %1, %cst {dimension_numbers = #tpu.dot_dimension_numbers<[1], [0], [0], [1], [0, 0, 1, 1], [], []>} : vector<512x16xbf16>, vector<16x16xbf16>, vector<512x16xf32> -> vector<512x16xf32>
    %c0_3 = arith.constant 0 : index
    %c0_4 = arith.constant 0 : index
    %3 = vector.load %arg3[%c0_3, %c0_4] : memref<1x16xf32, #tpu.memory_space<vmem>>, vector<1x16xf32>
    %4 = vector.broadcast %3 : vector<1x16xf32> to vector<512x16xf32>
    %5 = arith.addf %2, %4 : vector<512x16xf32>
    %cst_5 = arith.constant 0.000000e+00 : f32
    %6 = vector.broadcast %cst_5 : f32 to vector<512x16xf32>
    %7 = arith.cmpf oge, %5, %6 : vector<512x16xf32>
    %cst_6 = arith.constant 2.000000e-01 : f32
    %8 = vector.broadcast %cst_6 : f32 to vector<512x16xf32>
    %9 = arith.mulf %8, %5 : vector<512x16xf32>
    %10 = arith.select %7, %5, %9 : vector<512x16xi1>, vector<512x16xf32>
    %11 = arith.truncf %10 : vector<512x16xf32> to vector<512x16xbf16>
    %c0_7 = arith.constant 0 : index
    %c0_8 = arith.constant 0 : index
    %12 = vector.load %arg4[%c0_7, %c0_8] : memref<512x16xbf16, #tpu.memory_space<vmem>>, vector<512x16xbf16>
    tpu.vector_store %arg4[%c0_7, %c0_8], %11 {strides = array<i32>} : memref<512x16xbf16, #tpu.memory_space<vmem>>, vector<512x16xbf16>,
    return
  }
  func.func @transform_0(%arg0: i32) -> (i32, i32) {
    %c0_i32 = arith.constant 0 : i32
    %c0_i32_0 = arith.constant 0 : i32
    return %arg0, %c0_i32 : i32, i32
  }
  func.func @transform_1(%arg0: i32) -> (i32, i32) {
    %c0_i32 = arith.constant 0 : i32
    %c0_i32_0 = arith.constant 0 : i32
    %c0_i32_1 = arith.constant 0 : i32
    return %c0_i32, %c0_i32_0 : i32, i32
  }
  func.func @transform_2(%arg0: i32) -> (i32, i32) {
    %c0_i32 = arith.constant 0 : i32
    %c0_i32_0 = arith.constant 0 : i32
    %c0_i32_1 = arith.constant 0 : i32
    return %c0_i32, %c0_i32_0 : i32, i32
  }
  func.func @transform_3(%arg0: i32) -> (i32, i32) {
    %c0_i32 = arith.constant 0 : i32
    %c0_i32_0 = arith.constant 0 : i32
    return %arg0, %c0_i32 : i32, i32
  }
}

module attributes {stable_mosaic.version = 11 : i64} {
  func.func @_conv_s2_stats_kernel(%arg0: i32, %arg1: memref<1x272x64xbf16, #tpu.memory_space<vmem>>, %arg2: memref<1x272x64xbf16, #tpu.memory_space<vmem>>, %arg3: memref<2x2x64x32xbf16, #tpu.memory_space<vmem>>, %arg4: memref<1x256x32xbf16, #tpu.memory_space<vmem>>, %arg5: memref<1x1x32xf32, #tpu.memory_space<vmem>>, %arg6: memref<1x1x32xf32, #tpu.memory_space<vmem>>) attributes {dimension_semantics = [#tpu.dimension_semantics<parallel>], iteration_bounds = array<i64: 2>, scalar_prefetch = 0 : i64, scratch_operands = 0 : i64, tpu.core_type = #tpu.core_type<tc>, window_params = [{transform_indices = @transform_0, window_bounds = array<i64: 1, 272, 64>}, {transform_indices = @transform_1, window_bounds = array<i64: 1, 272, 64>}, {pipeline_mode = #tpu.pipeline_mode<synchronous>, transform_indices = @transform_2, window_bounds = array<i64: 2, 2, 64, 32>}, {transform_indices = @transform_3, window_bounds = array<i64: 1, 256, 32>}, {transform_indices = @transform_4, window_bounds = array<i64: 1, 1, 32>}, {transform_indices = @transform_5, window_bounds = array<i64: 1, 1, 32>}]} {
    %cst = arith.constant 0.000000e+00 : f32
    %0 = vector.broadcast %cst : f32 to vector<256x32xf32>
    %c0 = arith.constant 0 : index
    %c0_0 = arith.constant 0 : index
    %c0_1 = arith.constant 0 : index
    %1 = vector.load %arg1[%c0, %c0_0, %c0_1] : memref<1x272x64xbf16, #tpu.memory_space<vmem>>, vector<1x256x64xbf16>
    %2 = vector.shape_cast %1 : vector<1x256x64xbf16> to vector<256x64xbf16>
    %c0_2 = arith.constant 0 : index
    %c0_3 = arith.constant 0 : index
    %c0_4 = arith.constant 0 : index
    %c0_5 = arith.constant 0 : index
    %3 = vector.load %arg3[%c0_2, %c0_3, %c0_4, %c0_5] : memref<2x2x64x32xbf16, #tpu.memory_space<vmem>>, vector<1x1x64x32xbf16>
    %4 = vector.shape_cast %3 : vector<1x1x64x32xbf16> to vector<64x32xbf16>
    %cst_6 = arith.constant dense<0.000000e+00> : vector<256x32xf32>
    %5 = tpu.matmul %2, %4, %cst_6 {dimension_numbers = #tpu.dot_dimension_numbers<[1], [0], [0], [1], [0, 0, 1, 1], [], []>} : vector<256x64xbf16>, vector<64x32xbf16>, vector<256x32xf32> -> vector<256x32xf32>
    %6 = arith.addf %0, %5 : vector<256x32xf32>
    %c0_7 = arith.constant 0 : index
    %c0_8 = arith.constant 0 : index
    %c0_9 = arith.constant 0 : index
    %7 = vector.load %arg2[%c0_7, %c0_8, %c0_9] : memref<1x272x64xbf16, #tpu.memory_space<vmem>>, vector<1x256x64xbf16>
    %8 = vector.shape_cast %7 : vector<1x256x64xbf16> to vector<256x64xbf16>
    %c0_10 = arith.constant 0 : index
    %c1 = arith.constant 1 : index
    %c0_11 = arith.constant 0 : index
    %c0_12 = arith.constant 0 : index
    %9 = vector.load %arg3[%c0_10, %c1, %c0_11, %c0_12] : memref<2x2x64x32xbf16, #tpu.memory_space<vmem>>, vector<1x1x64x32xbf16>
    %10 = vector.shape_cast %9 : vector<1x1x64x32xbf16> to vector<64x32xbf16>
    %cst_13 = arith.constant dense<0.000000e+00> : vector<256x32xf32>
    %11 = tpu.matmul %8, %10, %cst_13 {dimension_numbers = #tpu.dot_dimension_numbers<[1], [0], [0], [1], [0, 0, 1, 1], [], []>} : vector<256x64xbf16>, vector<64x32xbf16>, vector<256x32xf32> -> vector<256x32xf32>
    %12 = arith.addf %6, %11 : vector<256x32xf32>
    %c0_14 = arith.constant 0 : index
    %c16 = arith.constant 16 : index
    %c0_15 = arith.constant 0 : index
    %13 = vector.load %arg1[%c0_14, %c16, %c0_15] : memref<1x272x64xbf16, #tpu.memory_space<vmem>>, vector<1x256x64xbf16>
    %14 = vector.shape_cast %13 : vector<1x256x64xbf16> to vector<256x64xbf16>
    %c1_16 = arith.constant 1 : index
    %c0_17 = arith.constant 0 : index
    %c0_18 = arith.constant 0 : index
    %c0_19 = arith.constant 0 : index
    %15 = vector.load %arg3[%c1_16, %c0_17, %c0_18, %c0_19] : memref<2x2x64x32xbf16, #tpu.memory_space<vmem>>, vector<1x1x64x32xbf16>
    %16 = vector.shape_cast %15 : vector<1x1x64x32xbf16> to vector<64x32xbf16>
    %cst_20 = arith.constant dense<0.000000e+00> : vector<256x32xf32>
    %17 = tpu.matmul %14, %16, %cst_20 {dimension_numbers = #tpu.dot_dimension_numbers<[1], [0], [0], [1], [0, 0, 1, 1], [], []>} : vector<256x64xbf16>, vector<64x32xbf16>, vector<256x32xf32> -> vector<256x32xf32>
    %18 = arith.addf %12, %17 : vector<256x32xf32>
    %c0_21 = arith.constant 0 : index
    %c16_22 = arith.constant 16 : index
    %c0_23 = arith.constant 0 : index
    %19 = vector.load %arg2[%c0_21, %c16_22, %c0_23] : memref<1x272x64xbf16, #tpu.memory_space<vmem>>, vector<1x256x64xbf16>
    %20 = vector.shape_cast %19 : vector<1x256x64xbf16> to vector<256x64xbf16>
    %c1_24 = arith.constant 1 : index
    %c1_25 = arith.constant 1 : index
    %c0_26 = arith.constant 0 : index
    %c0_27 = arith.constant 0 : index
    %21 = vector.load %arg3[%c1_24, %c1_25, %c0_26, %c0_27] : memref<2x2x64x32xbf16, #tpu.memory_space<vmem>>, vector<1x1x64x32xbf16>
    %22 = vector.shape_cast %21 : vector<1x1x64x32xbf16> to vector<64x32xbf16>
    %cst_28 = arith.constant dense<0.000000e+00> : vector<256x32xf32>
    %23 = tpu.matmul %20, %22, %cst_28 {dimension_numbers = #tpu.dot_dimension_numbers<[1], [0], [0], [1], [0, 0, 1, 1], [], []>} : vector<256x64xbf16>, vector<64x32xbf16>, vector<256x32xf32> -> vector<256x32xf32>
    %24 = arith.addf %18, %23 : vector<256x32xf32>
    %25 = arith.truncf %24 : vector<256x32xf32> to vector<256x32xbf16>
    %c0_29 = arith.constant 0 : index
    %c0_30 = arith.constant 0 : index
    %c0_31 = arith.constant 0 : index
    %26 = vector.load %arg4[%c0_29, %c0_30, %c0_31] : memref<1x256x32xbf16, #tpu.memory_space<vmem>>, vector<1x256x32xbf16>
    %27 = vector.shape_cast %26 : vector<1x256x32xbf16> to vector<256x32xbf16>
    %28 = vector.shape_cast %25 : vector<256x32xbf16> to vector<1x256x32xbf16>
    tpu.vector_store %arg4[%c0_29, %c0_30, %c0_31], %28 {strides = array<i32>} : memref<1x256x32xbf16, #tpu.memory_space<vmem>>, vector<1x256x32xbf16>,
    %cst_32 = arith.constant dense<0.000000e+00> : vector<32xf32>
    %29 = vector.multi_reduction <add>, %24, %cst_32 [0] : vector<256x32xf32> to vector<32xf32>
    %30 = vector.shape_cast %29 : vector<32xf32> to vector<1x32xf32>
    %c0_33 = arith.constant 0 : index
    %c0_34 = arith.constant 0 : index
    %c0_35 = arith.constant 0 : index
    %31 = vector.load %arg5[%c0_33, %c0_34, %c0_35] : memref<1x1x32xf32, #tpu.memory_space<vmem>>, vector<1x1x32xf32>
    %32 = vector.shape_cast %31 : vector<1x1x32xf32> to vector<1x32xf32>
    %33 = vector.shape_cast %30 : vector<1x32xf32> to vector<1x1x32xf32>
    tpu.vector_store %arg5[%c0_33, %c0_34, %c0_35], %33 {strides = array<i32>} : memref<1x1x32xf32, #tpu.memory_space<vmem>>, vector<1x1x32xf32>,
    %34 = arith.mulf %24, %24 : vector<256x32xf32>
    %cst_36 = arith.constant dense<0.000000e+00> : vector<32xf32>
    %35 = vector.multi_reduction <add>, %34, %cst_36 [0] : vector<256x32xf32> to vector<32xf32>
    %36 = vector.shape_cast %35 : vector<32xf32> to vector<1x32xf32>
    %c0_37 = arith.constant 0 : index
    %c0_38 = arith.constant 0 : index
    %c0_39 = arith.constant 0 : index
    %37 = vector.load %arg6[%c0_37, %c0_38, %c0_39] : memref<1x1x32xf32, #tpu.memory_space<vmem>>, vector<1x1x32xf32>
    %38 = vector.shape_cast %37 : vector<1x1x32xf32> to vector<1x32xf32>
    %39 = vector.shape_cast %36 : vector<1x32xf32> to vector<1x1x32xf32>
    tpu.vector_store %arg6[%c0_37, %c0_38, %c0_39], %39 {strides = array<i32>} : memref<1x1x32xf32, #tpu.memory_space<vmem>>, vector<1x1x32xf32>,
    return
  }
  func.func @transform_0(%arg0: i32) -> (i32, i32, i32) {
    %c0_i32 = arith.constant 0 : i32
    %c0_i32_0 = arith.constant 0 : i32
    %c0_i32_1 = arith.constant 0 : i32
    return %arg0, %c0_i32, %c0_i32_0 : i32, i32, i32
  }
  func.func @transform_1(%arg0: i32) -> (i32, i32, i32) {
    %c0_i32 = arith.constant 0 : i32
    %c0_i32_0 = arith.constant 0 : i32
    %c0_i32_1 = arith.constant 0 : i32
    return %arg0, %c0_i32, %c0_i32_0 : i32, i32, i32
  }
  func.func @transform_2(%arg0: i32) -> (i32, i32, i32, i32) {
    %c0_i32 = arith.constant 0 : i32
    %c0_i32_0 = arith.constant 0 : i32
    %c0_i32_1 = arith.constant 0 : i32
    %c0_i32_2 = arith.constant 0 : i32
    %c0_i32_3 = arith.constant 0 : i32
    return %c0_i32, %c0_i32_0, %c0_i32_1, %c0_i32_2 : i32, i32, i32, i32
  }
  func.func @transform_3(%arg0: i32) -> (i32, i32, i32) {
    %c0_i32 = arith.constant 0 : i32
    %c0_i32_0 = arith.constant 0 : i32
    %c0_i32_1 = arith.constant 0 : i32
    return %arg0, %c0_i32, %c0_i32_0 : i32, i32, i32
  }
  func.func @transform_4(%arg0: i32) -> (i32, i32, i32) {
    %c0_i32 = arith.constant 0 : i32
    %c0_i32_0 = arith.constant 0 : i32
    %c0_i32_1 = arith.constant 0 : i32
    return %arg0, %c0_i32, %c0_i32_0 : i32, i32, i32
  }
  func.func @transform_5(%arg0: i32) -> (i32, i32, i32) {
    %c0_i32 = arith.constant 0 : i32
    %c0_i32_0 = arith.constant 0 : i32
    %c0_i32_1 = arith.constant 0 : i32
    return %arg0, %c0_i32, %c0_i32_0 : i32, i32, i32
  }
}

module attributes {stable_mosaic.version = 11 : i64} {
  func.func @_mm_lrelu_stats_kernel(%arg0: i32, %arg1: i32, %arg2: i32, %arg3: memref<128x512xbf16, #tpu.memory_space<vmem>>, %arg4: memref<512x64xbf16, #tpu.memory_space<vmem>>, %arg5: memref<128x64xbf16, #tpu.memory_space<vmem>>, %arg6: memref<1x1x64xf32, #tpu.memory_space<vmem>>, %arg7: memref<1x1x64xf32, #tpu.memory_space<vmem>>, %arg8: memref<128x64xf32, #tpu.memory_space<vmem>>) attributes {dimension_semantics = [#tpu.dimension_semantics<parallel>, #tpu.dimension_semantics<parallel>, #tpu.dimension_semantics<arbitrary>], iteration_bounds = array<i64: 1, 1, 1>, scalar_prefetch = 0 : i64, scratch_operands = 1 : i64, tpu.core_type = #tpu.core_type<tc>, window_params = [{transform_indices = @transform_0, window_bounds = array<i64: 128, 512>}, {transform_indices = @transform_1, window_bounds = array<i64: 512, 64>}, {transform_indices = @transform_2, window_bounds = array<i64: 128, 64>}, {transform_indices = @transform_3, window_bounds = array<i64: 1, 1, 64>}, {transform_indices = @transform_4, window_bounds = array<i64: 1, 1, 64>}]} {
    %c0_i32 = arith.constant 0 : i32
    %0 = arith.cmpi eq, %arg2, %c0_i32 : i32
    %1 = arith.extui %0 : i1 to i32
    %c0_i32_0 = arith.constant 0 : i32
    %2 = arith.cmpi ne, %1, %c0_i32_0 : i32
    scf.if %2 {
      %cst_12 = arith.constant 0.000000e+00 : f32
      %17 = vector.broadcast %cst_12 : f32 to vector<128x64xf32>
      %c0_13 = arith.constant 0 : index
      %c0_14 = arith.constant 0 : index
      %18 = vector.load %arg8[%c0_13, %c0_14] : memref<128x64xf32, #tpu.memory_space<vmem>>, vector<128x64xf32>
      tpu.vector_store %arg8[%c0_13, %c0_14], %17 {strides = array<i32>} : memref<128x64xf32, #tpu.memory_space<vmem>>, vector<128x64xf32>,
    } else {
    }
    %c0 = arith.constant 0 : index
    %c0_1 = arith.constant 0 : index
    %3 = vector.load %arg3[%c0, %c0_1] : memref<128x512xbf16, #tpu.memory_space<vmem>>, vector<128x512xbf16>
    %cst = arith.constant 0.000000e+00 : bf16
    %4 = vector.broadcast %cst : bf16 to vector<128x512xbf16>
    %5 = arith.cmpf oge, %3, %4 : vector<128x512xbf16>
    %cst_2 = arith.constant 2.001950e-01 : bf16
    %6 = vector.broadcast %cst_2 : bf16 to vector<128x512xbf16>
    %7 = arith.mulf %6, %3 : vector<128x512xbf16>
    %8 = arith.select %5, %3, %7 : vector<128x512xi1>, vector<128x512xbf16>
    %c0_3 = arith.constant 0 : index
    %c0_4 = arith.constant 0 : index
    %9 = vector.load %arg8[%c0_3, %c0_4] : memref<128x64xf32, #tpu.memory_space<vmem>>, vector<128x64xf32>
    %c0_5 = arith.constant 0 : index
    %c0_6 = arith.constant 0 : index
    %10 = vector.load %arg4[%c0_5, %c0_6] : memref<512x64xbf16, #tpu.memory_space<vmem>>, vector<512x64xbf16>
    %cst_7 = arith.constant dense<0.000000e+00> : vector<128x64xf32>
    %11 = tpu.matmul %8, %10, %cst_7 {dimension_numbers = #tpu.dot_dimension_numbers<[1], [0], [0], [1], [0, 0, 1, 1], [], []>} : vector<128x512xbf16>, vector<512x64xbf16>, vector<128x64xf32> -> vector<128x64xf32>
    %12 = arith.addf %9, %11 : vector<128x64xf32>
    %c0_8 = arith.constant 0 : index
    %c0_9 = arith.constant 0 : index
    %13 = vector.load %arg8[%c0_8, %c0_9] : memref<128x64xf32, #tpu.memory_space<vmem>>, vector<128x64xf32>
    tpu.vector_store %arg8[%c0_8, %c0_9], %12 {strides = array<i32>} : memref<128x64xf32, #tpu.memory_space<vmem>>, vector<128x64xf32>,
    %c0_i32_10 = arith.constant 0 : i32
    %14 = arith.cmpi eq, %arg2, %c0_i32_10 : i32
    %15 = arith.extui %14 : i1 to i32
    %c0_i32_11 = arith.constant 0 : i32
    %16 = arith.cmpi ne, %15, %c0_i32_11 : i32
    scf.if %16 {
      %c0_12 = arith.constant 0 : index
      %c0_13 = arith.constant 0 : index
      %17 = vector.load %arg8[%c0_12, %c0_13] : memref<128x64xf32, #tpu.memory_space<vmem>>, vector<128x64xf32>
      %18 = arith.truncf %17 : vector<128x64xf32> to vector<128x64xbf16>
      %c0_14 = arith.constant 0 : index
      %c0_15 = arith.constant 0 : index
      %19 = vector.load %arg5[%c0_14, %c0_15] : memref<128x64xbf16, #tpu.memory_space<vmem>>, vector<128x64xbf16>
      tpu.vector_store %arg5[%c0_14, %c0_15], %18 {strides = array<i32>} : memref<128x64xbf16, #tpu.memory_space<vmem>>, vector<128x64xbf16>,
      %cst_16 = arith.constant dense<0.000000e+00> : vector<64xf32>
      %20 = vector.multi_reduction <add>, %17, %cst_16 [0] : vector<128x64xf32> to vector<64xf32>
      %21 = vector.shape_cast %20 : vector<64xf32> to vector<1x64xf32>
      %c0_17 = arith.constant 0 : index
      %c0_18 = arith.constant 0 : index
      %c0_19 = arith.constant 0 : index
      %22 = vector.load %arg6[%c0_17, %c0_18, %c0_19] : memref<1x1x64xf32, #tpu.memory_space<vmem>>, vector<1x1x64xf32>
      %23 = vector.shape_cast %22 : vector<1x1x64xf32> to vector<1x64xf32>
      %24 = vector.shape_cast %21 : vector<1x64xf32> to vector<1x1x64xf32>
      tpu.vector_store %arg6[%c0_17, %c0_18, %c0_19], %24 {strides = array<i32>} : memref<1x1x64xf32, #tpu.memory_space<vmem>>, vector<1x1x64xf32>,
      %25 = arith.mulf %17, %17 : vector<128x64xf32>
      %cst_20 = arith.constant dense<0.000000e+00> : vector<64xf32>
      %26 = vector.multi_reduction <add>, %25, %cst_20 [0] : vector<128x64xf32> to vector<64xf32>
      %27 = vector.shape_cast %26 : vector<64xf32> to vector<1x64xf32>
      %c0_21 = arith.constant 0 : index
      %c0_22 = arith.constant 0 : index
      %c0_23 = arith.constant 0 : index
      %28 = vector.load %arg7[%c0_21, %c0_22, %c0_23] : memref<1x1x64xf32, #tpu.memory_space<vmem>>, vector<1x1x64xf32>
      %29 = vector.shape_cast %28 : vector<1x1x64xf32> to vector<1x64xf32>
      %30 = vector.shape_cast %27 : vector<1x64xf32> to vector<1x1x64xf32>
      tpu.vector_store %arg7[%c0_21, %c0_22, %c0_23], %30 {strides = array<i32>} : memref<1x1x64xf32, #tpu.memory_space<vmem>>, vector<1x1x64xf32>,
    } else {
    }
    return
  }
  func.func @transform_0(%arg0: i32, %arg1: i32, %arg2: i32) -> (i32, i32) {
    %c0_i32 = arith.constant 0 : i32
    return %arg0, %arg2 : i32, i32
  }
  func.func @transform_1(%arg0: i32, %arg1: i32, %arg2: i32) -> (i32, i32) {
    %c0_i32 = arith.constant 0 : i32
    return %arg2, %arg1 : i32, i32
  }
  func.func @transform_2(%arg0: i32, %arg1: i32, %arg2: i32) -> (i32, i32) {
    %c0_i32 = arith.constant 0 : i32
    return %arg0, %arg1 : i32, i32
  }
  func.func @transform_3(%arg0: i32, %arg1: i32, %arg2: i32) -> (i32, i32, i32) {
    %c0_i32 = arith.constant 0 : i32
    %c0_i32_0 = arith.constant 0 : i32
    return %arg0, %c0_i32, %arg1 : i32, i32, i32
  }
  func.func @transform_4(%arg0: i32, %arg1: i32, %arg2: i32) -> (i32, i32, i32) {
    %c0_i32 = arith.constant 0 : i32
    %c0_i32_0 = arith.constant 0 : i32
    return %arg0, %c0_i32, %arg1 : i32, i32, i32
  }
}

module attributes {stable_mosaic.version = 11 : i64} {
  func.func @_mm_lrelu_stats_kernel(%arg0: i32, %arg1: i32, %arg2: i32, %arg3: memref<32x1024xbf16, #tpu.memory_space<vmem>>, %arg4: memref<1024x128xbf16, #tpu.memory_space<vmem>>, %arg5: memref<32x128xbf16, #tpu.memory_space<vmem>>, %arg6: memref<1x1x128xf32, #tpu.memory_space<vmem>>, %arg7: memref<1x1x128xf32, #tpu.memory_space<vmem>>, %arg8: memref<32x128xf32, #tpu.memory_space<vmem>>) attributes {dimension_semantics = [#tpu.dimension_semantics<parallel>, #tpu.dimension_semantics<parallel>, #tpu.dimension_semantics<arbitrary>], iteration_bounds = array<i64: 1, 1, 1>, scalar_prefetch = 0 : i64, scratch_operands = 1 : i64, tpu.core_type = #tpu.core_type<tc>, window_params = [{transform_indices = @transform_0, window_bounds = array<i64: 32, 1024>}, {transform_indices = @transform_1, window_bounds = array<i64: 1024, 128>}, {transform_indices = @transform_2, window_bounds = array<i64: 32, 128>}, {transform_indices = @transform_3, window_bounds = array<i64: 1, 1, 128>}, {transform_indices = @transform_4, window_bounds = array<i64: 1, 1, 128>}]} {
    %c0_i32 = arith.constant 0 : i32
    %0 = arith.cmpi eq, %arg2, %c0_i32 : i32
    %1 = arith.extui %0 : i1 to i32
    %c0_i32_0 = arith.constant 0 : i32
    %2 = arith.cmpi ne, %1, %c0_i32_0 : i32
    scf.if %2 {
      %cst_12 = arith.constant 0.000000e+00 : f32
      %17 = vector.broadcast %cst_12 : f32 to vector<32x128xf32>
      %c0_13 = arith.constant 0 : index
      %c0_14 = arith.constant 0 : index
      %18 = vector.load %arg8[%c0_13, %c0_14] : memref<32x128xf32, #tpu.memory_space<vmem>>, vector<32x128xf32>
      tpu.vector_store %arg8[%c0_13, %c0_14], %17 {strides = array<i32>} : memref<32x128xf32, #tpu.memory_space<vmem>>, vector<32x128xf32>,
    } else {
    }
    %c0 = arith.constant 0 : index
    %c0_1 = arith.constant 0 : index
    %3 = vector.load %arg3[%c0, %c0_1] : memref<32x1024xbf16, #tpu.memory_space<vmem>>, vector<32x1024xbf16>
    %cst = arith.constant 0.000000e+00 : bf16
    %4 = vector.broadcast %cst : bf16 to vector<32x1024xbf16>
    %5 = arith.cmpf oge, %3, %4 : vector<32x1024xbf16>
    %cst_2 = arith.constant 2.001950e-01 : bf16
    %6 = vector.broadcast %cst_2 : bf16 to vector<32x1024xbf16>
    %7 = arith.mulf %6, %3 : vector<32x1024xbf16>
    %8 = arith.select %5, %3, %7 : vector<32x1024xi1>, vector<32x1024xbf16>
    %c0_3 = arith.constant 0 : index
    %c0_4 = arith.constant 0 : index
    %9 = vector.load %arg8[%c0_3, %c0_4] : memref<32x128xf32, #tpu.memory_space<vmem>>, vector<32x128xf32>
    %c0_5 = arith.constant 0 : index
    %c0_6 = arith.constant 0 : index
    %10 = vector.load %arg4[%c0_5, %c0_6] : memref<1024x128xbf16, #tpu.memory_space<vmem>>, vector<1024x128xbf16>
    %cst_7 = arith.constant dense<0.000000e+00> : vector<32x128xf32>
    %11 = tpu.matmul %8, %10, %cst_7 {dimension_numbers = #tpu.dot_dimension_numbers<[1], [0], [0], [1], [0, 0, 1, 1], [], []>} : vector<32x1024xbf16>, vector<1024x128xbf16>, vector<32x128xf32> -> vector<32x128xf32>
    %12 = arith.addf %9, %11 : vector<32x128xf32>
    %c0_8 = arith.constant 0 : index
    %c0_9 = arith.constant 0 : index
    %13 = vector.load %arg8[%c0_8, %c0_9] : memref<32x128xf32, #tpu.memory_space<vmem>>, vector<32x128xf32>
    tpu.vector_store %arg8[%c0_8, %c0_9], %12 {strides = array<i32>} : memref<32x128xf32, #tpu.memory_space<vmem>>, vector<32x128xf32>,
    %c0_i32_10 = arith.constant 0 : i32
    %14 = arith.cmpi eq, %arg2, %c0_i32_10 : i32
    %15 = arith.extui %14 : i1 to i32
    %c0_i32_11 = arith.constant 0 : i32
    %16 = arith.cmpi ne, %15, %c0_i32_11 : i32
    scf.if %16 {
      %c0_12 = arith.constant 0 : index
      %c0_13 = arith.constant 0 : index
      %17 = vector.load %arg8[%c0_12, %c0_13] : memref<32x128xf32, #tpu.memory_space<vmem>>, vector<32x128xf32>
      %18 = arith.truncf %17 : vector<32x128xf32> to vector<32x128xbf16>
      %c0_14 = arith.constant 0 : index
      %c0_15 = arith.constant 0 : index
      %19 = vector.load %arg5[%c0_14, %c0_15] : memref<32x128xbf16, #tpu.memory_space<vmem>>, vector<32x128xbf16>
      tpu.vector_store %arg5[%c0_14, %c0_15], %18 {strides = array<i32>} : memref<32x128xbf16, #tpu.memory_space<vmem>>, vector<32x128xbf16>,
      %cst_16 = arith.constant dense<0.000000e+00> : vector<128xf32>
      %20 = vector.multi_reduction <add>, %17, %cst_16 [0] : vector<32x128xf32> to vector<128xf32>
      %21 = vector.shape_cast %20 : vector<128xf32> to vector<1x128xf32>
      %c0_17 = arith.constant 0 : index
      %c0_18 = arith.constant 0 : index
      %c0_19 = arith.constant 0 : index
      %22 = vector.load %arg6[%c0_17, %c0_18, %c0_19] : memref<1x1x128xf32, #tpu.memory_space<vmem>>, vector<1x1x128xf32>
      %23 = vector.shape_cast %22 : vector<1x1x128xf32> to vector<1x128xf32>
      %24 = vector.shape_cast %21 : vector<1x128xf32> to vector<1x1x128xf32>
      tpu.vector_store %arg6[%c0_17, %c0_18, %c0_19], %24 {strides = array<i32>} : memref<1x1x128xf32, #tpu.memory_space<vmem>>, vector<1x1x128xf32>,
      %25 = arith.mulf %17, %17 : vector<32x128xf32>
      %cst_20 = arith.constant dense<0.000000e+00> : vector<128xf32>
      %26 = vector.multi_reduction <add>, %25, %cst_20 [0] : vector<32x128xf32> to vector<128xf32>
      %27 = vector.shape_cast %26 : vector<128xf32> to vector<1x128xf32>
      %c0_21 = arith.constant 0 : index
      %c0_22 = arith.constant 0 : index
      %c0_23 = arith.constant 0 : index
      %28 = vector.load %arg7[%c0_21, %c0_22, %c0_23] : memref<1x1x128xf32, #tpu.memory_space<vmem>>, vector<1x1x128xf32>
      %29 = vector.shape_cast %28 : vector<1x1x128xf32> to vector<1x128xf32>
      %30 = vector.shape_cast %27 : vector<1x128xf32> to vector<1x1x128xf32>
      tpu.vector_store %arg7[%c0_21, %c0_22, %c0_23], %30 {strides = array<i32>} : memref<1x1x128xf32, #tpu.memory_space<vmem>>, vector<1x1x128xf32>,
    } else {
    }
    return
  }
  func.func @transform_0(%arg0: i32, %arg1: i32, %arg2: i32) -> (i32, i32) {
    %c0_i32 = arith.constant 0 : i32
    return %arg0, %arg2 : i32, i32
  }
  func.func @transform_1(%arg0: i32, %arg1: i32, %arg2: i32) -> (i32, i32) {
    %c0_i32 = arith.constant 0 : i32
    return %arg2, %arg1 : i32, i32
  }
  func.func @transform_2(%arg0: i32, %arg1: i32, %arg2: i32) -> (i32, i32) {
    %c0_i32 = arith.constant 0 : i32
    return %arg0, %arg1 : i32, i32
  }
  func.func @transform_3(%arg0: i32, %arg1: i32, %arg2: i32) -> (i32, i32, i32) {
    %c0_i32 = arith.constant 0 : i32
    %c0_i32_0 = arith.constant 0 : i32
    return %arg0, %c0_i32, %arg1 : i32, i32, i32
  }
  func.func @transform_4(%arg0: i32, %arg1: i32, %arg2: i32) -> (i32, i32, i32) {
    %c0_i32 = arith.constant 0 : i32
    %c0_i32_0 = arith.constant 0 : i32
    return %arg0, %c0_i32, %arg1 : i32, i32, i32
  }
}

module attributes {stable_mosaic.version = 11 : i64} {
  func.func @_conv5_kernel(%arg0: i32, %arg1: i32, %arg2: memref<2x2048xbf16, #tpu.memory_space<vmem>>, %arg3: memref<2048x1xbf16, #tpu.memory_space<vmem>>, %arg4: memref<1x1xf32, #tpu.memory_space<vmem>>, %arg5: memref<2x1xf32, #tpu.memory_space<vmem>>, %arg6: memref<2x1xf32, #tpu.memory_space<vmem>>) attributes {dimension_semantics = [#tpu.dimension_semantics<parallel>, #tpu.dimension_semantics<arbitrary>], iteration_bounds = array<i64: 1, 1>, scalar_prefetch = 0 : i64, scratch_operands = 1 : i64, tpu.core_type = #tpu.core_type<tc>, window_params = [{transform_indices = @transform_0, window_bounds = array<i64: 2, 2048>}, {transform_indices = @transform_1, window_bounds = array<i64: 2048, 1>}, {pipeline_mode = #tpu.pipeline_mode<synchronous>, transform_indices = @transform_2, window_bounds = array<i64: 1, 1>}, {transform_indices = @transform_3, window_bounds = array<i64: 2, 1>}]} {
    %c0_i32 = arith.constant 0 : i32
    %0 = arith.cmpi eq, %arg1, %c0_i32 : i32
    %1 = arith.extui %0 : i1 to i32
    %c0_i32_0 = arith.constant 0 : i32
    %2 = arith.cmpi ne, %1, %c0_i32_0 : i32
    scf.if %2 {
      %cst_12 = arith.constant 0.000000e+00 : f32
      %17 = vector.broadcast %cst_12 : f32 to vector<2x1xf32>
      %c0_13 = arith.constant 0 : index
      %c0_14 = arith.constant 0 : index
      %18 = vector.load %arg6[%c0_13, %c0_14] : memref<2x1xf32, #tpu.memory_space<vmem>>, vector<2x1xf32>
      tpu.vector_store %arg6[%c0_13, %c0_14], %17 {strides = array<i32>} : memref<2x1xf32, #tpu.memory_space<vmem>>, vector<2x1xf32>,
    } else {
    }
    %c0 = arith.constant 0 : index
    %c0_1 = arith.constant 0 : index
    %3 = vector.load %arg2[%c0, %c0_1] : memref<2x2048xbf16, #tpu.memory_space<vmem>>, vector<2x2048xbf16>
    %cst = arith.constant 0.000000e+00 : bf16
    %4 = vector.broadcast %cst : bf16 to vector<2x2048xbf16>
    %5 = arith.cmpf oge, %3, %4 : vector<2x2048xbf16>
    %cst_2 = arith.constant 2.001950e-01 : bf16
    %6 = vector.broadcast %cst_2 : bf16 to vector<2x2048xbf16>
    %7 = arith.mulf %6, %3 : vector<2x2048xbf16>
    %8 = arith.select %5, %3, %7 : vector<2x2048xi1>, vector<2x2048xbf16>
    %c0_3 = arith.constant 0 : index
    %c0_4 = arith.constant 0 : index
    %9 = vector.load %arg6[%c0_3, %c0_4] : memref<2x1xf32, #tpu.memory_space<vmem>>, vector<2x1xf32>
    %c0_5 = arith.constant 0 : index
    %c0_6 = arith.constant 0 : index
    %10 = vector.load %arg3[%c0_5, %c0_6] : memref<2048x1xbf16, #tpu.memory_space<vmem>>, vector<2048x1xbf16>
    %cst_7 = arith.constant dense<0.000000e+00> : vector<2x1xf32>
    %11 = tpu.matmul %8, %10, %cst_7 {dimension_numbers = #tpu.dot_dimension_numbers<[1], [0], [0], [1], [0, 0, 1, 1], [], []>} : vector<2x2048xbf16>, vector<2048x1xbf16>, vector<2x1xf32> -> vector<2x1xf32>
    %12 = arith.addf %9, %11 : vector<2x1xf32>
    %c0_8 = arith.constant 0 : index
    %c0_9 = arith.constant 0 : index
    %13 = vector.load %arg6[%c0_8, %c0_9] : memref<2x1xf32, #tpu.memory_space<vmem>>, vector<2x1xf32>
    tpu.vector_store %arg6[%c0_8, %c0_9], %12 {strides = array<i32>} : memref<2x1xf32, #tpu.memory_space<vmem>>, vector<2x1xf32>,
    %c0_i32_10 = arith.constant 0 : i32
    %14 = arith.cmpi eq, %arg1, %c0_i32_10 : i32
    %15 = arith.extui %14 : i1 to i32
    %c0_i32_11 = arith.constant 0 : i32
    %16 = arith.cmpi ne, %15, %c0_i32_11 : i32
    scf.if %16 {
      %c0_12 = arith.constant 0 : index
      %c0_13 = arith.constant 0 : index
      %17 = vector.load %arg6[%c0_12, %c0_13] : memref<2x1xf32, #tpu.memory_space<vmem>>, vector<2x1xf32>
      %c0_14 = arith.constant 0 : index
      %c0_15 = arith.constant 0 : index
      %18 = vector.load %arg4[%c0_14, %c0_15] : memref<1x1xf32, #tpu.memory_space<vmem>>, vector<1x1xf32>
      %19 = vector.broadcast %18 : vector<1x1xf32> to vector<2x1xf32>
      %20 = arith.addf %17, %19 : vector<2x1xf32>
      %cst_16 = arith.constant 0.000000e+00 : f32
      %21 = vector.broadcast %cst_16 : f32 to vector<2x1xf32>
      %22 = arith.subf %21, %20 : vector<2x1xf32>
      %23 = math.exp %22 : vector<2x1xf32>
      %cst_17 = arith.constant 1.000000e+00 : f32
      %24 = vector.broadcast %cst_17 : f32 to vector<2x1xf32>
      %25 = arith.addf %24, %23 : vector<2x1xf32>
      %cst_18 = arith.constant 1.000000e+00 : f32
      %26 = vector.broadcast %cst_18 : f32 to vector<2x1xf32>
      %27 = arith.divf %26, %25 : vector<2x1xf32>
      %c0_19 = arith.constant 0 : index
      %c0_20 = arith.constant 0 : index
      %28 = vector.load %arg5[%c0_19, %c0_20] : memref<2x1xf32, #tpu.memory_space<vmem>>, vector<2x1xf32>
      tpu.vector_store %arg5[%c0_19, %c0_20], %27 {strides = array<i32>} : memref<2x1xf32, #tpu.memory_space<vmem>>, vector<2x1xf32>,
    } else {
    }
    return
  }
  func.func @transform_0(%arg0: i32, %arg1: i32) -> (i32, i32) {
    %c0_i32 = arith.constant 0 : i32
    return %arg0, %arg1 : i32, i32
  }
  func.func @transform_1(%arg0: i32, %arg1: i32) -> (i32, i32) {
    %c0_i32 = arith.constant 0 : i32
    %c0_i32_0 = arith.constant 0 : i32
    return %arg1, %c0_i32 : i32, i32
  }
  func.func @transform_2(%arg0: i32, %arg1: i32) -> (i32, i32) {
    %c0_i32 = arith.constant 0 : i32
    %c0_i32_0 = arith.constant 0 : i32
    %c0_i32_1 = arith.constant 0 : i32
    return %c0_i32, %c0_i32_0 : i32, i32
  }
  func.func @transform_3(%arg0: i32, %arg1: i32) -> (i32, i32) {
    %c0_i32 = arith.constant 0 : i32
    %c0_i32_0 = arith.constant 0 : i32
    return %arg0, %c0_i32 : i32, i32
  }
}

</mosaic_0001>

<bundles_post_ra>
// kernel: discriminator_forward.5
= control target key start
LH: loop header
LB: loop body
LE: loop exit
PB: predicated region body
PF: predicated region fallthrough
CT: control target
= control target key end

     0   :  { %s1744_s12 = smov 0   ;;  %s2101_s0 = inlined_call_operand.vmem [shape: bf16[2048,16], index: 0, kind: input, shape index: {}]   ;;  %s2102_s1 = inlined_call_operand.vmem [shape: bf16[16,16], index: 1, kind: input, shape index: {}]   ;;  %s2103_s2 = inlined_call_operand.vmem [shape: f32[1,16], index: 2, kind: input, shape index: {}]   ;;  %s2104_s3 = inlined_call_operand.vmem [shape: bf16[2048,16], index: 3, kind: output, shape index: {}]  }
   0x1 LB: > { %s1369_s13 = sadd.s32 4294967295, %s1722_s12   ;;  %p1373_p0 = scmp.ge.s32.totalorder %s1722_s12, 1  ;;  %s1722_s12 = sphi %s1744_s12, %s13_s12  }
   0x2   : > { %p138_p1 = scmp.lt.s32.totalorder %s1722_s12, 5 }
   0x4   : > { %p139_p2 = pnand %p1373_p0, %p138_p1 }
   0x5   : > { %v1683_v0 = vld [vmem:[%s2102_s1] sm:$0xff] (!%p139_p2)   ;;  %s1374_s16 = sshll.u32 (!%p139_p2), %s1369_s13, 6  ;;  %vm414_vm0 = vcmask (!%p139_p2), 130048   ;;  %vm1248_vm1 = vcmask (!%p139_p2), 125952  }
   0x6   : > { %142 = sbr.rel (%p139_p2) target bundleno = 317 (0x13d), region = 32  ;;  %p163_p3 = scmp.lt.s32.totalorder (!%p139_p2), %s1374_s16, 255  ;;  %1607 = vmatprep.subr.bf16.mxu0 (!%p139_p2), %v1683_v0  ;;  %1673 = vmatprep.subr.bf16.mxu1 (!%p139_p2), %v1683_v0  ;;  %v1832_v33 = vld [vmem:[%s2103_s2] ss:$0 sm:$0xff] (!%p139_p2) }
   0x7   : > { %1608 = vmatpush3.bf16.msra.mxu0 (!%p139_p2), %v1683_v0  ;;  %1674 = vmatpush3.bf16.msra.mxu1 (!%p139_p2), %v1683_v0 }
   0xd   : > { %s2106_s16 = smov (!%p163_p3, %s1374_s16), 255 }
   0xe   : > { %s1375_s17 = sshll.u32 %s2106_s16, 2 }
   0xf   : > { %s1763_s20 = scalar_lea.vmem %s2101_s0, %s1375_s17  ;;  %s1844_s25 = scalar_lea.vmem %s2104_s3, %s1375_s17 }
  0x10   : > { %v1684_v1 = vld [vmem:[%s1763_s20] sm:$0xff]   ;;  %v1686_v3 = vld [vmem:[%s1763_s20 + $0x8] sm:$0xff]   ;;  %v1688_v5 = vld [vmem:[%s1763_s20 + $0x10] sm:$0xff]  }
  0x11   : > { %v1685_v2 = vld [vmem:[%s1763_s20 + $0x80] sm:$0xff]   ;;  %1609 = vmatprep.mubr.msk.bf16.mxu0 %vm414_vm0, %v1684_v1  ;;  %v1687_v4 = vld [vmem:[%s1763_s20 + $0x88] sm:$0xff]   ;;  %v1689_v6 = vld [vmem:[%s1763_s20 + $0x90] sm:$0xff]  }
  0x12   : > { %1641 = vmatprep.mubr.msk.bf16.mxu1 %vm414_vm0, %v1685_v2  ;;  %1610 = vmatmul.mubr.msk.bf16.vlgmr.msra.gmra.mrb[0].mxu0 %vm414_vm0, %v1686_v3  ;;  %v1690_v7 = vld [vmem:[%s1763_s20 + $0x18] sm:$0xff]   ;;  %v1692_v9 = vld [vmem:[%s1763_s20 + $0x20] sm:$0xff]   ;;  %v1694_v11 = vld [vmem:[%s1763_s20 + $0x28] sm:$0xff]  }
  0x13   : > { %1642 = vmatmul.mubr.msk.bf16.vlgmr.msra.gmra.mrb[0].mxu1 %vm414_vm0, %v1687_v4  ;;  %1613 = vmatprep.mubr.msk.bf16.mxu0 %vm414_vm0, %v1688_v5  ;;  %v1691_v8 = vld [vmem:[%s1763_s20 + $0x98] sm:$0xff]   ;;  %v1693_v10 = vld [vmem:[%s1763_s20 + $0xa0] sm:$0xff]   ;;  %v1695_v12 = vld [vmem:[%s1763_s20 + $0xa8] sm:$0xff]  }
  0x14   : > { %1645 = vmatprep.mubr.msk.bf16.mxu1 %vm414_vm0, %v1689_v6  ;;  %v1696_v13 = vld [vmem:[%s1763_s20 + $0x30] sm:$0xff]   ;;  %v1698_v15 = vld [vmem:[%s1763_s20 + $0x38] sm:$0xff]   ;;  %v1700_v17 = vld [vmem:[%s1763_s20 + $0x40] sm:$0xff]  }
  0x15   : > { %v1697_v14 = vld [vmem:[%s1763_s20 + $0xb0] sm:$0xff]   ;;  %v1699_v16 = vld [vmem:[%s1763_s20 + $0xb8] sm:$0xff]   ;;  %v1701_v18 = vld [vmem:[%s1763_s20 + $0xc0] sm:$0xff]  }
  0x16   : > { %v1702_v19 = vld [vmem:[%s1763_s20 + $0x48] sm:$0xff]   ;;  %v1704_v21 = vld [vmem:[%s1763_s20 + $0x50] sm:$0xff]   ;;  %v1706_v23 = vld [vmem:[%s1763_s20 + $0x58] sm:$0xff]  }
  0x17   : > { %v1703_v20 = vld [vmem:[%s1763_s20 + $0xc8] sm:$0xff]   ;;  %v1705_v22 = vld [vmem:[%s1763_s20 + $0xd0] sm:$0xff]   ;;  %v1707_v24 = vld [vmem:[%s1763_s20 + $0xd8] sm:$0xff]  }
  0x18   : > { %v1708_v25 = vld [vmem:[%s1763_s20 + $0x60] sm:$0xff]   ;;  %v1710_v27 = vld [vmem:[%s1763_s20 + $0x68] sm:$0xff]   ;;  %v1712_v29 = vld [vmem:[%s1763_s20 + $0x70] sm:$0xff]  }
  0x19   : > { %v1709_v26 = vld [vmem:[%s1763_s20 + $0xe0] sm:$0xff]   ;;  %v1711_v28 = vld [vmem:[%s1763_s20 + $0xe8] sm:$0xff]   ;;  %v1713_v30 = vld [vmem:[%s1763_s20 + $0xf0] sm:$0xff]  }
  0x1a   : > { %1614 = vmatmul.mubr.msk.bf16.gmra.mrb[4].mxu0 %vm414_vm0, %v1690_v7  ;;  %v1714_v31 = vld [vmem:[%s1763_s20 + $0x78] sm:$0xff]  }
  0x1b   : > { %1646 = vmatmul.mubr.msk.bf16.gmra.mrb[4].mxu1 %vm414_vm0, %v1691_v8  ;;  %1617 = vmatprep.mubr.msk.bf16.mxu0 %vm414_vm0, %v1692_v9  ;;  %v1715_v32 = vld [vmem:[%s1763_s20 + $0xf8] sm:$0xff]  }
  0x1c   : > { %1649 = vmatprep.mubr.msk.bf16.mxu1 %vm414_vm0, %v1693_v10 }
  0x22   : > { %1618 = vmatmul.mubr.msk.bf16.gmra.mrb[8].mxu0 %vm414_vm0, %v1694_v11 }
  0x23   : > { %1650 = vmatmul.mubr.msk.bf16.gmra.mrb[8].mxu1 %vm414_vm0, %v1695_v12  ;;  %1621 = vmatprep.mubr.msk.bf16.mxu0 %vm414_vm0, %v1696_v13 }
  0x24   : > { %1653 = vmatprep.mubr.msk.bf16.mxu1 %vm414_vm0, %v1697_v14 }
  0x2a   : > { %1622 = vmatmul.mubr.msk.bf16.gmra.mrb[12].mxu0 %vm414_vm0, %v1698_v15 }
  0x2b   : > { %1654 = vmatmul.mubr.msk.bf16.gmra.mrb[12].mxu1 %vm414_vm0, %v1699_v16  ;;  %1625 = vmatprep.mubr.msk.bf16.mxu0 %vm414_vm0, %v1700_v17 }
  0x2c   : > { %1657 = vmatprep.mubr.msk.bf16.mxu1 %vm414_vm0, %v1701_v18 }
  0x32   : > { %1626 = vmatmul.mubr.msk.bf16.gmra.mrb[16].mxu0 %vm414_vm0, %v1702_v19 }
  0x33   : > { %1658 = vmatmul.mubr.msk.bf16.gmra.mrb[16].mxu1 %vm414_vm0, %v1703_v20  ;;  %1629 = vmatprep.mubr.msk.bf16.mxu0 %vm414_vm0, %v1704_v21 }
  0x34   : > { %1661 = vmatprep.mubr.msk.bf16.mxu1 %vm414_vm0, %v1705_v22 }
  0x3a   : > { %1630 = vmatmul.mubr.msk.bf16.gmra.mrb[20].mxu0 %vm414_vm0, %v1706_v23 }
  0x3b   : > { %1662 = vmatmul.mubr.msk.bf16.gmra.mrb[20].mxu1 %vm414_vm0, %v1707_v24  ;;  %1633 = vmatprep.mubr.msk.bf16.mxu0 %vm414_vm0, %v1708_v25 }
  0x3c   : > { %1665 = vmatprep.mubr.msk.bf16.mxu1 %vm414_vm0, %v1709_v26 }
  0x42   : > { %1634 = vmatmul.mubr.msk.bf16.gmra.mrb[24].mxu0 %vm414_vm0, %v1710_v27 }
  0x43   : > { %1666 = vmatmul.mubr.msk.bf16.gmra.mrb[24].mxu1 %vm414_vm0, %v1711_v28  ;;  %1637 = vmatprep.mubr.msk.bf16.mxu0 %vm414_vm0, %v1712_v29 }
  0x44   : > { %1669 = vmatprep.mubr.msk.bf16.mxu1 %vm414_vm0, %v1713_v30 }
  0x4a   : > { %1638 = vmatmul.mubr.msk.bf16.gmra.mrb[28].mxu0 %vm414_vm0, %v1714_v31 }
  0x4b   : > { %1670 = vmatmul.mubr.msk.bf16.gmra.mrb[28].mxu1 %vm414_vm0, %v1715_v32 }
  0xe5   : > { %v1611_v34 = vpop.f32.mrb[0].mxu0 }
  0xe6   : > { %v554_v35 = vadd.f32 %v1611_v34, %v1832_v33  ;;  %v1643_v36 = vpop.f32.mrb[0].mxu1  ;;  %v545_v37 = vpop.f32.mrb[1].mxu0 }
  0xe7   : > { %v682_v38 = vadd.f32 %v1643_v36, %v1832_v33  ;;  %v546_v39 = vadd.f32 %v1832_v33, %v545_v37  ;;  %v673_v40 = vpop.f32.mrb[1].mxu1  ;;  %v1612_v41 = vpop.f32.mrb[2].mxu0 }
  0xe8   : > { %vm802_vm2 = vcmp.ge.f32.partialorder %v554_v35, 0.0  ;;  %v866_v42 = vmul.f32 0.2, %v554_v35  ;;  %v674_v43 = vadd.f32 %v1832_v33, %v673_v40  ;;  %v557_v44 = vadd.f32 %v1612_v41, %v1832_v33  ;;  %v1644_v45 = vpop.f32.mrb[2].mxu1  ;;  %v548_v46 = vpop.f32.mrb[3].mxu0 }
  0xe9   : > { %vm834_vm3 = vcmp.ge.f32.partialorder %v682_v38, 0.0  ;;  %v898_v47 = vmul.f32 0.2, %v682_v38  ;;  %vm800_vm4 = vcmp.ge.f32.partialorder %v546_v39, 0.0  ;;  %v864_v48 = vmul.f32 0.2, %v546_v39 }
  0xea   : > { %v930_v49 = vsel %vm802_vm2, %v554_v35, %v866_v42  ;;  %vm832_vm5 = vcmp.ge.f32.partialorder %v674_v43, 0.0  ;;  %v896_v50 = vmul.f32 0.2, %v674_v43  ;;  %vm803_vm6 = vcmp.ge.f32.partialorder %v557_v44, 0.0  ;;  %v676_v51 = vpop.f32.mrb[3].mxu1 }
  0xeb   : > { %v1512_v52 = vpack.c.bf16 %v930_v49, %v930_v49  ;;  %v962_v53 = vsel %vm834_vm3, %v682_v38, %v898_v47  ;;  %v928_v54 = vsel %vm800_vm4, %v546_v39, %v864_v48  ;;  %v867_v55 = vmul.f32 0.2, %v557_v44 }
  0xec   : > { %v1544_v56 = vpack.c.bf16 %v962_v53, %v962_v53  ;;  %v1510_v57 = vpack.c.bf16 %v928_v54, %v928_v54  ;;  %v960_v58 = vsel %vm832_vm5, %v674_v43, %v896_v50  ;;  %v685_v59 = vadd.f32 %v1644_v45, %v1832_v33 }
  0xed   : > { %1251 = vst.msk [vmem:[%s1844_s25 + $0x8] sm:$0xf] %vm1248_vm1, %v1512_v52  ;;  %v1542_v60 = vpack.c.bf16 %v960_v58, %v960_v58  ;;  %v931_v61 = vsel %vm803_vm6, %v557_v44, %v867_v55  ;;  %v549_v62 = vadd.f32 %v1832_v33, %v548_v46  ;;  %v677_v63 = vadd.f32 %v1832_v33, %v676_v51  ;;  %v1615_v0 = vpop.f32.mrb[4].mxu0 }
  0xee   : > { %1283 = vst.msk [vmem:[%s1844_s25 + $0x88] sm:$0xf] %vm1248_vm1, %v1544_v56  ;;  %1249 = vst.msk [vmem:[%s1844_s25] sm:$0xf] %vm1248_vm1, %v1510_v57  ;;  %v1513_v1 = vpack.c.bf16 %v931_v61, %v931_v61  ;;  %vm835_vm7 = vcmp.ge.f32.partialorder %v685_v59, 0.0  ;;  %v570_v3 = vadd.f32 %v1615_v0, %v1832_v33  ;;  %v1647_v4 = vpop.f32.mrb[4].mxu1 }
  0xef   : > { %v899_v2 = vmul.f32 0.2, %v685_v59  ;;  %v561_v5 = vpop.f32.mrb[5].mxu0  ;;  %1281 = vst.msk [vmem:[%s1844_s25 + $0x80] sm:$0xf] %vm1248_vm1, %v1542_v60  ;;  %vm801_vm8 = vcmp.ge.f32.partialorder %v549_v62, 0.0  ;;  %v698_v10 = vadd.f32 %v1647_v4, %v1832_v33 }
  0xf0   : > { %v865_v6 = vmul.f32 0.2, %v549_v62  ;;  %vm833_vm9 = vcmp.ge.f32.partialorder %v677_v63, 0.0  ;;  %v897_v7 = vmul.f32 0.2, %v677_v63  ;;  %vm806_vm10 = vcmp.ge.f32.partialorder %v570_v3, 0.0 }
  0xf1   : > { %1252 = vst.msk [vmem:[%s1844_s25 + $0xc] sm:$0xf] %vm1248_vm1, %v1513_v1  ;;  %v963_v8 = vsel %vm835_vm7, %v685_v59, %v899_v2  ;;  %v870_v9 = vmul.f32 0.2, %v570_v3  ;;  %v689_v11 = vpop.f32.mrb[5].mxu1  ;;  %v1616_v12 = vpop.f32.mrb[6].mxu0  ;;  %v562_v16 = vadd.f32 %v1832_v33, %v561_v5 }
  0xf2   : > { %v1545_v13 = vpack.c.bf16 %v963_v8, %v963_v8  ;;  %v929_v14 = vsel %vm801_vm8, %v549_v62, %v865_v6  ;;  %v961_v15 = vsel %vm833_vm9, %v677_v63, %v897_v7  ;;  %v1648_v17 = vpop.f32.mrb[6].mxu1  ;;  %v564_v18 = vpop.f32.mrb[7].mxu0  ;;  %vm838_vm11 = vcmp.ge.f32.partialorder %v698_v10, 0.0 }
  0xf3   : > { %v1511_v19 = vpack.c.bf16 %v929_v14, %v929_v14  ;;  %v1543_v20 = vpack.c.bf16 %v961_v15, %v961_v15  ;;  %v934_v21 = vsel %vm806_vm10, %v570_v3, %v870_v9  ;;  %v692_v22 = vpop.f32.mrb[7].mxu1  ;;  %v902_v24 = vmul.f32 0.2, %v698_v10 }
  0xf4   : > { %1284 = vst.msk [vmem:[%s1844_s25 + $0x8c] sm:$0xf] %vm1248_vm1, %v1545_v13  ;;  %v1516_v23 = vpack.c.bf16 %v934_v21, %v934_v21  ;;  %vm804_vm12 = vcmp.ge.f32.partialorder %v562_v16, 0.0  ;;  %v868_v25 = vmul.f32 0.2, %v562_v16  ;;  %v690_v26 = vadd.f32 %v1832_v33, %v689_v11 }
  0xf5   : > { %1250 = vst.msk [vmem:[%s1844_s25 + $0x4] sm:$0xf] %vm1248_vm1, %v1511_v19  ;;  %1282 = vst.msk [vmem:[%s1844_s25 + $0x84] sm:$0xf] %vm1248_vm1, %v1543_v20  ;;  %v573_v27 = vadd.f32 %v1616_v12, %v1832_v33  ;;  %v701_v28 = vadd.f32 %v1648_v17, %v1832_v33  ;;  %v565_v29 = vadd.f32 %v1832_v33, %v564_v18  ;;  %v1619_v34 = vpop.f32.mrb[8].mxu0 }
  0xf6   : > { %1255 = vst.msk [vmem:[%s1844_s25 + $0x18] sm:$0xf] %vm1248_vm1, %v1516_v23  ;;  %v966_v30 = vsel %vm838_vm11, %v698_v10, %v902_v24  ;;  %v932_v31 = vsel %vm804_vm12, %v562_v16, %v868_v25  ;;  %v693_v32 = vadd.f32 %v1832_v33, %v692_v22  ;;  %vm836_vm13 = vcmp.ge.f32.partialorder %v690_v26, 0.0  ;;  %v1651_v38 = vpop.f32.mrb[8].mxu1  ;;  %v577_v39 = vpop.f32.mrb[9].mxu0 }
  0xf7   : > { %v1548_v35 = vpack.c.bf16 %v966_v30, %v966_v30  ;;  %v1514_v36 = vpack.c.bf16 %v932_v31, %v932_v31  ;;  %v900_v37 = vmul.f32 0.2, %v690_v26  ;;  %vm807_vm14 = vcmp.ge.f32.partialorder %v573_v27, 0.0  ;;  %v705_v44 = vpop.f32.mrb[9].mxu1  ;;  %v1620_v45 = vpop.f32.mrb[10].mxu0 }
  0xf8   : > { %v871_v40 = vmul.f32 0.2, %v573_v27  ;;  %vm839_vm15 = vcmp.ge.f32.partialorder %v701_v28, 0.0  ;;  %v903_v41 = vmul.f32 0.2, %v701_v28  ;;  %vm805_vm0 = vcmp.ge.f32.partialorder %v565_v29, 0.0 }
  0xf9   : > { %1287 = vst.msk [vmem:[%s1844_s25 + $0x98] sm:$0xf] %vm1248_vm1, %v1548_v35  ;;  %1253 = vst.msk [vmem:[%s1844_s25 + $0x10] sm:$0xf] %vm1248_vm1, %v1514_v36  ;;  %v964_v42 = vsel %vm836_vm13, %v690_v26, %v900_v37  ;;  %v869_v43 = vmul.f32 0.2, %v565_v29  ;;  %v586_v55 = vadd.f32 %v1619_v34, %v1832_v33  ;;  %v714_v59 = vadd.f32 %v1651_v38, %v1832_v33 }
  0xfa   : > { %vm837_vm2 = vcmp.ge.f32.partialorder %v693_v32, 0.0  ;;  %v1546_v46 = vpack.c.bf16 %v964_v42, %v964_v42  ;;  %v935_v47 = vsel %vm807_vm14, %v573_v27, %v871_v40  ;;  %v967_v48 = vsel %vm839_vm15, %v701_v28, %v903_v41  ;;  %v1652_v50 = vpop.f32.mrb[10].mxu1  ;;  %v580_v51 = vpop.f32.mrb[11].mxu0 }
  0xfb   : > { %v901_v49 = vmul.f32 0.2, %v693_v32  ;;  %v1517_v52 = vpack.c.bf16 %v935_v47, %v935_v47  ;;  %v1549_v53 = vpack.c.bf16 %v967_v48, %v967_v48  ;;  %v933_v54 = vsel %vm805_vm0, %v565_v29, %v869_v43  ;;  %v708_v56 = vpop.f32.mrb[11].mxu1 }
  0xfc   : > { %1285 = vst.msk [vmem:[%s1844_s25 + $0x90] sm:$0xf] %vm1248_vm1, %v1546_v46  ;;  %v1515_v57 = vpack.c.bf16 %v933_v54, %v933_v54  ;;  %v578_v60 = vadd.f32 %v1832_v33, %v577_v39  ;;  %vm810_vm3 = vcmp.ge.f32.partialorder %v586_v55, 0.0  ;;  %v874_v62 = vmul.f32 0.2, %v586_v55 }
  0xfd   : > { %v965_v58 = vsel %vm837_vm2, %v693_v32, %v901_v49  ;;  %1256 = vst.msk [vmem:[%s1844_s25 + $0x1c] sm:$0xf] %vm1248_vm1, %v1517_v52  ;;  %1288 = vst.msk [vmem:[%s1844_s25 + $0x9c] sm:$0xf] %vm1248_vm1, %v1549_v53  ;;  %v706_v63 = vadd.f32 %v1832_v33, %v705_v44  ;;  %vm842_vm4 = vcmp.ge.f32.partialorder %v714_v59, 0.0  ;;  %v589_v4 = vadd.f32 %v1620_v45, %v1832_v33  ;;  %v1623_v5 = vpop.f32.mrb[12].mxu0 }
  0xfe   : > { %v1547_v61 = vpack.c.bf16 %v965_v58, %v965_v58  ;;  %1254 = vst.msk [vmem:[%s1844_s25 + $0x14] sm:$0xf] %vm1248_vm1, %v1515_v57  ;;  %v906_v0 = vmul.f32 0.2, %v714_v59  ;;  %vm808_vm5 = vcmp.ge.f32.partialorder %v578_v60, 0.0  ;;  %v938_v2 = vsel %vm810_vm3, %v586_v55, %v874_v62  ;;  %v1655_v6 = vpop.f32.mrb[12].mxu1 }
  0xff   : > { %v872_v1 = vmul.f32 0.2, %v578_v60  ;;  %vm840_vm6 = vcmp.ge.f32.partialorder %v706_v63, 0.0  ;;  %v904_v3 = vmul.f32 0.2, %v706_v63  ;;  %v1520_v7 = vpack.c.bf16 %v938_v2, %v938_v2  ;;  %v593_v11 = vpop.f32.mrb[13].mxu0 }
 0x100   : > { %1286 = vst.msk [vmem:[%s1844_s25 + $0x94] sm:$0xf] %vm1248_vm1, %v1547_v61  ;;  %v970_v8 = vsel %vm842_vm4, %v714_v59, %v906_v0  ;;  %v717_v10 = vadd.f32 %v1652_v50, %v1832_v33  ;;  %v721_v12 = vpop.f32.mrb[13].mxu1  ;;  %vm811_vm7 = vcmp.ge.f32.partialorder %v589_v4, 0.0  ;;  %v1624_v16 = vpop.f32.mrb[14].mxu0  ;;  %v581_v22 = vadd.f32 %v1832_v33, %v580_v51 }
 0x101   : > { %v936_v9 = vsel %vm808_vm5, %v578_v60, %v872_v1  ;;  %v1552_v13 = vpack.c.bf16 %v970_v8, %v970_v8  ;;  %v968_v15 = vsel %vm840_vm6, %v706_v63, %v904_v3  ;;  %v1656_v17 = vpop.f32.mrb[14].mxu1  ;;  %1259 = vst.msk [vmem:[%s1844_s25 + $0x28] sm:$0xf] %vm1248_vm1, %v1520_v7  ;;  %v875_v19 = vmul.f32 0.2, %v589_v4  ;;  %v596_v21 = vpop.f32.mrb[15].mxu0 }
 0x102   : > { %v1518_v14 = vpack.c.bf16 %v936_v9, %v936_v9  ;;  %v1550_v18 = vpack.c.bf16 %v968_v15, %v968_v15  ;;  %vm843_vm8 = vcmp.ge.f32.partialorder %v717_v10, 0.0  ;;  %v907_v20 = vmul.f32 0.2, %v717_v10  ;;  %v724_v26 = vpop.f32.mrb[15].mxu1 }
 0x103   : > { %1291 = vst.msk [vmem:[%s1844_s25 + $0xa8] sm:$0xf] %vm1248_vm1, %v1552_v13  ;;  %v709_v23 = vadd.f32 %v1832_v33, %v708_v56  ;;  %v602_v24 = vadd.f32 %v1623_v5, %v1832_v33  ;;  %v730_v25 = vadd.f32 %v1655_v6, %v1832_v33  ;;  %v939_v27 = vsel %vm811_vm7, %v589_v4, %v875_v19 }
 0x104   : > { %1257 = vst.msk [vmem:[%s1844_s25 + $0x20] sm:$0xf] %vm1248_vm1, %v1518_v14  ;;  %1289 = vst.msk [vmem:[%s1844_s25 + $0xa0] sm:$0xf] %vm1248_vm1, %v1550_v18  ;;  %v971_v28 = vsel %vm843_vm8, %v717_v10, %v907_v20  ;;  %v594_v29 = vadd.f32 %v1832_v33, %v593_v11  ;;  %v722_v30 = vadd.f32 %v1832_v33, %v721_v12  ;;  %vm809_vm9 = vcmp.ge.f32.partialorder %v581_v22, 0.0 }
 0x105   : > { %v1521_v31 = vpack.c.bf16 %v939_v27, %v939_v27  ;;  %v1553_v32 = vpack.c.bf16 %v971_v28, %v971_v28  ;;  %v873_v34 = vmul.f32 0.2, %v581_v22  ;;  %vm841_vm10 = vcmp.ge.f32.partialorder %v709_v23, 0.0  ;;  %v1627_v39 = vpop.f32.mrb[16].mxu0 }
 0x106   : > { %v905_v35 = vmul.f32 0.2, %v709_v23  ;;  %vm814_vm11 = vcmp.ge.f32.partialorder %v602_v24, 0.0  ;;  %v878_v36 = vmul.f32 0.2, %v602_v24  ;;  %vm846_vm12 = vcmp.ge.f32.partialorder %v730_v25, 0.0 }
 0x107   : > { %1260 = vst.msk [vmem:[%s1844_s25 + $0x2c] sm:$0xf] %vm1248_vm1, %v1521_v31  ;;  %1292 = vst.msk [vmem:[%s1844_s25 + $0xac] sm:$0xf] %vm1248_vm1, %v1553_v32  ;;  %v937_v37 = vsel %vm809_vm9, %v581_v22, %v873_v34  ;;  %v910_v38 = vmul.f32 0.2, %v730_v25  ;;  %v605_v55 = vadd.f32 %v1624_v16, %v1832_v33  ;;  %v733_v59 = vadd.f32 %v1656_v17, %v1832_v33 }
 0x108   : > { %vm812_vm13 = vcmp.ge.f32.partialorder %v594_v29, 0.0  ;;  %v1659_v40 = vpop.f32.mrb[16].mxu1  ;;  %v1519_v41 = vpack.c.bf16 %v937_v37, %v937_v37  ;;  %v969_v42 = vsel %vm841_vm10, %v709_v23, %v905_v35  ;;  %v942_v43 = vsel %vm814_vm11, %v602_v24, %v878_v36  ;;  %v609_v45 = vpop.f32.mrb[17].mxu0 }
 0x109   : > { %v876_v44 = vmul.f32 0.2, %v594_v29  ;;  %v737_v46 = vpop.f32.mrb[17].mxu1  ;;  %v1551_v47 = vpack.c.bf16 %v969_v42, %v969_v42  ;;  %v1524_v48 = vpack.c.bf16 %v942_v43, %v942_v43  ;;  %v974_v49 = vsel %vm846_vm12, %v730_v25, %v910_v38  ;;  %v1628_v50 = vpop.f32.mrb[18].mxu0 }
 0x10a   : > { %vm844_vm14 = vcmp.ge.f32.partialorder %v722_v30, 0.0  ;;  %v1660_v51 = vpop.f32.mrb[18].mxu1  ;;  %1258 = vst.msk [vmem:[%s1844_s25 + $0x24] sm:$0xf] %vm1248_vm1, %v1519_v41  ;;  %v1556_v52 = vpack.c.bf16 %v974_v49, %v974_v49  ;;  %v908_v54 = vmul.f32 0.2, %v722_v30  ;;  %v597_v60 = vadd.f32 %v1832_v33, %v596_v21 }
 0x10b   : > { %v940_v53 = vsel %vm812_vm13, %v594_v29, %v876_v44  ;;  %v612_v56 = vpop.f32.mrb[19].mxu0  ;;  %v1919_v57 = vpop.f32.mrb[19].mxu1  ;;  %1290 = vst.msk [vmem:[%s1844_s25 + $0xa4] sm:$0xf] %vm1248_vm1, %v1551_v47  ;;  %1263 = vst.msk [vmem:[%s1844_s25 + $0x38] sm:$0xf] %vm1248_vm1, %v1524_v48  ;;  %v725_v61 = vadd.f32 %v1832_v33, %v724_v26  ;;  %v618_v0 = vadd.f32 %v1627_v39, %v1832_v33 }
 0x10c   : > { %v1522_v58 = vpack.c.bf16 %v940_v53, %v940_v53  ;;  %1295 = vst.msk [vmem:[%s1844_s25 + $0xb8] sm:$0xf] %vm1248_vm1, %v1556_v52  ;;  %v972_v62 = vsel %vm844_vm14, %v722_v30, %v908_v54  ;;  %vm815_vm15 = vcmp.ge.f32.partialorder %v605_v55, 0.0  ;;  %v879_v63 = vmul.f32 0.2, %v605_v55 }
 0x10d   : > { %v1554_v1 = vpack.c.bf16 %v972_v62, %v972_v62  ;;  %vm847_vm0 = vcmp.ge.f32.partialorder %v733_v59, 0.0  ;;  %v911_v2 = vmul.f32 0.2, %v733_v59  ;;  %vm813_vm2 = vcmp.ge.f32.partialorder %v597_v60, 0.0  ;;  %v1631_v6 = vpop.f32.mrb[20].mxu0 }
 0x10e   : > { %1261 = vst.msk [vmem:[%s1844_s25 + $0x30] sm:$0xf] %vm1248_vm1, %v1522_v58  ;;  %v943_v3 = vsel %vm815_vm15, %v605_v55, %v879_v63  ;;  %v877_v4 = vmul.f32 0.2, %v597_v60  ;;  %vm845_vm3 = vcmp.ge.f32.partialorder %v725_v61, 0.0  ;;  %vm818_vm4 = vcmp.ge.f32.partialorder %v618_v0, 0.0 }
 0x10f   : > { %v909_v5 = vmul.f32 0.2, %v725_v61  ;;  %1293 = vst.msk [vmem:[%s1844_s25 + $0xb0] sm:$0xf] %vm1248_vm1, %v1554_v1  ;;  %v1525_v7 = vpack.c.bf16 %v943_v3, %v943_v3  ;;  %v975_v8 = vsel %vm847_vm0, %v733_v59, %v911_v2  ;;  %v882_v9 = vmul.f32 0.2, %v618_v0 }
 0x110   : > { %v1663_v10 = vpop.f32.mrb[20].mxu1  ;;  %v625_v11 = vpop.f32.mrb[21].mxu0  ;;  %v1557_v12 = vpack.c.bf16 %v975_v8, %v975_v8  ;;  %v941_v13 = vsel %vm813_vm2, %v597_v60, %v877_v4  ;;  %v746_v15 = vadd.f32 %v1659_v40, %v1832_v33  ;;  %v610_v21 = vadd.f32 %v1832_v33, %v609_v45 }
 0x111   : > { %v973_v14 = vsel %vm845_vm3, %v725_v61, %v909_v5  ;;  %v1937_v16 = vpop.f32.mrb[21].mxu1  ;;  %v1939_v17 = vpop.f32.mrb[22].mxu0  ;;  %1264 = vst.msk [vmem:[%s1844_s25 + $0x3c] sm:$0xf] %vm1248_vm1, %v1525_v7  ;;  %v1523_v18 = vpack.c.bf16 %v941_v13, %v941_v13  ;;  %v946_v20 = vsel %vm818_vm4, %v618_v0, %v882_v9  ;;  %v738_v26 = vadd.f32 %v1832_v33, %v737_v46 }
 0x112   : > { %v1555_v19 = vpack.c.bf16 %v973_v14, %v973_v14  ;;  %v1944_v22 = vpop.f32.mrb[22].mxu1  ;;  %v1946_v23 = vpop.f32.mrb[23].mxu0  ;;  %1296 = vst.msk [vmem:[%s1844_s25 + $0xbc] sm:$0xf] %vm1248_vm1, %v1557_v12  ;;  %v1528_v24 = vpack.c.bf16 %v946_v20, %v946_v20  ;;  %vm850_vm5 = vcmp.ge.f32.partialorder %v746_v15, 0.0  ;;  %vm816_vm6 = vcmp.ge.f32.partialorder %v610_v21, 0.0 }
 0x113   : > { %v914_v25 = vmul.f32 0.2, %v746_v15  ;;  %v1951_v27 = vpop.f32.mrb[23].mxu1  ;;  %1262 = vst.msk [vmem:[%s1844_s25 + $0x34] sm:$0xf] %vm1248_vm1, %v1523_v18  ;;  %v621_v29 = vadd.f32 %v1628_v50, %v1832_v33  ;;  %v749_v30 = vadd.f32 %v1660_v51, %v1832_v33  ;;  %vm848_vm7 = vcmp.ge.f32.partialorder %v738_v26, 0.0 }
 0x114   : > { %1294 = vst.msk [vmem:[%s1844_s25 + $0xb4] sm:$0xf] %vm1248_vm1, %v1555_v19  ;;  %v880_v28 = vmul.f32 0.2, %v610_v21  ;;  %1267 = vst.msk [vmem:[%s1844_s25 + $0x48] sm:$0xf] %vm1248_vm1, %v1528_v24  ;;  %v613_v34 = vadd.f32 %v1832_v33, %v612_v56  ;;  %v741_v49 = vadd.f32 %v1832_v33, %v1919_v57  ;;  %v634_v50 = vadd.f32 %v1631_v6, %v1832_v33 }
 0x115   : > { %v978_v31 = vsel %vm850_vm5, %v746_v15, %v914_v25  ;;  %v912_v32 = vmul.f32 0.2, %v738_v26  ;;  %vm819_vm8 = vcmp.ge.f32.partialorder %v621_v29, 0.0  ;;  %v883_v37 = vmul.f32 0.2, %v621_v29  ;;  %v1962_v41 = vpop.f32.mrb[24].mxu0 }
 0x116   : > { %v1560_v35 = vpack.c.bf16 %v978_v31, %v978_v31  ;;  %v944_v36 = vsel %vm816_vm6, %v610_v21, %v880_v28  ;;  %vm851_vm9 = vcmp.ge.f32.partialorder %v749_v30, 0.0  ;;  %v915_v40 = vmul.f32 0.2, %v749_v30  ;;  %v1667_v45 = vpop.f32.mrb[24].mxu1  ;;  %v1966_v46 = vpop.f32.mrb[25].mxu0 }
 0x117   : > { %v1526_v38 = vpack.c.bf16 %v944_v36, %v944_v36  ;;  %v976_v39 = vsel %vm848_vm7, %v738_v26, %v912_v32  ;;  %v947_v43 = vsel %vm819_vm8, %v621_v29, %v883_v37  ;;  %vm817_vm10 = vcmp.ge.f32.partialorder %v613_v34, 0.0  ;;  %v1973_v51 = vpop.f32.mrb[25].mxu1  ;;  %v1975_v52 = vpop.f32.mrb[26].mxu0 }
 0x118   : > { %1299 = vst.msk [vmem:[%s1844_s25 + $0xc8] sm:$0xf] %vm1248_vm1, %v1560_v35  ;;  %v1558_v42 = vpack.c.bf16 %v976_v39, %v976_v39  ;;  %v881_v44 = vmul.f32 0.2, %v613_v34  ;;  %v1529_v47 = vpack.c.bf16 %v947_v43, %v947_v43  ;;  %v979_v48 = vsel %vm851_vm9, %v749_v30, %v915_v40  ;;  %v1981_v58 = vpop.f32.mrb[26].mxu1  ;;  %v1983_v59 = vpop.f32.mrb[27].mxu0 }
 0x119   : > { %1265 = vst.msk [vmem:[%s1844_s25 + $0x40] sm:$0xf] %vm1248_vm1, %v1526_v38  ;;  %v1561_v53 = vpack.c.bf16 %v979_v48, %v979_v48  ;;  %v762_v55 = vadd.f32 %v1663_v10, %v1832_v33  ;;  %v626_v56 = vadd.f32 %v1832_v33, %v625_v11  ;;  %vm849_vm11 = vcmp.ge.f32.partialorder %v741_v49, 0.0  ;;  %v1987_v61 = vpop.f32.mrb[27].mxu1 }
 0x11a   : > { %1297 = vst.msk [vmem:[%s1844_s25 + $0xc0] sm:$0xf] %vm1248_vm1, %v1558_v42  ;;  %v945_v54 = vsel %vm817_vm10, %v613_v34, %v881_v44  ;;  %1268 = vst.msk [vmem:[%s1844_s25 + $0x4c] sm:$0xf] %vm1248_vm1, %v1529_v47  ;;  %v913_v60 = vmul.f32 0.2, %v741_v49  ;;  %v754_v2 = vadd.f32 %v1832_v33, %v1937_v16  ;;  %v637_v3 = vadd.f32 %v1939_v17, %v1832_v33 }
 0x11b   : > { %v1527_v57 = vpack.c.bf16 %v945_v54, %v945_v54  ;;  %vm822_vm12 = vcmp.ge.f32.partialorder %v634_v50, 0.0  ;;  %1300 = vst.msk [vmem:[%s1844_s25 + $0xcc] sm:$0xf] %vm1248_vm1, %v1561_v53  ;;  %v886_v62 = vmul.f32 0.2, %v634_v50  ;;  %vm854_vm13 = vcmp.ge.f32.partialorder %v762_v55, 0.0 }
 0x11c   : > { %v918_v63 = vmul.f32 0.2, %v762_v55  ;;  %vm820_vm14 = vcmp.ge.f32.partialorder %v626_v56, 0.0  ;;  %v977_v0 = vsel %vm849_vm11, %v741_v49, %v913_v60  ;;  %v884_v1 = vmul.f32 0.2, %v626_v56 }
 0x11d   : > { %1266 = vst.msk [vmem:[%s1844_s25 + $0x44] sm:$0xf] %vm1248_vm1, %v1527_v57  ;;  %v1559_v4 = vpack.c.bf16 %v977_v0, %v977_v0  ;;  %v950_v5 = vsel %vm822_vm12, %v634_v50, %v886_v62  ;;  %v765_v7 = vadd.f32 %v1944_v22, %v1832_v33  ;;  %vm852_vm15 = vcmp.ge.f32.partialorder %v754_v2, 0.0  ;;  %v1639_v11 = vpop.f32.mrb[28].mxu0 }
 0x11e   : > { %v982_v6 = vsel %vm854_vm13, %v762_v55, %v918_v63  ;;  %v1532_v8 = vpack.c.bf16 %v950_v5, %v950_v5  ;;  %v948_v10 = vsel %vm820_vm14, %v626_v56, %v884_v1  ;;  %v916_v13 = vmul.f32 0.2, %v754_v2  ;;  %v2001_v15 = vpop.f32.mrb[28].mxu1  ;;  %v2011_v19 = vpop.f32.mrb[29].mxu0 }
 0x11f   : > { %v1564_v9 = vpack.c.bf16 %v982_v6, %v982_v6  ;;  %1298 = vst.msk [vmem:[%s1844_s25 + $0xc4] sm:$0xf] %vm1248_vm1, %v1559_v4  ;;  %v1530_v12 = vpack.c.bf16 %v948_v10, %v948_v10  ;;  %vm823_vm0 = vcmp.ge.f32.partialorder %v637_v3, 0.0  ;;  %v887_v14 = vmul.f32 0.2, %v637_v3  ;;  %v2013_v20 = vpop.f32.mrb[29].mxu1 }
 0x120   : > { %1271 = vst.msk [vmem:[%s1844_s25 + $0x58] sm:$0xf] %vm1248_vm1, %v1532_v8  ;;  %vm855_vm2 = vcmp.ge.f32.partialorder %v765_v7, 0.0  ;;  %v919_v16 = vmul.f32 0.2, %v765_v7  ;;  %v629_v17 = vadd.f32 %v1832_v33, %v1946_v23  ;;  %v757_v18 = vadd.f32 %v1832_v33, %v1951_v27  ;;  %v2021_v23 = vpop.f32.mrb[30].mxu0 }
 0x121   : > { %1303 = vst.msk [vmem:[%s1844_s25 + $0xd8] sm:$0xf] %vm1248_vm1, %v1564_v9  ;;  %1269 = vst.msk [vmem:[%s1844_s25 + $0x50] sm:$0xf] %vm1248_vm1, %v1530_v12  ;;  %v980_v21 = vsel %vm852_vm15, %v754_v2, %v916_v13  ;;  %v951_v22 = vsel %vm823_vm0, %v637_v3, %v887_v14  ;;  %v650_v24 = vadd.f32 %v1962_v41, %v1832_v33  ;;  %v2023_v26 = vpop.f32.mrb[30].mxu1  ;;  %v2025_v30 = vpop.f32.mrb[31].mxu0 }
 0x122   : > { %v778_v25 = vadd.f32 %v1667_v45, %v1832_v33  ;;  %v1562_v27 = vpack.c.bf16 %v980_v21, %v980_v21  ;;  %v1533_v28 = vpack.c.bf16 %v951_v22, %v951_v22  ;;  %v983_v29 = vsel %vm855_vm2, %v765_v7, %v919_v16  ;;  %v2027_v31 = vpop.f32.mrb[31].mxu1 }
 0x123   : > { %vm821_vm3 = vcmp.ge.f32.partialorder %v629_v17, 0.0  ;;  %v1565_v32 = vpack.c.bf16 %v983_v29, %v983_v29  ;;  %v885_v34 = vmul.f32 0.2, %v629_v17  ;;  %vm853_vm4 = vcmp.ge.f32.partialorder %v757_v18, 0.0 }
 0x124   : > { %v917_v35 = vmul.f32 0.2, %v757_v18  ;;  %1301 = vst.msk [vmem:[%s1844_s25 + $0xd0] sm:$0xf] %vm1248_vm1, %v1562_v27  ;;  %1272 = vst.msk [vmem:[%s1844_s25 + $0x5c] sm:$0xf] %vm1248_vm1, %v1533_v28  ;;  %v642_v40 = vadd.f32 %v1832_v33, %v1966_v46  ;;  %v770_v41 = vadd.f32 %v1832_v33, %v1973_v51  ;;  %v653_v46 = vadd.f32 %v1975_v52, %v1832_v33 }
 0x125   : > { %vm826_vm5 = vcmp.ge.f32.partialorder %v650_v24, 0.0  ;;  %v890_v36 = vmul.f32 0.2, %v650_v24  ;;  %vm858_vm6 = vcmp.ge.f32.partialorder %v778_v25, 0.0  ;;  %v922_v37 = vmul.f32 0.2, %v778_v25 }
 0x126   : > { %1304 = vst.msk [vmem:[%s1844_s25 + $0xdc] sm:$0xf] %vm1248_vm1, %v1565_v32  ;;  %v949_v38 = vsel %vm821_vm3, %v629_v17, %v885_v34  ;;  %v981_v39 = vsel %vm853_vm4, %v757_v18, %v917_v35  ;;  %vm824_vm7 = vcmp.ge.f32.partialorder %v642_v40, 0.0  ;;  %v888_v49 = vmul.f32 0.2, %v642_v40 }
 0x127   : > { %v1531_v42 = vpack.c.bf16 %v949_v38, %v949_v38  ;;  %v1563_v43 = vpack.c.bf16 %v981_v39, %v981_v39  ;;  %v954_v44 = vsel %vm826_vm5, %v650_v24, %v890_v36  ;;  %v986_v45 = vsel %vm858_vm6, %v778_v25, %v922_v37 }
 0x128   : > { %v1536_v47 = vpack.c.bf16 %v954_v44, %v954_v44  ;;  %v1568_v48 = vpack.c.bf16 %v986_v45, %v986_v45  ;;  %vm856_vm8 = vcmp.ge.f32.partialorder %v770_v41, 0.0  ;;  %v920_v50 = vmul.f32 0.2, %v770_v41 }
 0x129   : > { %1270 = vst.msk [vmem:[%s1844_s25 + $0x54] sm:$0xf] %vm1248_vm1, %v1531_v42  ;;  %1302 = vst.msk [vmem:[%s1844_s25 + $0xd4] sm:$0xf] %vm1248_vm1, %v1563_v43  ;;  %v781_v51 = vadd.f32 %v1981_v58, %v1832_v33  ;;  %v952_v53 = vsel %vm824_vm7, %v642_v40, %v888_v49  ;;  %v645_v54 = vadd.f32 %v1832_v33, %v1983_v59  ;;  %vm827_vm9 = vcmp.ge.f32.partialorder %v653_v46, 0.0 }
 0x12a   : > { %1275 = vst.msk [vmem:[%s1844_s25 + $0x68] sm:$0xf] %vm1248_vm1, %v1536_v47  ;;  %1307 = vst.msk [vmem:[%s1844_s25 + $0xe8] sm:$0xf] %vm1248_vm1, %v1568_v48  ;;  %v773_v55 = vadd.f32 %v1832_v33, %v1987_v61  ;;  %v666_v56 = vadd.f32 %v1639_v11, %v1832_v33  ;;  %v1534_v57 = vpack.c.bf16 %v952_v53, %v952_v53  ;;  %v891_v60 = vmul.f32 0.2, %v653_v46 }
 0x12b   : > { %v984_v52 = vsel %vm856_vm8, %v770_v41, %v920_v50  ;;  %vm859_vm10 = vcmp.ge.f32.partialorder %v781_v51, 0.0  ;;  %v923_v58 = vmul.f32 0.2, %v781_v51  ;;  %vm825_vm11 = vcmp.ge.f32.partialorder %v645_v54, 0.0 }
 0x12c   : > { %v1566_v62 = vpack.c.bf16 %v984_v52, %v984_v52  ;;  %1273 = vst.msk [vmem:[%s1844_s25 + $0x60] sm:$0xf] %vm1248_vm1, %v1534_v57  ;;  %v955_v63 = vsel %vm827_vm9, %v653_v46, %v891_v60  ;;  %v889_v0 = vmul.f32 0.2, %v645_v54  ;;  %vm857_vm12 = vcmp.ge.f32.partialorder %v773_v55, 0.0 }
 0x12d   : > { %v921_v59 = vmul.f32 0.2, %v773_v55  ;;  %v1537_v61 = vpack.c.bf16 %v955_v63, %v955_v63  ;;  %v987_v1 = vsel %vm859_vm10, %v781_v51, %v923_v58  ;;  %vm830_vm13 = vcmp.ge.f32.partialorder %v666_v56, 0.0 }
 0x12e   : > { %1305 = vst.msk [vmem:[%s1844_s25 + $0xe0] sm:$0xf] %vm1248_vm1, %v1566_v62  ;;  %v894_v2 = vmul.f32 0.2, %v666_v56  ;;  %v1569_v3 = vpack.c.bf16 %v987_v1, %v987_v1  ;;  %v953_v4 = vsel %vm825_vm11, %v645_v54, %v889_v0  ;;  %v794_v6 = vadd.f32 %v2001_v15, %v1832_v33 }
 0x12f   : > { %v985_v5 = vsel %vm857_vm12, %v773_v55, %v921_v59  ;;  %1276 = vst.msk [vmem:[%s1844_s25 + $0x6c] sm:$0xf] %vm1248_vm1, %v1537_v61  ;;  %v1535_v7 = vpack.c.bf16 %v953_v4, %v953_v4  ;;  %v658_v10 = vadd.f32 %v1832_v33, %v2011_v19  ;;  %v786_v13 = vadd.f32 %v1832_v33, %v2013_v20 }
 0x130   : > { %v1567_v8 = vpack.c.bf16 %v985_v5, %v985_v5  ;;  %v958_v9 = vsel %vm830_vm13, %v666_v56, %v894_v2  ;;  %1308 = vst.msk [vmem:[%s1844_s25 + $0xec] sm:$0xf] %vm1248_vm1, %v1569_v3  ;;  %vm862_vm14 = vcmp.ge.f32.partialorder %v794_v6, 0.0  ;;  %v926_v12 = vmul.f32 0.2, %v794_v6 }
 0x131   : > { %v1540_v11 = vpack.c.bf16 %v958_v9, %v958_v9  ;;  %1274 = vst.msk [vmem:[%s1844_s25 + $0x64] sm:$0xf] %vm1248_vm1, %v1535_v7  ;;  %vm828_vm15 = vcmp.ge.f32.partialorder %v658_v10, 0.0  ;;  %v892_v14 = vmul.f32 0.2, %v658_v10  ;;  %v669_v15 = vadd.f32 %v2021_v23, %v1832_v33 }
 0x132   : > { %1306 = vst.msk [vmem:[%s1844_s25 + $0xe4] sm:$0xf] %vm1248_vm1, %v1567_v8  ;;  %v797_v16 = vadd.f32 %v2023_v26, %v1832_v33  ;;  %v990_v17 = vsel %vm862_vm14, %v794_v6, %v926_v12  ;;  %vm860_vm0 = vcmp.ge.f32.partialorder %v786_v13, 0.0  ;;  %v924_v18 = vmul.f32 0.2, %v786_v13 }
 0x133   : > { %1279 = vst.msk [vmem:[%s1844_s25 + $0x78] sm:$0xf] %vm1248_vm1, %v1540_v11  ;;  %v661_v19 = vadd.f32 %v1832_v33, %v2025_v30  ;;  %v1572_v20 = vpack.c.bf16 %v990_v17, %v990_v17  ;;  %v956_v21 = vsel %vm828_vm15, %v658_v10, %v892_v14  ;;  %vm831_vm2 = vcmp.ge.f32.partialorder %v669_v15, 0.0 }
 0x134   : > { %v895_v22 = vmul.f32 0.2, %v669_v15  ;;  %v1538_v24 = vpack.c.bf16 %v956_v21, %v956_v21  ;;  %v988_v25 = vsel %vm860_vm0, %v786_v13, %v924_v18  ;;  %vm863_vm3 = vcmp.ge.f32.partialorder %v797_v16, 0.0 }
 0x135   : > { %v927_v23 = vmul.f32 0.2, %v797_v16  ;;  %1311 = vst.msk [vmem:[%s1844_s25 + $0xf8] sm:$0xf] %vm1248_vm1, %v1572_v20  ;;  %v1570_v26 = vpack.c.bf16 %v988_v25, %v988_v25  ;;  %vm829_vm4 = vcmp.ge.f32.partialorder %v661_v19, 0.0  ;;  %v789_v32 = vadd.f32 %v1832_v33, %v2027_v31 }
 0x136   : > { %v959_v27 = vsel %vm831_vm2, %v669_v15, %v895_v22  ;;  %v893_v28 = vmul.f32 0.2, %v661_v19  ;;  %1277 = vst.msk [vmem:[%s1844_s25 + $0x70] sm:$0xf] %vm1248_vm1, %v1538_v24 }
 0x137   : > { %v1541_v29 = vpack.c.bf16 %v959_v27, %v959_v27  ;;  %v991_v30 = vsel %vm863_vm3, %v797_v16, %v927_v23  ;;  %1309 = vst.msk [vmem:[%s1844_s25 + $0xf0] sm:$0xf] %vm1248_vm1, %v1570_v26  ;;  %vm861_vm5 = vcmp.ge.f32.partialorder %v789_v32, 0.0  ;;  %v925_v37 = vmul.f32 0.2, %v789_v32 }
 0x138   : > { %v1573_v34 = vpack.c.bf16 %v991_v30, %v991_v30  ;;  %v957_v35 = vsel %vm829_vm4, %v661_v19, %v893_v28 }
 0x139   : > { %1280 = vst.msk [vmem:[%s1844_s25 + $0x7c] sm:$0xf] %vm1248_vm1, %v1541_v29  ;;  %v1539_v36 = vpack.c.bf16 %v957_v35, %v957_v35  ;;  %v989_v38 = vsel %vm861_vm5, %v789_v32, %v925_v37 }
 0x13a   : > { %1312 = vst.msk [vmem:[%s1844_s25 + $0xfc] sm:$0xf] %vm1248_vm1, %v1573_v34  ;;  %v1571_v39 = vpack.c.bf16 %v989_v38, %v989_v38 }
 0x13b   : > { %1278 = vst.msk [vmem:[%s1844_s25 + $0x74] sm:$0xf] %vm1248_vm1, %v1539_v36 }
 0x13c   : > { %1310 = vst.msk [vmem:[%s1844_s25 + $0xf4] sm:$0xf] %vm1248_vm1, %v1571_v39 }
 0x13d PF: > { %s13_s12 = sadd.s32 1, %s1722_s12  }
 0x13e   : > { %p10_p4 = scmp.ge.s32.totalorder %s13_s12, 6  }
 0x140   :  { %12 = sbr.rel (!%p10_p4) target bundleno = 1 (0x1), region = 62 }

// kernel: discriminator_forward.6
= control target key start
LH: loop header
LB: loop body
LE: loop exit
PB: predicated region body
PF: predicated region fallthrough
CT: control target
= control target key end

     0   :  { %s2902_s18 = smov 0   ;;  %s3244_s0 = inlined_call_operand.vmem [shape: bf16[2,272,64], index: 0, kind: input, shape index: {}]   ;;  %s3245_s1 = inlined_call_operand.vmem [shape: bf16[2,272,64], index: 1, kind: input, shape index: {}]   ;;  %s3246_s2 = inlined_call_operand.vmem [shape: bf16[2,2,64,32], index: 2, kind: input, shape index: {}]   ;;  %s3247_s3 = inlined_call_operand.vmem [shape: bf16[2,256,32], index: 3, kind: output, shape index: {0}]   ;;  %s3248_s4 = inlined_call_operand.vmem [shape: f32[2,1,32], index: 4, kind: output, shape index: {1}]   ;;  %s3249_s5 = inlined_call_operand.vmem [shape: f32[2,1,32], index: 5, kind: output, shape index: {2}]  }
   0x1 LB: > { %s2195_s19 = sadd.s32 4294967295, %s2870_s18   ;;  %p2199_p0 = scmp.ge.s32.totalorder %s2870_s18, 1  ;;  %s2870_s18 = sphi %s2902_s18, %s16_s18  }
   0x2   : > { %p202_p1 = scmp.lt.s32.totalorder %s2870_s18, 3 }
   0x4   : > { %p203_p2 = pnand %p2199_p0, %p202_p1 }
   0x5   : > { %v2784_v0 = vld [vmem:[%s3246_s2 + $0x20] sm:$0xff] (!%p203_p2)   ;;  %p241_p3 = scmp.lt.s32.totalorder (!%p203_p2), %s2195_s19, 1  ;;  %v2786_v2 = vld [vmem:[%s3246_s2 + $0x28] sm:$0xff] (!%p203_p2)   ;;  %v2788_v4 = vld [vmem:[%s3246_s2 + $0x30] sm:$0xff] (!%p203_p2)   ;;  %vm448_vm0 = vcmask (!%p203_p2), 523264   ;;  %vm1871_vm1 = vcmask (!%p203_p2), 257024  }
   0x6   : > { %206 = sbr.rel (%p203_p2) target bundleno = 382 (0x17e), region = 32  ;;  %v2785_v1 = vld [vmem:[%s3246_s2 + $0x40] sm:$0xff] (!%p203_p2)   ;;  %2519 = vmatprep.subr.bf16.mxu1 (!%p203_p2), %v2784_v0  ;;  %v2787_v3 = vld [vmem:[%s3246_s2 + $0x48] sm:$0xff] (!%p203_p2)   ;;  %v2789_v5 = vld [vmem:[%s3246_s2 + $0x50] sm:$0xff] (!%p203_p2)   ;;  %vm1904_vm2 = vcmask (!%p203_p2), 261120   ;;  %vm1974_vm3 = vcmask (!%p203_p2), 253952  }
   0x7   : > { %2599 = vmatprep.subr.bf16.mxu0 (!%p203_p2), %v2785_v1  ;;  %2520 = vmatpush3.bf16.msra.mxu1 (!%p203_p2), %v2784_v0  ;;  %v2790_v6 = vld [vmem:[%s3246_s2 + $0x38] sm:$0xff] (!%p203_p2)   ;;  %v2795_v10 = vld [vmem:[%s3246_s2] sm:$0xff] (!%p203_p2)   ;;  %v2805_v18 = vld [vmem:[%s3246_s2 + $0x8] sm:$0xff] (!%p203_p2)  }
   0x8   : > { %2600 = vmatpush3.bf16.msra.mxu0 (!%p203_p2), %v2785_v1  ;;  %2521 = vmatprep.subr.bf16.mxu1 (!%p203_p2), %v2786_v2  ;;  %v2791_v7 = vld [vmem:[%s3246_s2 + $0x58] sm:$0xff] (!%p203_p2)   ;;  %v2797_v11 = vld [vmem:[%s3246_s2 + $0x60] sm:$0xff] (!%p203_p2)   ;;  %v2807_v20 = vld [vmem:[%s3246_s2 + $0x68] sm:$0xff] (!%p203_p2)  }
   0x9   : > { %2601 = vmatprep.subr.bf16.mxu0 (!%p203_p2), %v2787_v3  ;;  %v2815_v25 = vld [vmem:[%s3246_s2 + $0x10] sm:$0xff] (!%p203_p2)   ;;  %v2825_v32 = vld [vmem:[%s3246_s2 + $0x18] sm:$0xff] (!%p203_p2)  }
   0xa   : > { %v2817_v27 = vld [vmem:[%s3246_s2 + $0x70] sm:$0xff] (!%p203_p2)   ;;  %v2827_v33 = vld [vmem:[%s3246_s2 + $0x78] sm:$0xff] (!%p203_p2)  }
   0xb   : > { %2522 = vmatpush3.bf16.msra.mxu1 (!%p203_p2), %v2786_v2 }
   0xc   : > { %2602 = vmatpush3.bf16.msra.mxu0 (!%p203_p2), %v2787_v3  ;;  %2523 = vmatprep.subr.bf16.mxu1 (!%p203_p2), %v2788_v4 }
   0xd   : > { %s3251_s19 = smov (!%p241_p3, %s2195_s19), 1  ;;  %2603 = vmatprep.subr.bf16.mxu0 %v2789_v5 }
   0xe   : > { %s2775_s30 = smul.u32 136, %s3251_s19  ;;  %s2406_s11 = sshll.u32 %s3251_s19, 7 }
   0xf   : > { %2524 = vmatpush3.bf16.msra.mxu1 %v2788_v4  ;;  %s3103_s16 = scalar_lea.vmem %s3247_s3, %s2406_s11  ;;  %s258_s17 = scalar_lea.vmem %s3248_s4, %s3251_s19 }
  0x10   : > { %s2937_s12 = scalar_lea.vmem %s3245_s1, %s2775_s30  ;;  %s2942_s15 = scalar_lea.vmem %s3244_s0, %s2775_s30  ;;  %2604 = vmatpush3.bf16.msra.mxu0 %v2789_v5  ;;  %2525 = vmatprep.subr.bf16.mxu1 %v2790_v6 }
  0x11   : > { %v2792_v8 = vld [vmem:[%s2937_s12] sm:$0xff]   ;;  %v2793_v9 = vld [vmem:[%s2942_s15 + $0x8] sm:$0xff]   ;;  %2605 = vmatprep.subr.bf16.mxu0 %v2791_v7  ;;  %v2796_v13 = vld [vmem:[%s2942_s15 + $0x10] sm:$0xff]   ;;  %s261_s22 = scalar_lea.vmem %s3249_s5, %s3251_s19 }
  0x12   : > { %2527 = vmatprep.mubr.msk.bf16.mxu1 %vm448_vm0, %v2792_v8  ;;  %2607 = vmatprep.mubr.msk.bf16.mxu0 %vm448_vm0, %v2793_v9  ;;  %v2794_v12 = vld [vmem:[%s2937_s12 + $0x8] sm:$0xff]   ;;  %v2798_v14 = vld [vmem:[%s2937_s12 + $0x10] sm:$0xff]   ;;  %v2799_v15 = vld [vmem:[%s2942_s15 + $0x18] sm:$0xff]  }
  0x13   : > { %2526 = vmatpush3.bf16.msra.mxu1 %v2790_v6  ;;  %v2800_v16 = vld [vmem:[%s2937_s12 + $0x18] sm:$0xff]   ;;  %v2801_v17 = vld [vmem:[%s2942_s15 + $0x20] sm:$0xff]   ;;  %v2803_v21 = vld [vmem:[%s2942_s15 + $0x28] sm:$0xff]  }
  0x14   : > { %2606 = vmatpush3.bf16.msra.mxu0 %v2791_v7  ;;  %2559 = vmatprep.subr.bf16.mxu1 %v2795_v10  ;;  %v2802_v19 = vld [vmem:[%s2937_s12 + $0x20] sm:$0xff]   ;;  %v2804_v22 = vld [vmem:[%s2937_s12 + $0x28] sm:$0xff]   ;;  %v2806_v23 = vld [vmem:[%s2942_s15 + $0x30] sm:$0xff]  }
  0x15   : > { %2639 = vmatprep.subr.bf16.mxu0 %v2797_v11  ;;  %v2808_v24 = vld [vmem:[%s2937_s12 + $0x30] sm:$0xff]   ;;  %v2809_v26 = vld [vmem:[%s2942_s15 + $0x38] sm:$0xff]   ;;  %v2811_v29 = vld [vmem:[%s2942_s15 + $0x40] sm:$0xff]  }
  0x16   : > { %2528 = vmatmul.mubr.msk.bf16.vlgmr.msra.gmra.mrb[0].mxu1 %vm448_vm0, %v2794_v12  ;;  %v2810_v28 = vld [vmem:[%s2937_s12 + $0x38] sm:$0xff]   ;;  %v2812_v30 = vld [vmem:[%s2937_s12 + $0x40] sm:$0xff]   ;;  %v2813_v31 = vld [vmem:[%s2942_s15 + $0x48] sm:$0xff]  }
  0x17   : > { %2608 = vmatmul.mubr.msk.bf16.vlgmr.msra.gmra.mrb[0].mxu0 %vm448_vm0, %v2796_v13  ;;  %2560 = vmatpush3.bf16.msra.mxu1 %v2795_v10  ;;  %v2814_v34 = vld [vmem:[%s2937_s12 + $0x48] sm:$0xff]   ;;  %v2816_v35 = vld [vmem:[%s2942_s15 + $0x50] sm:$0xff]   ;;  %v2819_v37 = vld [vmem:[%s2942_s15 + $0x58] sm:$0xff]  }
  0x18   : > { %2640 = vmatpush3.bf16.msra.mxu0 %v2797_v11  ;;  %2531 = vmatprep.mubr.msk.bf16.mxu1 %vm448_vm0, %v2798_v14  ;;  %v2818_v36 = vld [vmem:[%s2937_s12 + $0x50] sm:$0xff]   ;;  %v2820_v38 = vld [vmem:[%s2937_s12 + $0x58] sm:$0xff]   ;;  %v2821_v39 = vld [vmem:[%s2942_s15 + $0x60] sm:$0xff]  }
  0x19   : > { %2611 = vmatprep.mubr.msk.bf16.mxu0 %vm448_vm0, %v2799_v15  ;;  %2561 = vmatprep.subr.bf16.mxu1 %v2805_v18  ;;  %v2822_v40 = vld [vmem:[%s2937_s12 + $0x60] sm:$0xff]   ;;  %v2823_v41 = vld [vmem:[%s2942_s15 + $0x68] sm:$0xff]   ;;  %v2826_v43 = vld [vmem:[%s2942_s15 + $0x70] sm:$0xff]  }
  0x1a   : > { %2641 = vmatprep.subr.bf16.mxu0 %v2807_v20  ;;  %v2824_v42 = vld [vmem:[%s2937_s12 + $0x68] sm:$0xff]   ;;  %v2828_v44 = vld [vmem:[%s2937_s12 + $0x70] sm:$0xff]   ;;  %v2829_v45 = vld [vmem:[%s2942_s15 + $0x78] sm:$0xff]  }
  0x1b   : > { %2562 = vmatpush3.bf16.msra.mxu1 %v2805_v18  ;;  %v2830_v46 = vld [vmem:[%s2937_s12 + $0x78] sm:$0xff]   ;;  %v2831_v47 = vld [vmem:[%s2942_s15 + $0x80] sm:$0xff]   ;;  %v2833_v49 = vld [vmem:[%s2937_s12 + $0x8] sm:$0xff]  }
  0x1c   : > { %2642 = vmatpush3.bf16.msra.mxu0 %v2807_v20  ;;  %2563 = vmatprep.subr.bf16.mxu1 %v2815_v25  ;;  %v2832_v48 = vld [vmem:[%s2942_s15] sm:$0xff]   ;;  %v2834_v50 = vld [vmem:[%s2942_s15 + $0x8] sm:$0xff]   ;;  %v2835_v51 = vld [vmem:[%s2937_s12 + $0x10] sm:$0xff]  }
  0x1d   : > { %2643 = vmatprep.subr.bf16.mxu0 %v2817_v27  ;;  %v2836_v52 = vld [vmem:[%s2942_s15 + $0x10] sm:$0xff]   ;;  %v2837_v53 = vld [vmem:[%s2937_s12 + $0x18] sm:$0xff]   ;;  %v2839_v55 = vld [vmem:[%s2937_s12 + $0x20] sm:$0xff]  }
  0x1e   : > { %2532 = vmatmul.mubr.msk.bf16.gmra.mrb[4].mxu1 %vm448_vm0, %v2800_v16  ;;  %v2838_v54 = vld [vmem:[%s2942_s15 + $0x18] sm:$0xff]   ;;  %v2840_v56 = vld [vmem:[%s2942_s15 + $0x20] sm:$0xff]   ;;  %v2841_v57 = vld [vmem:[%s2937_s12 + $0x28] sm:$0xff]  }
  0x1f   : > { %2612 = vmatmul.mubr.msk.bf16.gmra.mrb[4].mxu0 %vm448_vm0, %v2801_v17  ;;  %2535 = vmatprep.mubr.msk.bf16.mxu1 %vm448_vm0, %v2802_v19  ;;  %v2842_v58 = vld [vmem:[%s2942_s15 + $0x28] sm:$0xff]   ;;  %v2843_v59 = vld [vmem:[%s2937_s12 + $0x30] sm:$0xff]   ;;  %v2845_v61 = vld [vmem:[%s2937_s12 + $0x38] sm:$0xff]  }
  0x20   : > { %2615 = vmatprep.mubr.msk.bf16.mxu0 %vm448_vm0, %v2803_v21  ;;  %2564 = vmatpush3.bf16.msra.mxu1 %v2815_v25  ;;  %v2844_v60 = vld [vmem:[%s2942_s15 + $0x30] sm:$0xff]   ;;  %v2846_v62 = vld [vmem:[%s2942_s15 + $0x38] sm:$0xff]   ;;  %v2847_v63 = vld [vmem:[%s2937_s12 + $0x40] sm:$0xff]  }
  0x21   : > { %2644 = vmatpush3.bf16.msra.mxu0 %v2817_v27  ;;  %2565 = vmatprep.subr.bf16.mxu1 %v2825_v32  ;;  %v2848_v0 = vld [vmem:[%s2942_s15 + $0x40] sm:$0xff]   ;;  %v2849_v1 = vld [vmem:[%s2937_s12 + $0x48] sm:$0xff]   ;;  %v2851_v3 = vld [vmem:[%s2937_s12 + $0x50] sm:$0xff]  }
  0x22   : > { %2645 = vmatprep.subr.bf16.mxu0 %v2827_v33  ;;  %v2850_v2 = vld [vmem:[%s2942_s15 + $0x48] sm:$0xff]   ;;  %v2852_v4 = vld [vmem:[%s2942_s15 + $0x50] sm:$0xff]   ;;  %v2853_v5 = vld [vmem:[%s2937_s12 + $0x58] sm:$0xff]  }
  0x23   : > { %v2854_v6 = vld [vmem:[%s2942_s15 + $0x58] sm:$0xff]   ;;  %v2855_v7 = vld [vmem:[%s2937_s12 + $0x60] sm:$0xff]   ;;  %v2857_v9 = vld [vmem:[%s2937_s12 + $0x68] sm:$0xff]  }
  0x24   : > { %2566 = vmatpush3.bf16.msra.mxu1 %v2825_v32  ;;  %v2856_v8 = vld [vmem:[%s2942_s15 + $0x60] sm:$0xff]   ;;  %v2858_v10 = vld [vmem:[%s2942_s15 + $0x68] sm:$0xff]   ;;  %v2859_v11 = vld [vmem:[%s2937_s12 + $0x70] sm:$0xff]  }
  0x25   : > { %2646 = vmatpush3.bf16.msra.mxu0 %v2827_v33  ;;  %v2860_v12 = vld [vmem:[%s2942_s15 + $0x70] sm:$0xff]   ;;  %v2861_v13 = vld [vmem:[%s2937_s12 + $0x78] sm:$0xff]   ;;  %v2863_v15 = vld [vmem:[%s2937_s12 + $0x80] sm:$0xff]  }
  0x26   : > { %2536 = vmatmul.mubr.msk.bf16.gmra.mrb[8].mxu1 %vm448_vm0, %v2804_v22  ;;  %v2862_v14 = vld [vmem:[%s2942_s15 + $0x78] sm:$0xff]  }
  0x27   : > { %2616 = vmatmul.mubr.msk.bf16.gmra.mrb[8].mxu0 %vm448_vm0, %v2806_v23  ;;  %2539 = vmatprep.mubr.msk.bf16.mxu1 %vm448_vm0, %v2808_v24 }
  0x28   : > { %2619 = vmatprep.mubr.msk.bf16.mxu0 %vm448_vm0, %v2809_v26 }
  0x2e   : > { %2540 = vmatmul.mubr.msk.bf16.gmra.mrb[12].mxu1 %vm448_vm0, %v2810_v28 }
  0x2f   : > { %2620 = vmatmul.mubr.msk.bf16.gmra.mrb[12].mxu0 %vm448_vm0, %v2811_v29  ;;  %2543 = vmatprep.mubr.msk.bf16.mxu1 %vm448_vm0, %v2812_v30 }
  0x30   : > { %2623 = vmatprep.mubr.msk.bf16.mxu0 %vm448_vm0, %v2813_v31 }
  0x36   : > { %2544 = vmatmul.mubr.msk.bf16.gmra.mrb[16].mxu1 %vm448_vm0, %v2814_v34 }
  0x37   : > { %2624 = vmatmul.mubr.msk.bf16.gmra.mrb[16].mxu0 %vm448_vm0, %v2816_v35  ;;  %2547 = vmatprep.mubr.msk.bf16.mxu1 %vm448_vm0, %v2818_v36 }
  0x38   : > { %2627 = vmatprep.mubr.msk.bf16.mxu0 %vm448_vm0, %v2819_v37 }
  0x3e   : > { %2548 = vmatmul.mubr.msk.bf16.gmra.mrb[20].mxu1 %vm448_vm0, %v2820_v38 }
  0x3f   : > { %2628 = vmatmul.mubr.msk.bf16.gmra.mrb[20].mxu0 %vm448_vm0, %v2821_v39  ;;  %2551 = vmatprep.mubr.msk.bf16.mxu1 %vm448_vm0, %v2822_v40 }
  0x40   : > { %2631 = vmatprep.mubr.msk.bf16.mxu0 %vm448_vm0, %v2823_v41 }
  0x46   : > { %2552 = vmatmul.mubr.msk.bf16.gmra.mrb[24].mxu1 %vm448_vm0, %v2824_v42 }
  0x47   : > { %2632 = vmatmul.mubr.msk.bf16.gmra.mrb[24].mxu0 %vm448_vm0, %v2826_v43  ;;  %2555 = vmatprep.mubr.msk.bf16.mxu1 %vm448_vm0, %v2828_v44 }
  0x48   : > { %2635 = vmatprep.mubr.msk.bf16.mxu0 %vm448_vm0, %v2829_v45 }
  0x4e   : > { %2556 = vmatmul.mubr.msk.bf16.gmra.mrb[28].mxu1 %vm448_vm0, %v2830_v46 }
  0x4f   : > { %2636 = vmatmul.mubr.msk.bf16.gmra.mrb[28].mxu0 %vm448_vm0, %v2831_v47  ;;  %2567 = vmatprep.mubr.msk.bf16.mxu1 %vm448_vm0, %v2832_v48 }
  0x50   : > { %2647 = vmatprep.mubr.msk.bf16.mxu0 %vm448_vm0, %v2833_v49 }
  0x56   : > { %2568 = vmatmul.mubr.msk.bf16.vlgmr.msra.gmra.mrb[0].mxu1 %vm448_vm0, %v2834_v50 }
  0x57   : > { %2648 = vmatmul.mubr.msk.bf16.vlgmr.msra.gmra.mrb[0].mxu0 %vm448_vm0, %v2835_v51  ;;  %2571 = vmatprep.mubr.msk.bf16.mxu1 %vm448_vm0, %v2836_v52 }
  0x58   : > { %2651 = vmatprep.mubr.msk.bf16.mxu0 %vm448_vm0, %v2837_v53 }
  0x5e   : > { %2572 = vmatmul.mubr.msk.bf16.gmra.mrb[4].mxu1 %vm448_vm0, %v2838_v54 }
  0x5f   : > { %2652 = vmatmul.mubr.msk.bf16.gmra.mrb[4].mxu0 %vm448_vm0, %v2839_v55  ;;  %2575 = vmatprep.mubr.msk.bf16.mxu1 %vm448_vm0, %v2840_v56 }
  0x60   : > { %2655 = vmatprep.mubr.msk.bf16.mxu0 %vm448_vm0, %v2841_v57 }
  0x66   : > { %2576 = vmatmul.mubr.msk.bf16.gmra.mrb[8].mxu1 %vm448_vm0, %v2842_v58 }
  0x67   : > { %2656 = vmatmul.mubr.msk.bf16.gmra.mrb[8].mxu0 %vm448_vm0, %v2843_v59  ;;  %2579 = vmatprep.mubr.msk.bf16.mxu1 %vm448_vm0, %v2844_v60 }
  0x68   : > { %2659 = vmatprep.mubr.msk.bf16.mxu0 %vm448_vm0, %v2845_v61 }
  0x6e   : > { %2580 = vmatmul.mubr.msk.bf16.gmra.mrb[12].mxu1 %vm448_vm0, %v2846_v62 }
  0x6f   : > { %2660 = vmatmul.mubr.msk.bf16.gmra.mrb[12].mxu0 %vm448_vm0, %v2847_v63  ;;  %2583 = vmatprep.mubr.msk.bf16.mxu1 %vm448_vm0, %v2848_v0 }
  0x70   : > { %2663 = vmatprep.mubr.msk.bf16.mxu0 %vm448_vm0, %v2849_v1 }
  0x76   : > { %2584 = vmatmul.mubr.msk.bf16.gmra.mrb[16].mxu1 %vm448_vm0, %v2850_v2 }
  0x77   : > { %2664 = vmatmul.mubr.msk.bf16.gmra.mrb[16].mxu0 %vm448_vm0, %v2851_v3  ;;  %2587 = vmatprep.mubr.msk.bf16.mxu1 %vm448_vm0, %v2852_v4 }
  0x78   : > { %2667 = vmatprep.mubr.msk.bf16.mxu0 %vm448_vm0, %v2853_v5 }
  0x7e   : > { %2588 = vmatmul.mubr.msk.bf16.gmra.mrb[20].mxu1 %vm448_vm0, %v2854_v6 }
  0x7f   : > { %2668 = vmatmul.mubr.msk.bf16.gmra.mrb[20].mxu0 %vm448_vm0, %v2855_v7  ;;  %2591 = vmatprep.mubr.msk.bf16.mxu1 %vm448_vm0, %v2856_v8 }
  0x80   : > { %2671 = vmatprep.mubr.msk.bf16.mxu0 %vm448_vm0, %v2857_v9 }
  0x86   : > { %2592 = vmatmul.mubr.msk.bf16.gmra.mrb[24].mxu1 %vm448_vm0, %v2858_v10 }
  0x87   : > { %2672 = vmatmul.mubr.msk.bf16.gmra.mrb[24].mxu0 %vm448_vm0, %v2859_v11  ;;  %2595 = vmatprep.mubr.msk.bf16.mxu1 %vm448_vm0, %v2860_v12 }
  0x88   : > { %2675 = vmatprep.mubr.msk.bf16.mxu0 %vm448_vm0, %v2861_v13 }
  0x8e   : > { %2596 = vmatmul.mubr.msk.bf16.gmra.mrb[28].mxu1 %vm448_vm0, %v2862_v14 }
  0x8f   : > { %2676 = vmatmul.mubr.msk.bf16.gmra.mrb[28].mxu0 %vm448_vm0, %v2863_v15 }
 0x129   : > { %v2569_v16 = vpop.f32.mrb[0].mxu1 }
 0x12a   : > { %v2649_v17 = vpop.f32.mrb[0].mxu0  ;;  %v844_v18 = vpop.f32.mrb[1].mxu1 }
 0x12b   : > { %v2679_v19 = vadd.f32 %v2649_v17, %v2569_v16  ;;  %v1584_v20 = vpop.f32.mrb[1].mxu0  ;;  %v2570_v21 = vpop.f32.mrb[2].mxu1 }
 0x12c   : > { %v2680_v22 = vadd.f32 %v1584_v20, %v844_v18  ;;  %v2650_v23 = vpop.f32.mrb[2].mxu0  ;;  %v847_v24 = vpop.f32.mrb[3].mxu1 }
 0x12d   : > { %v2409_v25 = vpack.c.bf16 %v2679_v19, %v2679_v19  ;;  %v2681_v26 = vadd.f32 %v2650_v23, %v2570_v21  ;;  %v1587_v27 = vpop.f32.mrb[3].mxu0  ;;  %v1978_v31 = vmul.f32 %v2679_v19, %v2679_v19  ;;  %v1908_v40 = vsel %vm1904_vm2, %v2679_v19, 0.0 }
 0x12e   : > { %v2407_v28 = vpack.c.bf16 %v2680_v22, %v2680_v22  ;;  %v1976_v29 = vmul.f32 %v2680_v22, %v2680_v22  ;;  %v2682_v30 = vadd.f32 %v1587_v27, %v847_v24  ;;  %v1905_v33 = vsel %vm1904_vm2, %v2680_v22, 0.0 }
 0x12f   : > { %1874 = vst.msk [vmem:[%s3103_s16 + $0x8] sm:$0xf] %vm1871_vm1, %v2409_v25  ;;  %v2410_v32 = vpack.c.bf16 %v2681_v26, %v2681_v26  ;;  %v1979_v37 = vmul.f32 %v2681_v26, %v2681_v26  ;;  %v2011_v50 = vsel %vm1904_vm2, %v1978_v31, 0.0  ;;  %v1910_v54 = vsel %vm1904_vm2, %v2681_v26, 0.0 }
 0x130   : > { %1872 = vst.msk [vmem:[%s3103_s16] sm:$0xf] %vm1871_vm1, %v2407_v28  ;;  %v2408_v34 = vpack.c.bf16 %v2682_v30, %v2682_v30  ;;  %v1906_v35 = vsel %vm1904_vm2, %v2682_v30, 0.0  ;;  %v1977_v36 = vmul.f32 %v2682_v30, %v2682_v30  ;;  %v2008_v41 = vsel %vm1904_vm2, %v1976_v29, 0.0 }
 0x131   : > { %1875 = vst.msk [vmem:[%s3103_s16 + $0xc] sm:$0xf] %vm1871_vm1, %v2410_v32  ;;  %v1907_v38 = vadd.f32 %v1906_v35, %v1905_v33  ;;  %v2573_v39 = vpop.f32.mrb[4].mxu1  ;;  %v2013_v55 = vsel %vm1904_vm2, %v1979_v37, 0.0 }
 0x132   : > { %1873 = vst.msk [vmem:[%s3103_s16 + $0x4] sm:$0xf] %vm1871_vm1, %v2408_v34  ;;  %v2009_v42 = vsel %vm1904_vm2, %v1977_v36, 0.0  ;;  %v2653_v43 = vpop.f32.mrb[4].mxu0  ;;  %v860_v44 = vpop.f32.mrb[5].mxu1 }
 0x133   : > { %v1909_v45 = vadd.f32 %v1908_v40, %v1907_v38  ;;  %v2010_v46 = vadd.f32 %v2009_v42, %v2008_v41  ;;  %v2683_v47 = vadd.f32 %v2653_v43, %v2573_v39  ;;  %v1600_v48 = vpop.f32.mrb[5].mxu0  ;;  %v2574_v49 = vpop.f32.mrb[6].mxu1 }
 0x134   : > { %v2684_v51 = vadd.f32 %v1600_v48, %v860_v44  ;;  %v2654_v52 = vpop.f32.mrb[6].mxu0  ;;  %v863_v53 = vpop.f32.mrb[7].mxu1 }
 0x135   : > { %v2012_v56 = vadd.f32 %v2011_v50, %v2010_v46  ;;  %v2413_v57 = vpack.c.bf16 %v2683_v47, %v2683_v47  ;;  %v1603_v58 = vpop.f32.mrb[7].mxu0  ;;  %v1911_v60 = vadd.f32 %v1910_v54, %v1909_v45  ;;  %v2685_v0 = vadd.f32 %v2654_v52, %v2574_v49 }
 0x136   : > { %v2411_v59 = vpack.c.bf16 %v2684_v51, %v2684_v51  ;;  %v1912_v61 = vsel %vm1904_vm2, %v2684_v51, 0.0  ;;  %v1980_v62 = vmul.f32 %v2684_v51, %v2684_v51  ;;  %v2686_v1 = vadd.f32 %v1603_v58, %v863_v53 }
 0x137   : > { %1878 = vst.msk [vmem:[%s3103_s16 + $0x18] sm:$0xf] %vm1871_vm1, %v2413_v57  ;;  %v2014_v63 = vadd.f32 %v2013_v55, %v2012_v56  ;;  %v1913_v2 = vadd.f32 %v1912_v61, %v1911_v60  ;;  %v1982_v4 = vmul.f32 %v2683_v47, %v2683_v47  ;;  %v2414_v6 = vpack.c.bf16 %v2685_v0, %v2685_v0 }
 0x138   : > { %1876 = vst.msk [vmem:[%s3103_s16 + $0x10] sm:$0xf] %vm1871_vm1, %v2411_v59  ;;  %v2015_v3 = vsel %vm1904_vm2, %v1980_v62, 0.0  ;;  %v2412_v8 = vpack.c.bf16 %v2686_v1, %v2686_v1  ;;  %v1914_v9 = vsel %vm1904_vm2, %v2686_v1, 0.0  ;;  %v1981_v10 = vmul.f32 %v2686_v1, %v2686_v1 }
 0x139   : > { %v2016_v5 = vadd.f32 %v2015_v3, %v2014_v63  ;;  %v2577_v7 = vpop.f32.mrb[8].mxu1  ;;  %1879 = vst.msk [vmem:[%s3103_s16 + $0x1c] sm:$0xf] %vm1871_vm1, %v2414_v6  ;;  %v1915_v13 = vadd.f32 %v1914_v9, %v1913_v2  ;;  %v1916_v17 = vsel %vm1904_vm2, %v2683_v47, 0.0  ;;  %v1983_v18 = vmul.f32 %v2685_v0, %v2685_v0 }
 0x13a   : > { %v2657_v11 = vpop.f32.mrb[8].mxu0  ;;  %v876_v12 = vpop.f32.mrb[9].mxu1  ;;  %1877 = vst.msk [vmem:[%s3103_s16 + $0x14] sm:$0xf] %vm1871_vm1, %v2412_v8  ;;  %v2017_v19 = vsel %vm1904_vm2, %v1981_v10, 0.0  ;;  %v2019_v23 = vsel %vm1904_vm2, %v1982_v4, 0.0 }
 0x13b   : > { %v2687_v14 = vadd.f32 %v2657_v11, %v2577_v7  ;;  %v1616_v15 = vpop.f32.mrb[9].mxu0  ;;  %v2578_v16 = vpop.f32.mrb[10].mxu1  ;;  %v1917_v24 = vadd.f32 %v1916_v17, %v1915_v13  ;;  %v2018_v25 = vadd.f32 %v2017_v19, %v2016_v5  ;;  %v1918_v28 = vsel %vm1904_vm2, %v2685_v0, 0.0 }
 0x13c   : > { %v2688_v20 = vadd.f32 %v1616_v15, %v876_v12  ;;  %v2658_v21 = vpop.f32.mrb[10].mxu0  ;;  %v879_v22 = vpop.f32.mrb[11].mxu1  ;;  %v2021_v36 = vsel %vm1904_vm2, %v1983_v18, 0.0 }
 0x13d   : > { %v2417_v26 = vpack.c.bf16 %v2687_v14, %v2687_v14  ;;  %v1619_v27 = vpop.f32.mrb[11].mxu0  ;;  %v2020_v32 = vadd.f32 %v2019_v23, %v2018_v25  ;;  %v1919_v33 = vadd.f32 %v1918_v28, %v1917_v24  ;;  %v2689_v34 = vadd.f32 %v2658_v21, %v2578_v16 }
 0x13e   : > { %v2415_v29 = vpack.c.bf16 %v2688_v20, %v2688_v20  ;;  %v1920_v30 = vsel %vm1904_vm2, %v2688_v20, 0.0  ;;  %v1984_v31 = vmul.f32 %v2688_v20, %v2688_v20  ;;  %v2690_v35 = vadd.f32 %v1619_v27, %v879_v22 }
 0x13f   : > { %1882 = vst.msk [vmem:[%s3103_s16 + $0x28] sm:$0xf] %vm1871_vm1, %v2417_v26  ;;  %v1986_v38 = vmul.f32 %v2687_v14, %v2687_v14  ;;  %v1921_v39 = vadd.f32 %v1920_v30, %v1919_v33  ;;  %v2022_v40 = vadd.f32 %v2021_v36, %v2020_v32  ;;  %v2418_v41 = vpack.c.bf16 %v2689_v34, %v2689_v34 }
 0x140   : > { %1880 = vst.msk [vmem:[%s3103_s16 + $0x20] sm:$0xf] %vm1871_vm1, %v2415_v29  ;;  %v2023_v37 = vsel %vm1904_vm2, %v1984_v31, 0.0  ;;  %v2416_v43 = vpack.c.bf16 %v2690_v35, %v2690_v35  ;;  %v1922_v44 = vsel %vm1904_vm2, %v2690_v35, 0.0  ;;  %v1985_v45 = vmul.f32 %v2690_v35, %v2690_v35 }
 0x141   : > { %v2581_v42 = vpop.f32.mrb[12].mxu1  ;;  %v2024_v48 = vadd.f32 %v2023_v37, %v2022_v40  ;;  %1883 = vst.msk [vmem:[%s3103_s16 + $0x2c] sm:$0xf] %vm1871_vm1, %v2418_v41  ;;  %v1923_v49 = vadd.f32 %v1922_v44, %v1921_v39  ;;  %v1924_v53 = vsel %vm1904_vm2, %v2687_v14, 0.0  ;;  %v1987_v54 = vmul.f32 %v2689_v34, %v2689_v34 }
 0x142   : > { %v2661_v46 = vpop.f32.mrb[12].mxu0  ;;  %v892_v47 = vpop.f32.mrb[13].mxu1  ;;  %1881 = vst.msk [vmem:[%s3103_s16 + $0x24] sm:$0xf] %vm1871_vm1, %v2416_v43  ;;  %v2025_v55 = vsel %vm1904_vm2, %v1985_v45, 0.0  ;;  %v2027_v59 = vsel %vm1904_vm2, %v1986_v38, 0.0 }
 0x143   : > { %v2691_v50 = vadd.f32 %v2661_v46, %v2581_v42  ;;  %v1632_v51 = vpop.f32.mrb[13].mxu0  ;;  %v2582_v52 = vpop.f32.mrb[14].mxu1  ;;  %v1925_v60 = vadd.f32 %v1924_v53, %v1923_v49  ;;  %v2026_v61 = vadd.f32 %v2025_v55, %v2024_v48  ;;  %v1926_v0 = vsel %vm1904_vm2, %v2689_v34, 0.0 }
 0x144   : > { %v2692_v56 = vadd.f32 %v1632_v51, %v892_v47  ;;  %v2662_v57 = vpop.f32.mrb[14].mxu0  ;;  %v895_v58 = vpop.f32.mrb[15].mxu1  ;;  %v2029_v8 = vsel %vm1904_vm2, %v1987_v54, 0.0 }
 0x145   : > { %v2421_v62 = vpack.c.bf16 %v2691_v50, %v2691_v50  ;;  %v1635_v63 = vpop.f32.mrb[15].mxu0  ;;  %v2028_v4 = vadd.f32 %v2027_v59, %v2026_v61  ;;  %v1927_v5 = vadd.f32 %v1926_v0, %v1925_v60  ;;  %v2693_v6 = vadd.f32 %v2662_v57, %v2582_v52 }
 0x146   : > { %v2419_v1 = vpack.c.bf16 %v2692_v56, %v2692_v56  ;;  %v1928_v2 = vsel %vm1904_vm2, %v2692_v56, 0.0  ;;  %v1988_v3 = vmul.f32 %v2692_v56, %v2692_v56  ;;  %v2694_v7 = vadd.f32 %v1635_v63, %v895_v58 }
 0x147   : > { %1886 = vst.msk [vmem:[%s3103_s16 + $0x38] sm:$0xf] %vm1871_vm1, %v2421_v62  ;;  %v1990_v10 = vmul.f32 %v2691_v50, %v2691_v50  ;;  %v1929_v11 = vadd.f32 %v1928_v2, %v1927_v5  ;;  %v2030_v12 = vadd.f32 %v2029_v8, %v2028_v4  ;;  %v2422_v13 = vpack.c.bf16 %v2693_v6, %v2693_v6 }
 0x148   : > { %1884 = vst.msk [vmem:[%s3103_s16 + $0x30] sm:$0xf] %vm1871_vm1, %v2419_v1  ;;  %v2031_v9 = vsel %vm1904_vm2, %v1988_v3, 0.0  ;;  %v2420_v15 = vpack.c.bf16 %v2694_v7, %v2694_v7  ;;  %v1930_v16 = vsel %vm1904_vm2, %v2694_v7, 0.0  ;;  %v1989_v17 = vmul.f32 %v2694_v7, %v2694_v7 }
 0x149   : > { %v2585_v14 = vpop.f32.mrb[16].mxu1  ;;  %v2032_v20 = vadd.f32 %v2031_v9, %v2030_v12  ;;  %1887 = vst.msk [vmem:[%s3103_s16 + $0x3c] sm:$0xf] %vm1871_vm1, %v2422_v13  ;;  %v1931_v21 = vadd.f32 %v1930_v16, %v1929_v11  ;;  %v1932_v25 = vsel %vm1904_vm2, %v2691_v50, 0.0  ;;  %v1991_v26 = vmul.f32 %v2693_v6, %v2693_v6 }
 0x14a   : > { %v2665_v18 = vpop.f32.mrb[16].mxu0  ;;  %v908_v19 = vpop.f32.mrb[17].mxu1  ;;  %1885 = vst.msk [vmem:[%s3103_s16 + $0x34] sm:$0xf] %vm1871_vm1, %v2420_v15  ;;  %v2033_v27 = vsel %vm1904_vm2, %v1989_v17, 0.0  ;;  %v2035_v31 = vsel %vm1904_vm2, %v1990_v10, 0.0 }
 0x14b   : > { %v2695_v22 = vadd.f32 %v2665_v18, %v2585_v14  ;;  %v1648_v23 = vpop.f32.mrb[17].mxu0  ;;  %v2586_v24 = vpop.f32.mrb[18].mxu1  ;;  %v1933_v32 = vadd.f32 %v1932_v25, %v1931_v21  ;;  %v2034_v33 = vadd.f32 %v2033_v27, %v2032_v20  ;;  %v1934_v36 = vsel %vm1904_vm2, %v2693_v6, 0.0 }
 0x14c   : > { %v2696_v28 = vadd.f32 %v1648_v23, %v908_v19  ;;  %v2666_v29 = vpop.f32.mrb[18].mxu0  ;;  %v911_v30 = vpop.f32.mrb[19].mxu1  ;;  %v2037_v44 = vsel %vm1904_vm2, %v1991_v26, 0.0 }
 0x14d   : > { %v2425_v34 = vpack.c.bf16 %v2695_v22, %v2695_v22  ;;  %v1651_v35 = vpop.f32.mrb[19].mxu0  ;;  %v2036_v40 = vadd.f32 %v2035_v31, %v2034_v33  ;;  %v1935_v41 = vadd.f32 %v1934_v36, %v1933_v32  ;;  %v2697_v42 = vadd.f32 %v2666_v29, %v2586_v24 }
 0x14e   : > { %v2423_v37 = vpack.c.bf16 %v2696_v28, %v2696_v28  ;;  %v1936_v38 = vsel %vm1904_vm2, %v2696_v28, 0.0  ;;  %v1992_v39 = vmul.f32 %v2696_v28, %v2696_v28  ;;  %v2698_v43 = vadd.f32 %v1651_v35, %v911_v30 }
 0x14f   : > { %1890 = vst.msk [vmem:[%s3103_s16 + $0x48] sm:$0xf] %vm1871_vm1, %v2425_v34  ;;  %v1994_v46 = vmul.f32 %v2695_v22, %v2695_v22  ;;  %v1937_v47 = vadd.f32 %v1936_v38, %v1935_v41  ;;  %v2038_v48 = vadd.f32 %v2037_v44, %v2036_v40  ;;  %v2426_v49 = vpack.c.bf16 %v2697_v42, %v2697_v42 }
 0x150   : > { %1888 = vst.msk [vmem:[%s3103_s16 + $0x40] sm:$0xf] %vm1871_vm1, %v2423_v37  ;;  %v2039_v45 = vsel %vm1904_vm2, %v1992_v39, 0.0  ;;  %v2424_v51 = vpack.c.bf16 %v2698_v43, %v2698_v43  ;;  %v1938_v52 = vsel %vm1904_vm2, %v2698_v43, 0.0  ;;  %v1993_v53 = vmul.f32 %v2698_v43, %v2698_v43 }
 0x151   : > { %v2589_v50 = vpop.f32.mrb[20].mxu1  ;;  %v2040_v56 = vadd.f32 %v2039_v45, %v2038_v48  ;;  %1891 = vst.msk [vmem:[%s3103_s16 + $0x4c] sm:$0xf] %vm1871_vm1, %v2426_v49  ;;  %v1939_v57 = vadd.f32 %v1938_v52, %v1937_v47  ;;  %v1940_v61 = vsel %vm1904_vm2, %v2695_v22, 0.0  ;;  %v1995_v62 = vmul.f32 %v2697_v42, %v2697_v42 }
 0x152   : > { %v2669_v54 = vpop.f32.mrb[20].mxu0  ;;  %v924_v55 = vpop.f32.mrb[21].mxu1  ;;  %1889 = vst.msk [vmem:[%s3103_s16 + $0x44] sm:$0xf] %vm1871_vm1, %v2424_v51  ;;  %v2041_v63 = vsel %vm1904_vm2, %v1993_v53, 0.0  ;;  %v2043_v3 = vsel %vm1904_vm2, %v1994_v46, 0.0 }
 0x153   : > { %v2699_v58 = vadd.f32 %v2669_v54, %v2589_v50  ;;  %v1664_v59 = vpop.f32.mrb[21].mxu0  ;;  %v2590_v60 = vpop.f32.mrb[22].mxu1  ;;  %v1941_v4 = vadd.f32 %v1940_v61, %v1939_v57  ;;  %v2042_v5 = vadd.f32 %v2041_v63, %v2040_v56  ;;  %v1942_v8 = vsel %vm1904_vm2, %v2697_v42, 0.0 }
 0x154   : > { %v2700_v0 = vadd.f32 %v1664_v59, %v924_v55  ;;  %v2670_v1 = vpop.f32.mrb[22].mxu0  ;;  %v927_v2 = vpop.f32.mrb[23].mxu1  ;;  %v2045_v16 = vsel %vm1904_vm2, %v1995_v62, 0.0 }
 0x155   : > { %v2429_v6 = vpack.c.bf16 %v2699_v58, %v2699_v58  ;;  %v1667_v7 = vpop.f32.mrb[23].mxu0  ;;  %v2044_v12 = vadd.f32 %v2043_v3, %v2042_v5  ;;  %v1943_v13 = vadd.f32 %v1942_v8, %v1941_v4  ;;  %v2701_v14 = vadd.f32 %v2670_v1, %v2590_v60 }
 0x156   : > { %v2427_v9 = vpack.c.bf16 %v2700_v0, %v2700_v0  ;;  %v1944_v10 = vsel %vm1904_vm2, %v2700_v0, 0.0  ;;  %v1996_v11 = vmul.f32 %v2700_v0, %v2700_v0  ;;  %v2702_v15 = vadd.f32 %v1667_v7, %v927_v2 }
 0x157   : > { %1894 = vst.msk [vmem:[%s3103_s16 + $0x58] sm:$0xf] %vm1871_vm1, %v2429_v6  ;;  %v1998_v18 = vmul.f32 %v2699_v58, %v2699_v58  ;;  %v1945_v19 = vadd.f32 %v1944_v10, %v1943_v13  ;;  %v2046_v20 = vadd.f32 %v2045_v16, %v2044_v12  ;;  %v2430_v21 = vpack.c.bf16 %v2701_v14, %v2701_v14 }
 0x158   : > { %1892 = vst.msk [vmem:[%s3103_s16 + $0x50] sm:$0xf] %vm1871_vm1, %v2427_v9  ;;  %v2047_v17 = vsel %vm1904_vm2, %v1996_v11, 0.0  ;;  %v2428_v23 = vpack.c.bf16 %v2702_v15, %v2702_v15  ;;  %v1946_v24 = vsel %vm1904_vm2, %v2702_v15, 0.0  ;;  %v1997_v25 = vmul.f32 %v2702_v15, %v2702_v15 }
 0x159   : > { %v2593_v22 = vpop.f32.mrb[24].mxu1  ;;  %v2048_v28 = vadd.f32 %v2047_v17, %v2046_v20  ;;  %1895 = vst.msk [vmem:[%s3103_s16 + $0x5c] sm:$0xf] %vm1871_vm1, %v2430_v21  ;;  %v1947_v29 = vadd.f32 %v1946_v24, %v1945_v19  ;;  %v1948_v33 = vsel %vm1904_vm2, %v2699_v58, 0.0  ;;  %v1999_v34 = vmul.f32 %v2701_v14, %v2701_v14 }
 0x15a   : > { %v2673_v26 = vpop.f32.mrb[24].mxu0  ;;  %v940_v27 = vpop.f32.mrb[25].mxu1  ;;  %1893 = vst.msk [vmem:[%s3103_s16 + $0x54] sm:$0xf] %vm1871_vm1, %v2428_v23  ;;  %v2049_v35 = vsel %vm1904_vm2, %v1997_v25, 0.0  ;;  %v2051_v39 = vsel %vm1904_vm2, %v1998_v18, 0.0 }
 0x15b   : > { %v2703_v30 = vadd.f32 %v2673_v26, %v2593_v22  ;;  %v1680_v31 = vpop.f32.mrb[25].mxu0  ;;  %v2594_v32 = vpop.f32.mrb[26].mxu1  ;;  %v1949_v40 = vadd.f32 %v1948_v33, %v1947_v29  ;;  %v2050_v41 = vadd.f32 %v2049_v35, %v2048_v28  ;;  %v1950_v44 = vsel %vm1904_vm2, %v2701_v14, 0.0 }
 0x15c   : > { %v2704_v36 = vadd.f32 %v1680_v31, %v940_v27  ;;  %v2674_v37 = vpop.f32.mrb[26].mxu0  ;;  %v943_v38 = vpop.f32.mrb[27].mxu1  ;;  %v2053_v52 = vsel %vm1904_vm2, %v1999_v34, 0.0 }
 0x15d   : > { %v2433_v42 = vpack.c.bf16 %v2703_v30, %v2703_v30  ;;  %v1683_v43 = vpop.f32.mrb[27].mxu0  ;;  %v2052_v48 = vadd.f32 %v2051_v39, %v2050_v41  ;;  %v1951_v49 = vadd.f32 %v1950_v44, %v1949_v40  ;;  %v2705_v50 = vadd.f32 %v2674_v37, %v2594_v32 }
 0x15e   : > { %v2431_v45 = vpack.c.bf16 %v2704_v36, %v2704_v36  ;;  %v1952_v46 = vsel %vm1904_vm2, %v2704_v36, 0.0  ;;  %v2000_v47 = vmul.f32 %v2704_v36, %v2704_v36  ;;  %v2706_v51 = vadd.f32 %v1683_v43, %v943_v38 }
 0x15f   : > { %1898 = vst.msk [vmem:[%s3103_s16 + $0x68] sm:$0xf] %vm1871_vm1, %v2433_v42  ;;  %v2002_v54 = vmul.f32 %v2703_v30, %v2703_v30  ;;  %v1953_v55 = vadd.f32 %v1952_v46, %v1951_v49  ;;  %v2054_v56 = vadd.f32 %v2053_v52, %v2052_v48  ;;  %v2434_v57 = vpack.c.bf16 %v2705_v50, %v2705_v50 }
 0x160   : > { %1896 = vst.msk [vmem:[%s3103_s16 + $0x60] sm:$0xf] %vm1871_vm1, %v2431_v45  ;;  %v2055_v53 = vsel %vm1904_vm2, %v2000_v47, 0.0  ;;  %v2432_v59 = vpack.c.bf16 %v2706_v51, %v2706_v51  ;;  %v1954_v60 = vsel %vm1904_vm2, %v2706_v51, 0.0  ;;  %v2001_v61 = vmul.f32 %v2706_v51, %v2706_v51 }
 0x161   : > { %v2597_v58 = vpop.f32.mrb[28].mxu1  ;;  %v2056_v0 = vadd.f32 %v2055_v53, %v2054_v56  ;;  %1899 = vst.msk [vmem:[%s3103_s16 + $0x6c] sm:$0xf] %vm1871_vm1, %v2434_v57  ;;  %v1955_v1 = vadd.f32 %v1954_v60, %v1953_v55  ;;  %v1956_v5 = vsel %vm1904_vm2, %v2703_v30, 0.0  ;;  %v2003_v6 = vmul.f32 %v2705_v50, %v2705_v50 }
 0x162   : > { %v2677_v62 = vpop.f32.mrb[28].mxu0  ;;  %v956_v63 = vpop.f32.mrb[29].mxu1  ;;  %1897 = vst.msk [vmem:[%s3103_s16 + $0x64] sm:$0xf] %vm1871_vm1, %v2432_v59  ;;  %v2057_v7 = vsel %vm1904_vm2, %v2001_v61, 0.0  ;;  %v2059_v11 = vsel %vm1904_vm2, %v2002_v54, 0.0 }
 0x163   : > { %v2707_v2 = vadd.f32 %v2677_v62, %v2597_v58  ;;  %v1696_v3 = vpop.f32.mrb[29].mxu0  ;;  %v2598_v4 = vpop.f32.mrb[30].mxu1  ;;  %v1957_v12 = vadd.f32 %v1956_v5, %v1955_v1  ;;  %v2058_v13 = vadd.f32 %v2057_v7, %v2056_v0  ;;  %v1958_v16 = vsel %vm1904_vm2, %v2705_v50, 0.0 }
 0x164   : > { %v2708_v8 = vadd.f32 %v1696_v3, %v956_v63  ;;  %v2678_v9 = vpop.f32.mrb[30].mxu0  ;;  %v959_v10 = vpop.f32.mrb[31].mxu1  ;;  %v2061_v24 = vsel %vm1904_vm2, %v2003_v6, 0.0 }
 0x165   : > { %v2437_v14 = vpack.c.bf16 %v2707_v2, %v2707_v2  ;;  %v1699_v15 = vpop.f32.mrb[31].mxu0  ;;  %v2060_v20 = vadd.f32 %v2059_v11, %v2058_v13  ;;  %v1959_v21 = vadd.f32 %v1958_v16, %v1957_v12  ;;  %v2709_v22 = vadd.f32 %v2678_v9, %v2598_v4 }
 0x166   : > { %v2435_v17 = vpack.c.bf16 %v2708_v8, %v2708_v8  ;;  %v1960_v18 = vsel %vm1904_vm2, %v2708_v8, 0.0  ;;  %v2004_v19 = vmul.f32 %v2708_v8, %v2708_v8  ;;  %v2710_v23 = vadd.f32 %v1699_v15, %v959_v10 }
 0x167   : > { %1902 = vst.msk [vmem:[%s3103_s16 + $0x78] sm:$0xf] %vm1871_vm1, %v2437_v14  ;;  %v1961_v26 = vadd.f32 %v1960_v18, %v1959_v21  ;;  %v2062_v27 = vadd.f32 %v2061_v24, %v2060_v20  ;;  %v2438_v28 = vpack.c.bf16 %v2709_v22, %v2709_v22  ;;  %v2006_v29 = vmul.f32 %v2707_v2, %v2707_v2 }
 0x168   : > { %1900 = vst.msk [vmem:[%s3103_s16 + $0x70] sm:$0xf] %vm1871_vm1, %v2435_v17  ;;  %v2063_v25 = vsel %vm1904_vm2, %v2004_v19, 0.0  ;;  %v2436_v30 = vpack.c.bf16 %v2710_v23, %v2710_v23  ;;  %v1962_v31 = vsel %vm1904_vm2, %v2710_v23, 0.0  ;;  %v2005_v32 = vmul.f32 %v2710_v23, %v2710_v23 }
 0x169   : > { %v2064_v33 = vadd.f32 %v2063_v25, %v2062_v27  ;;  %1903 = vst.msk [vmem:[%s3103_s16 + $0x7c] sm:$0xf] %vm1871_vm1, %v2438_v28  ;;  %v1963_v34 = vadd.f32 %v1962_v31, %v1961_v26  ;;  %v1964_v35 = vsel %vm1904_vm2, %v2707_v2, 0.0  ;;  %v2007_v36 = vmul.f32 %v2709_v22, %v2709_v22 }
 0x16a   : > { %1901 = vst.msk [vmem:[%s3103_s16 + $0x74] sm:$0xf] %vm1871_vm1, %v2436_v30  ;;  %v2065_v37 = vsel %vm1904_vm2, %v2005_v32, 0.0  ;;  %v2067_v40 = vsel %vm1904_vm2, %v2006_v29, 0.0  ;;  %v1966_v41 = vsel %vm1904_vm2, %v2709_v22, 0.0 }
 0x16b   : > { %v1965_v38 = vadd.f32 %v1964_v35, %v1963_v34  ;;  %v2066_v39 = vadd.f32 %v2065_v37, %v2064_v33  ;;  %v2069_v44 = vsel %vm1904_vm2, %v2007_v36, 0.0 }
 0x16d   : > { %v1967_v42 = vadd.f32 %v1966_v41, %v1965_v38  ;;  %v2068_v43 = vadd.f32 %v2067_v40, %v2066_v39 }
 0x16f   : > { %v1968_v45 = vrot.slane %v1967_v42, 4  ;;  %v2070_v46 = vadd.f32 %v2069_v44, %v2068_v43 }
 0x171   : > { %v1969_v47 = vadd.f32 %v1968_v45, %v1967_v42  ;;  %v2071_v48 = vrot.slane %v2070_v46, 4 }
 0x173   : > { %v1970_v49 = vrot.slane %v1969_v47, 2  ;;  %v2072_v50 = vadd.f32 %v2071_v48, %v2070_v46 }
 0x175   : > { %v1971_v51 = vadd.f32 %v1970_v49, %v1969_v47  ;;  %v2073_v52 = vrot.slane %v2072_v50, 2 }
 0x177   : > { %v1972_v53 = vrot.slane %v1971_v51, 1  ;;  %v2074_v54 = vadd.f32 %v2073_v52, %v2072_v50 }
 0x179   : > { %v1973_v55 = vadd.f32 %v1972_v53, %v1971_v51  ;;  %v2075_v56 = vrot.slane %v2074_v54, 1 }
 0x17b   : > { %1975 = vst.msk [vmem:[%s258_s17] sm:$0x1] %vm1974_vm3, %v1973_v55  ;;  %v2076_v57 = vadd.f32 %v2075_v56, %v2074_v54 }
 0x17d   : > { %2077 = vst.msk [vmem:[%s261_s22] sm:$0x1] %vm1974_vm3, %v2076_v57 }
 0x17e PF: > { %s16_s18 = sadd.s32 1, %s2870_s18  }
 0x17f   : > { %p13_p4 = scmp.ge.s32.totalorder %s16_s18, 4  }
 0x181   :  { %15 = sbr.rel (!%p13_p4) target bundleno = 1 (0x1), region = 92 }

// kernel: tile.18
= control target key start
LH: loop header
LB: loop body
LE: loop exit
PB: predicated region body
PF: predicated region fallthrough
CT: control target
= control target key end

     0   :  { %s28_s0 = inlined_call_operand.vmem [shape: f32[32], index: 0, kind: input, shape index: {}]   ;;  %s29_s1 = inlined_call_operand.vmem [shape: f32[16,32], index: 1, kind: output, shape index: {}]  }
   0x1   :  { %v4_v0 = vld [vmem:[%s28_s0] ss:$0 sm:$0xff] }
   0x2   :  { %5 = vst [vmem:[%s29_s1] sm:$0xff] %v4_v0  ;;  %8 = vst [vmem:[%s29_s1 + $0x8] sm:$0xff] %v4_v0 }

// kernel: mul.18
= control target key start
LH: loop header
LB: loop body
LE: loop exit
PB: predicated region body
PF: predicated region fallthrough
CT: control target
= control target key end

     0   :  { %s35_s8 = smov 96   ;;  %vm3_vm0 = vcmask 261120   ;;  %s37_s15 = smov 64   ;;  %vm9_vm1 = vcmask 1048320   ;;  %vm15_vm2 = vcmask 785920   ;;  %vm21_vm3 = vcmask 523520   ;;  %s63_s0 = inlined_call_operand.vmem [shape: f32[16,32], index: 0, kind: input, shape index: {}]   ;;  %s64_s1 = inlined_call_operand.vmem [shape: f32[512], index: 1, kind: output, shape index: {}]  }
   0x1   :  { %v29_v0 = vld [vmem:[%s63_s0 + $0x3] ss:$4 sm:$0xf]   ;;  %v30_v1 = vld [vmem:[%s63_s0 + $0x2] ss:$4 sm:$0xf]  }
   0x2   :  { %7 = vrot.lane.b32.xlu0 %v29_v0, %s35_s8  ;;  %v31_v2 = vld [vmem:[%s63_s0 + $0x1] ss:$4 sm:$0xf]   ;;  %v2_v3 = vld [vmem:[%s63_s0] ss:$4 sm:$0xf]  }
   0x3   :  { %s36_s0 = smov 32   ;;  %4 = vst.msk [vmem:[#allocation0] sm:$0xf] %vm3_vm0, %v2_v3  }
   0x4   :  { %19 = vrot.lane.b32.xlu1 %v31_v2, %s36_s0 }
   0x6   :  { %13 = vrot.lane.b32.xlu0 %v30_v1, %s37_s15 }
  0x74   :  { %v8_v4 = vpop.permute.xlu0 %7  }
  0x75   :  { %10 = vst.msk [vmem:[#allocation0] sm:$0xf] %vm9_vm1, %v8_v4  }
  0x76   :  { %v20_v5 = vpop.permute.xlu1 %19  }
  0x78   :  { %v14_v6 = vpop.permute.xlu0 %13  }
  0x79   :  { %16 = vst.msk [vmem:[#allocation0] sm:$0xf] %vm15_vm2, %v14_v6  }
  0x7a   :  { %22 = vst.msk [vmem:[#allocation0] sm:$0xf] %vm21_vm3, %v20_v5  }
  0x81   :  { %v26_v7 = vld [vmem:[#allocation0] sm:$0xf] }
  0x82   :  { %28 = vst [vmem:[%s64_s1] sm:$0xf] %v26_v7 }

// kernel: tile.23
= control target key start
LH: loop header
LB: loop body
LE: loop exit
PB: predicated region body
PF: predicated region fallthrough
CT: control target
= control target key end

     0   :  { %s28_s0 = inlined_call_operand.vmem [shape: f32[64], index: 0, kind: input, shape index: {}]   ;;  %s29_s1 = inlined_call_operand.vmem [shape: f32[16,64], index: 1, kind: output, shape index: {}]  }
   0x1   :  { %v4_v0 = vld [vmem:[%s28_s0] ss:$0 sm:$0xff] }
   0x2   :  { %5 = vst [vmem:[%s29_s1] sm:$0xff] %v4_v0  ;;  %8 = vst [vmem:[%s29_s1 + $0x8] sm:$0xff] %v4_v0 }

// kernel: mul.24
= control target key start
LH: loop header
LB: loop body
LE: loop exit
PB: predicated region body
PF: predicated region fallthrough
CT: control target
= control target key end

     0   :  { %vm3_vm0 = vcmask 523264   ;;  %s13_s11 = smov 64   ;;  %vm9_vm1 = vcmask 1048064   ;;  %s36_s0 = inlined_call_operand.vmem [shape: f32[16,64], index: 0, kind: input, shape index: {}]   ;;  %s37_s1 = inlined_call_operand.vmem [shape: f32[1024], index: 1, kind: output, shape index: {}]  }
   0x1   :  { %v2_v0 = vld [vmem:[%s36_s0] ss:$2 sm:$0xff]   ;;  %v11_v1 = vld [vmem:[%s36_s0 + $0x1] ss:$2 sm:$0xff]  }
   0x2   :  { %4 = vst.msk [vmem:[%s37_s1] sm:$0xff] %vm3_vm0, %v2_v0   ;;  %7 = vrot.lane.b32.xlu0 %v11_v1, %s13_s11 }
  0x74   :  { %v8_v2 = vpop.permute.xlu0 %7  }
  0x75   :  { %10 = vst.msk [vmem:[%s37_s1] sm:$0xff] %vm9_vm1, %v8_v2  }

// kernel: discriminator_forward.7
= control target key start
LH: loop header
LB: loop body
LE: loop exit
PB: predicated region body
PF: predicated region fallthrough
CT: control target
= control target key end

     0   :  { %s1645_s1 = inlined_call_operand.vmem [shape: bf16[512,64], index: 1, kind: input, shape index: {}]   ;;  %s1646_s0 = inlined_call_operand.vmem [shape: bf16[128,512], index: 0, kind: input, shape index: {}]   ;;  %s1647_s2 = inlined_call_operand.vmem [shape: bf16[128,64], index: 2, kind: output, shape index: {0}]   ;;  %s1648_s3 = inlined_call_operand.vmem [shape: f32[1,1,64], index: 3, kind: output, shape index: {1}]   ;;  %s1649_s4 = inlined_call_operand.vmem [shape: f32[1,1,64], index: 4, kind: output, shape index: {2}]  }
   0x1   :  { %v1254_v0 = vld [vmem:[%s1645_s1 + $0x40] sm:$0xff]   ;;  %v1258_v4 = vld [vmem:[%s1645_s1 + $0x48] sm:$0xff]   ;;  %v1262_v8 = vld [vmem:[%s1645_s1 + $0x50] sm:$0xff]  }
   0x2   :  { %v1255_v1 = vld [vmem:[%s1645_s1 + $0xc0] sm:$0xff]   ;;  %1125 = vmatprep.subr.bf16.mxu0 %v1254_v0  ;;  %v1259_v5 = vld [vmem:[%s1645_s1 + $0xc8] sm:$0xff]   ;;  %v1263_v9 = vld [vmem:[%s1645_s1 + $0xd0] sm:$0xff]  }
   0x3   :  { %v1256_v2 = vld [vmem:[%s1645_s1] sm:$0xff]   ;;  %1189 = vmatprep.subr.bf16.mxu1 %v1255_v1  ;;  %v1260_v6 = vld [vmem:[%s1645_s1 + $0x8] sm:$0xff]   ;;  %v1264_v10 = vld [vmem:[%s1645_s1 + $0x10] sm:$0xff]  }
   0x4   :  { %v1257_v3 = vld [vmem:[%s1645_s1 + $0x80] sm:$0xff]   ;;  %1126 = vmatpush3.bf16.msra.mxu0 %v1256_v2  ;;  %v1261_v7 = vld [vmem:[%s1645_s1 + $0x88] sm:$0xff]   ;;  %v1265_v11 = vld [vmem:[%s1645_s1 + $0x90] sm:$0xff]  }
   0x5   :  { %1190 = vmatpush3.bf16.msra.mxu1 %v1257_v3  ;;  %1127 = vmatprep.subr.bf16.mxu0 %v1258_v4  ;;  %v1266_v12 = vld [vmem:[%s1645_s1 + $0x58] sm:$0xff]   ;;  %v1270_v16 = vld [vmem:[%s1645_s1 + $0x60] sm:$0xff]   ;;  %v1274_v20 = vld [vmem:[%s1645_s1 + $0x68] sm:$0xff]  }
   0x6   :  { %1191 = vmatprep.subr.bf16.mxu1 %v1259_v5  ;;  %v1267_v13 = vld [vmem:[%s1645_s1 + $0xd8] sm:$0xff]   ;;  %v1271_v17 = vld [vmem:[%s1645_s1 + $0xe0] sm:$0xff]   ;;  %v1275_v21 = vld [vmem:[%s1645_s1 + $0xe8] sm:$0xff]  }
   0x7   :  { %v1268_v14 = vld [vmem:[%s1645_s1 + $0x18] sm:$0xff]   ;;  %v1272_v18 = vld [vmem:[%s1645_s1 + $0x20] sm:$0xff]   ;;  %v1276_v22 = vld [vmem:[%s1645_s1 + $0x28] sm:$0xff]  }
   0x8   :  { %1128 = vmatpush3.bf16.msra.mxu0 %v1260_v6  ;;  %v1269_v15 = vld [vmem:[%s1645_s1 + $0x98] sm:$0xff]   ;;  %v1273_v19 = vld [vmem:[%s1645_s1 + $0xa0] sm:$0xff]   ;;  %v1277_v23 = vld [vmem:[%s1645_s1 + $0xa8] sm:$0xff]  }
   0x9   :  { %1192 = vmatpush3.bf16.msra.mxu1 %v1261_v7  ;;  %1129 = vmatprep.subr.bf16.mxu0 %v1262_v8  ;;  %v1278_v24 = vld [vmem:[%s1645_s1 + $0x70] sm:$0xff]   ;;  %v1282_v28 = vld [vmem:[%s1645_s1 + $0x78] sm:$0xff]   ;;  %v37_v32 = vld [vmem:[%s1646_s0] sm:$0xff] }
   0xa   :  { %1193 = vmatprep.subr.bf16.mxu1 %v1263_v9  ;;  %v1279_v25 = vld [vmem:[%s1645_s1 + $0xf0] sm:$0xff]   ;;  %v1283_v29 = vld [vmem:[%s1645_s1 + $0xf8] sm:$0xff]   ;;  %v38_v34 = vld [vmem:[%s1646_s0 + $0x8] sm:$0xff]  ;;  %vm69_vm0 = vcmp.ge.bf16.partialorder %v37_v32, 0  ;;  %v101_v35 = vmul.bf16 1045249613, %v37_v32 }
   0xb   :  { %v1280_v26 = vld [vmem:[%s1645_s1 + $0x30] sm:$0xff]   ;;  %v1284_v30 = vld [vmem:[%s1645_s1 + $0x38] sm:$0xff]   ;;  %vm70_vm2 = vcmp.ge.bf16.partialorder %v38_v34, 0  ;;  %v102_v38 = vmul.bf16 1045249613, %v38_v34  ;;  %v41_v39 = vld [vmem:[%s1646_s0 + $0x20] sm:$0xff] }
   0xc   :  { %1130 = vmatpush3.bf16.msra.mxu0 %v1264_v10  ;;  %v1281_v27 = vld [vmem:[%s1645_s1 + $0xb0] sm:$0xff]   ;;  %v1285_v31 = vld [vmem:[%s1645_s1 + $0xb8] sm:$0xff]   ;;  %v133_v41 = vsel %vm69_vm0, %v37_v32, %v101_v35  ;;  %v42_v44 = vld [vmem:[%s1646_s0 + $0x28] sm:$0xff]  ;;  %vm73_vm4 = vcmp.ge.bf16.partialorder %v41_v39, 0  ;;  %v105_v51 = vmul.bf16 1045249613, %v41_v39 }
   0xd   :  { %1194 = vmatpush3.bf16.msra.mxu1 %v1265_v11  ;;  %1131 = vmatprep.subr.bf16.mxu0 %v1266_v12  ;;  %v39_v33 = vld [vmem:[%s1646_s0 + $0x10] sm:$0xff]  ;;  %v40_v37 = vld [vmem:[%s1646_s0 + $0x18] sm:$0xff]  ;;  %v134_v48 = vsel %vm70_vm2, %v38_v34, %v102_v38  ;;  %v45_v49 = vld [vmem:[%s1646_s0 + $0x40] sm:$0xff]  ;;  %vm74_vm6 = vcmp.ge.bf16.partialorder %v42_v44, 0  ;;  %v106_v58 = vmul.bf16 1045249613, %v42_v44 }
   0xe   :  { %1195 = vmatprep.subr.bf16.mxu1 %v1267_v13  ;;  %vm71_vm1 = vcmp.ge.bf16.partialorder %v39_v33, 0  ;;  %v103_v36 = vmul.bf16 1045249613, %v39_v33  ;;  %v43_v40 = vld [vmem:[%s1646_s0 + $0x30] sm:$0xff]  ;;  %vm72_vm3 = vcmp.ge.bf16.partialorder %v40_v37, 0  ;;  %v44_v45 = vld [vmem:[%s1646_s0 + $0x38] sm:$0xff]  ;;  %v137_v56 = vsel %vm73_vm4, %v41_v39, %v105_v51 }
   0xf   :  { %v104_v43 = vmul.bf16 1045249613, %v40_v37  ;;  %vm75_vm5 = vcmp.ge.bf16.partialorder %v43_v40, 0  ;;  %v107_v52 = vmul.bf16 1045249613, %v43_v40  ;;  %v47_v53 = vld [vmem:[%s1646_s0 + $0x50] sm:$0xff]  ;;  %v138_v63 = vsel %vm74_vm6, %v42_v44, %v106_v58 }
  0x10   :  { %1132 = vmatpush3.bf16.msra.mxu0 %v1268_v14  ;;  %v135_v42 = vsel %vm71_vm1, %v39_v33, %v103_v36  ;;  %vm76_vm7 = vcmp.ge.bf16.partialorder %v44_v45, 0  ;;  %v108_v59 = vmul.bf16 1045249613, %v44_v45  ;;  %v46_v60 = vld [vmem:[%s1646_s0 + $0x48] sm:$0xff]  ;;  %v48_v61 = vld [vmem:[%s1646_s0 + $0x58] sm:$0xff]  ;;  %vm77_vm8 = vcmp.ge.bf16.partialorder %v45_v49, 0 }
  0x11   :  { %1196 = vmatpush3.bf16.msra.mxu1 %v1269_v15  ;;  %1133 = vmatprep.subr.bf16.mxu0 %v1270_v16  ;;  %v1029_v46 = vcombine.low %v133_v41, %v135_v42  ;;  %v1030_v47 = vcombine.high %v133_v41, %v135_v42  ;;  %v136_v50 = vsel %vm72_vm3, %v40_v37, %v104_v43  ;;  %vm79_vm9 = vcmp.ge.bf16.partialorder %v47_v53, 0  ;;  %v49_v5 = vld [vmem:[%s1646_s0 + $0x60] sm:$0xff]  ;;  %v51_v6 = vld [vmem:[%s1646_s0 + $0x70] sm:$0xff]  ;;  %v50_v13 = vld [vmem:[%s1646_s0 + $0x68] sm:$0xff] }
  0x12   :  { %1197 = vmatprep.subr.bf16.mxu1 %v1271_v17  ;;  %v1031_v54 = vcombine.low %v134_v48, %v136_v50  ;;  %v1032_v55 = vcombine.high %v134_v48, %v136_v50  ;;  %v139_v57 = vsel %vm75_vm5, %v43_v40, %v107_v52  ;;  %v140_v0 = vsel %vm76_vm7, %v44_v45, %v108_v59  ;;  %v52_v14 = vld [vmem:[%s1646_s0 + $0x78] sm:$0xff]  ;;  %v57_v40 = vld [vmem:[%s1646_s0 + $0xa0] sm:$0xff]  ;;  %v59_v41 = vld [vmem:[%s1646_s0 + $0xb0] sm:$0xff] }
  0x13   :  { %629 = vmatprep.mubr.bf16.mxu0 %v1030_v47  ;;  %v1034_v62 = vcombine.high %v137_v56, %v139_v57  ;;  %v109_v1 = vmul.bf16 1045249613, %v45_v49  ;;  %v111_v2 = vmul.bf16 1045249613, %v47_v53  ;;  %v1036_v3 = vcombine.high %v138_v63, %v140_v0  ;;  %v60_v47 = vld [vmem:[%s1646_s0 + $0xb8] sm:$0xff] }
  0x14   :  { %1134 = vmatpush3.bf16.msra.mxu0 %v1272_v18  ;;  %726 = vmatprep.mubr.bf16.mxu1 %v1032_v55  ;;  %v1033_v4 = vcombine.low %v137_v56, %v139_v57  ;;  %vm78_vm10 = vcmp.ge.bf16.partialorder %v46_v60, 0  ;;  %vm80_vm11 = vcmp.ge.bf16.partialorder %v48_v61, 0  ;;  %v110_v9 = vmul.bf16 1045249613, %v46_v60  ;;  %v61_v56 = vld [vmem:[%s1646_s0 + $0xc0] sm:$0xff]  ;;  %v63_v57 = vld [vmem:[%s1646_s0 + $0xd0] sm:$0xff] }
  0x15   :  { %1198 = vmatpush3.bf16.msra.mxu1 %v1273_v19  ;;  %1135 = vmatprep.subr.bf16.mxu0 %v1274_v20  ;;  %v141_v7 = vsel %vm77_vm8, %v45_v49, %v109_v1  ;;  %v143_v8 = vsel %vm79_vm9, %v47_v53, %v111_v2  ;;  %v112_v10 = vmul.bf16 1045249613, %v48_v61  ;;  %v1035_v11 = vcombine.low %v138_v63, %v140_v0  ;;  %v64_v63 = vld [vmem:[%s1646_s0 + $0xd8] sm:$0xff] }
  0x16   :  { %1199 = vmatprep.subr.bf16.mxu1 %v1275_v21  ;;  %v1038_v12 = vcombine.high %v141_v7, %v143_v8  ;;  %v142_v15 = vsel %vm78_vm10, %v46_v60, %v110_v9  ;;  %v113_v17 = vmul.bf16 1045249613, %v49_v5  ;;  %v115_v18 = vmul.bf16 1045249613, %v51_v6  ;;  %v67_v9 = vld [vmem:[%s1646_s0 + $0xf0] sm:$0xff] }
  0x17   :  { %v144_v16 = vsel %vm80_vm11, %v48_v61, %v112_v10  ;;  %vm81_vm12 = vcmp.ge.bf16.partialorder %v49_v5, 0  ;;  %vm83_vm13 = vcmp.ge.bf16.partialorder %v51_v6, 0  ;;  %v114_v20 = vmul.bf16 1045249613, %v50_v13 }
  0x18   :  { %1136 = vmatpush3.bf16.msra.mxu0 %v1276_v22  ;;  %v1040_v19 = vcombine.high %v142_v15, %v144_v16  ;;  %v116_v21 = vmul.bf16 1045249613, %v52_v14  ;;  %vm82_vm14 = vcmp.ge.bf16.partialorder %v50_v13, 0  ;;  %vm84_vm15 = vcmp.ge.bf16.partialorder %v52_v14, 0 }
  0x19   :  { %1200 = vmatpush3.bf16.msra.mxu1 %v1277_v23  ;;  %1137 = vmatprep.subr.bf16.mxu0 %v1278_v24  ;;  %v145_v22 = vsel %vm81_vm12, %v49_v5, %v113_v17  ;;  %v147_v23 = vsel %vm83_vm13, %v51_v6, %v115_v18  ;;  %v53_v24 = vld [vmem:[%s1646_s0 + $0x80] sm:$0xff]  ;;  %v1039_v32 = vcombine.low %v142_v15, %v144_v16  ;;  %v121_v49 = vmul.bf16 1045249613, %v57_v40  ;;  %v68_v15 = vld [vmem:[%s1646_s0 + $0xf8] sm:$0xff] }
  0x1a   :  { %1201 = vmatprep.subr.bf16.mxu1 %v1279_v25  ;;  %v55_v25 = vld [vmem:[%s1646_s0 + $0x90] sm:$0xff]  ;;  %v117_v33 = vmul.bf16 1045249613, %v53_v24  ;;  %vm85_vm0 = vcmp.ge.bf16.partialorder %v53_v24, 0  ;;  %v1041_v42 = vcombine.low %v145_v22, %v147_v23  ;;  %v123_v50 = vmul.bf16 1045249613, %v59_v41 }
  0x1b   :  { %v119_v34 = vmul.bf16 1045249613, %v55_v25  ;;  %vm87_vm1 = vcmp.ge.bf16.partialorder %v55_v25, 0  ;;  %vm89_vm4 = vcmp.ge.bf16.partialorder %v57_v40, 0  ;;  %vm91_vm5 = vcmp.ge.bf16.partialorder %v59_v41, 0 }
  0x1c   :  { %1138 = vmatpush3.bf16.msra.mxu0 %v1280_v26  ;;  %v1037_v26 = vcombine.low %v141_v7, %v143_v8  ;;  %v149_v38 = vsel %vm85_vm0, %v53_v24, %v117_v33  ;;  %v124_v53 = vmul.bf16 1045249613, %v60_v47  ;;  %vm92_vm7 = vcmp.ge.bf16.partialorder %v60_v47, 0  ;;  %v65_v8 = vld [vmem:[%s1646_s0 + $0xe0] sm:$0xff] }
  0x1d   :  { %1202 = vmatpush3.bf16.msra.mxu1 %v1281_v27  ;;  %1139 = vmatprep.subr.bf16.mxu0 %v1282_v28  ;;  %v146_v27 = vsel %vm82_vm14, %v50_v13, %v114_v20  ;;  %v148_v28 = vsel %vm84_vm15, %v52_v14, %v116_v21  ;;  %v151_v39 = vsel %vm87_vm1, %v55_v25, %v119_v34  ;;  %v125_v1 = vmul.bf16 1045249613, %v61_v56  ;;  %v66_v14 = vld [vmem:[%s1646_s0 + $0xe8] sm:$0xff] }
  0x1e   :  { %1203 = vmatprep.subr.bf16.mxu1 %v1283_v29  ;;  %v1042_v29 = vcombine.high %v145_v22, %v147_v23  ;;  %v1044_v35 = vcombine.high %v146_v27, %v148_v28  ;;  %v1046_v45 = vcombine.high %v149_v38, %v151_v39  ;;  %v1043_v48 = vcombine.low %v146_v27, %v148_v28 }
  0x1f   :  { %v155_v55 = vsel %vm91_vm5, %v59_v41, %v123_v50  ;;  %v1045_v58 = vcombine.low %v149_v38, %v151_v39  ;;  %v156_v60 = vsel %vm92_vm7, %v60_v47, %v124_v53  ;;  %v127_v2 = vmul.bf16 1045249613, %v63_v57 }
  0x20   :  { %1140 = vmatpush3.bf16.msra.mxu0 %v1284_v30  ;;  %v54_v30 = vld [vmem:[%s1646_s0 + $0x88] sm:$0xff]  ;;  %vm93_vm8 = vcmp.ge.bf16.partialorder %v61_v56, 0  ;;  %vm95_vm9 = vcmp.ge.bf16.partialorder %v63_v57, 0  ;;  %v128_v5 = vmul.bf16 1045249613, %v64_v63  ;;  %vm96_vm11 = vcmp.ge.bf16.partialorder %v64_v63, 0 }
  0x21   :  { %1204 = vmatpush3.bf16.msra.mxu1 %v1285_v31  ;;  %v56_v31 = vld [vmem:[%s1646_s0 + $0x98] sm:$0xff]  ;;  %v118_v36 = vmul.bf16 1045249613, %v54_v30  ;;  %vm86_vm2 = vcmp.ge.bf16.partialorder %v54_v30, 0  ;;  %v157_v6 = vsel %vm93_vm8, %v61_v56, %v125_v1  ;;  %v159_v7 = vsel %vm95_vm9, %v63_v57, %v127_v2 }
  0x22   :  { %v120_v37 = vmul.bf16 1045249613, %v56_v31  ;;  %vm88_vm3 = vcmp.ge.bf16.partialorder %v56_v31, 0  ;;  %v1054_v13 = vcombine.high %v157_v6, %v159_v7  ;;  %v129_v17 = vmul.bf16 1045249613, %v65_v8 }
  0x23   :  { %630 = vmatmul.mubr.bf16.vlgmr.msra.gmra.mrb[0].mxu0 %v1029_v46  ;;  %v150_v43 = vsel %vm86_vm2, %v54_v30, %v118_v36  ;;  %v58_v46 = vld [vmem:[%s1646_s0 + $0xa8] sm:$0xff]  ;;  %v131_v18 = vmul.bf16 1045249613, %v67_v9  ;;  %vm97_vm12 = vcmp.ge.bf16.partialorder %v65_v8, 0  ;;  %vm99_vm13 = vcmp.ge.bf16.partialorder %v67_v9, 0 }
  0x24   :  { %727 = vmatmul.mubr.bf16.vlgmr.msra.gmra.mrb[0].mxu1 %v1031_v54  ;;  %637 = vmatprep.mubr.bf16.mxu0 %v1034_v62  ;;  %v152_v44 = vsel %vm88_vm3, %v56_v31, %v120_v37  ;;  %v122_v52 = vmul.bf16 1045249613, %v58_v46  ;;  %vm90_vm6 = vcmp.ge.bf16.partialorder %v58_v46, 0  ;;  %v153_v54 = vsel %vm89_vm4, %v57_v40, %v121_v49  ;;  %v62_v62 = vld [vmem:[%s1646_s0 + $0xc8] sm:$0xff] }
  0x25   :  { %734 = vmatprep.mubr.bf16.mxu1 %v1036_v3  ;;  %v1048_v51 = vcombine.high %v150_v43, %v152_v44  ;;  %v1050_v61 = vcombine.high %v153_v54, %v155_v55  ;;  %v1047_v0 = vcombine.low %v150_v43, %v152_v44  ;;  %vm94_vm10 = vcmp.ge.bf16.partialorder %v62_v62, 0 }
  0x26   :  { %v154_v59 = vsel %vm90_vm6, %v58_v46, %v122_v52  ;;  %v1049_v10 = vcombine.low %v153_v54, %v155_v55  ;;  %v130_v20 = vmul.bf16 1045249613, %v66_v14  ;;  %v132_v21 = vmul.bf16 1045249613, %v68_v15 }
  0x27   :  { %v1052_v3 = vcombine.high %v154_v59, %v156_v60  ;;  %v1051_v16 = vcombine.low %v154_v59, %v156_v60  ;;  %vm98_vm14 = vcmp.ge.bf16.partialorder %v66_v14, 0  ;;  %vm100_vm15 = vcmp.ge.bf16.partialorder %v68_v15, 0 }
  0x28   :  { %v161_v22 = vsel %vm97_vm12, %v65_v8, %v129_v17  ;;  %v163_v23 = vsel %vm99_vm13, %v67_v9, %v131_v18  ;;  %v1053_v24 = vcombine.low %v157_v6, %v159_v7  ;;  %v162_v25 = vsel %vm98_vm14, %v66_v14, %v130_v20 }
  0x29   :  { %v1058_v27 = vcombine.high %v161_v22, %v163_v23  ;;  %v1057_v30 = vcombine.low %v161_v22, %v163_v23  ;;  %vm20_vm0 = vcmask 523264   ;;  %vm907_vm1 = vcmask 519168  }
  0x2a   :  { %vm961_vm2 = vcmask 516096  }
  0x2b   :  { %638 = vmatmul.mubr.bf16.gmra.mrb[4].mxu0 %v1033_v4  ;;  %v126_v4 = vmul.bf16 1045249613, %v62_v62 }
  0x2c   :  { %645 = vmatprep.mubr.bf16.mxu0 %v1038_v12  ;;  %735 = vmatmul.mubr.bf16.gmra.mrb[4].mxu1 %v1035_v11  ;;  %v160_v12 = vsel %vm96_vm11, %v64_v63, %v128_v5 }
  0x2d   :  { %742 = vmatprep.mubr.bf16.mxu1 %v1040_v19  ;;  %v158_v11 = vsel %vm94_vm10, %v62_v62, %v126_v4 }
  0x2e   :  { %v1056_v19 = vcombine.high %v158_v11, %v160_v12  ;;  %v1055_v28 = vcombine.low %v158_v11, %v160_v12 }
  0x33   :  { %646 = vmatmul.mubr.bf16.gmra.mrb[8].mxu0 %v1037_v26  ;;  %v164_v26 = vsel %vm100_vm15, %v68_v15, %v132_v21 }
  0x34   :  { %653 = vmatprep.mubr.bf16.mxu0 %v1042_v29  ;;  %743 = vmatmul.mubr.bf16.gmra.mrb[8].mxu1 %v1039_v32  ;;  %v1060_v29 = vcombine.high %v162_v25, %v164_v26  ;;  %v1059_v31 = vcombine.low %v162_v25, %v164_v26  ;;  %v1286_v32 = vmov 0.0  }
  0x35   :  { %750 = vmatprep.mubr.bf16.mxu1 %v1044_v35  ;;  %21 = vst.msk [vmem:[#allocation2] sm:$0xff] %vm20_vm0, %v1286_v32  ;;  %22 = vst.msk [vmem:[#allocation2 + $0x8] sm:$0xff] %vm20_vm0, %v1286_v32 }
  0x36   :  { %23 = vst.msk [vmem:[#allocation2 + $0x10] sm:$0xff] %vm20_vm0, %v1286_v32  ;;  %24 = vst.msk [vmem:[#allocation2 + $0x18] sm:$0xff] %vm20_vm0, %v1286_v32 }
  0x37   :  { %25 = vst.msk [vmem:[#allocation2 + $0x20] sm:$0xff] %vm20_vm0, %v1286_v32  ;;  %26 = vst.msk [vmem:[#allocation2 + $0x28] sm:$0xff] %vm20_vm0, %v1286_v32 }
  0x38   :  { %27 = vst.msk [vmem:[#allocation2 + $0x30] sm:$0xff] %vm20_vm0, %v1286_v32  ;;  %28 = vst.msk [vmem:[#allocation2 + $0x38] sm:$0xff] %vm20_vm0, %v1286_v32 }
  0x39   :  { %29 = vst.msk [vmem:[#allocation2 + $0x40] sm:$0xff] %vm20_vm0, %v1286_v32  ;;  %30 = vst.msk [vmem:[#allocation2 + $0x48] sm:$0xff] %vm20_vm0, %v1286_v32 }
  0x3a   :  { %31 = vst.msk [vmem:[#allocation2 + $0x50] sm:$0xff] %vm20_vm0, %v1286_v32  ;;  %32 = vst.msk [vmem:[#allocation2 + $0x58] sm:$0xff] %vm20_vm0, %v1286_v32 }
  0x3b   :  { %654 = vmatmul.mubr.bf16.gmra.mrb[12].mxu0 %v1041_v42  ;;  %33 = vst.msk [vmem:[#allocation2 + $0x60] sm:$0xff] %vm20_vm0, %v1286_v32  ;;  %34 = vst.msk [vmem:[#allocation2 + $0x68] sm:$0xff] %vm20_vm0, %v1286_v32 }
  0x3c   :  { %661 = vmatprep.mubr.bf16.mxu0 %v1046_v45  ;;  %751 = vmatmul.mubr.bf16.gmra.mrb[12].mxu1 %v1043_v48  ;;  %35 = vst.msk [vmem:[#allocation2 + $0x70] sm:$0xff] %vm20_vm0, %v1286_v32  ;;  %36 = vst.msk [vmem:[#allocation2 + $0x78] sm:$0xff] %vm20_vm0, %v1286_v32  ;;  %v165_v43 = vld [vmem:[#allocation2] sm:$0xff]  ;;  %v166_v47 = vld [vmem:[#allocation2 + $0x8] sm:$0xff] }
  0x3d   :  { %758 = vmatprep.mubr.bf16.mxu1 %v1048_v51  ;;  %v168_v1 = vld [vmem:[#allocation2 + $0x18] sm:$0xff] }
  0x3e   :  { %v169_v20 = vld [vmem:[#allocation2 + $0x20] sm:$0xff]  ;;  %v170_v23 = vld [vmem:[#allocation2 + $0x28] sm:$0xff] }
  0x43   :  { %662 = vmatmul.mubr.bf16.gmra.mrb[16].mxu0 %v1045_v58 }
  0x44   :  { %669 = vmatprep.mubr.bf16.mxu0 %v1050_v61  ;;  %759 = vmatmul.mubr.bf16.gmra.mrb[16].mxu1 %v1047_v0  ;;  %v167_v61 = vld [vmem:[#allocation2 + $0x10] sm:$0xff] }
  0x45   :  { %766 = vmatprep.mubr.bf16.mxu1 %v1052_v3 }
  0x4b   :  { %670 = vmatmul.mubr.bf16.gmra.mrb[20].mxu0 %v1049_v10 }
  0x4c   :  { %677 = vmatprep.mubr.bf16.mxu0 %v1054_v13  ;;  %767 = vmatmul.mubr.bf16.gmra.mrb[20].mxu1 %v1051_v16 }
  0x4d   :  { %774 = vmatprep.mubr.bf16.mxu1 %v1056_v19 }
  0x53   :  { %678 = vmatmul.mubr.bf16.gmra.mrb[24].mxu0 %v1053_v24 }
  0x54   :  { %685 = vmatprep.mubr.bf16.mxu0 %v1058_v27  ;;  %775 = vmatmul.mubr.bf16.gmra.mrb[24].mxu1 %v1055_v28 }
  0x55   :  { %782 = vmatprep.mubr.bf16.mxu1 %v1060_v29 }
  0x5b   :  { %686 = vmatmul.mubr.bf16.gmra.mrb[28].mxu0 %v1057_v30 }
  0x5c   :  { %783 = vmatmul.mubr.bf16.gmra.mrb[28].mxu1 %v1059_v31 }
  0xf6   :  { %v1141_v33 = vpop.f32.mrb[0].mxu0 }
  0xf7   :  { %v1142_v34 = vpop.f32.mrb[1].mxu0  ;;  %v1205_v35 = vpop.f32.mrb[0].mxu1 }
  0xf8   :  { %v1143_v36 = vadd.f32 %v1142_v34, %v1141_v33  ;;  %v1144_v37 = vpop.f32.mrb[2].mxu0  ;;  %v1206_v38 = vpop.f32.mrb[1].mxu1 }
  0xf9   :  { %v1145_v39 = vpop.f32.mrb[3].mxu0  ;;  %v1207_v40 = vadd.f32 %v1206_v38, %v1205_v35  ;;  %v1208_v41 = vpop.f32.mrb[2].mxu1 }
  0xfa   :  { %v1146_v42 = vadd.f32 %v1145_v39, %v1144_v37  ;;  %v1209_v44 = vpop.f32.mrb[3].mxu1 }
  0xfb   :  { %v729_v45 = vadd.f32 %v1207_v40, %v1143_v36  ;;  %v1210_v46 = vadd.f32 %v1209_v44, %v1208_v41 }
  0xfd   :  { %v791_v48 = vadd.f32 %v729_v45, %v165_v43  ;;  %v732_v49 = vadd.f32 %v1210_v46, %v1146_v42  ;;  %v171_v42 = vld [vmem:[#allocation2 + $0x30] sm:$0xff]  ;;  %v172_v45 = vld [vmem:[#allocation2 + $0x38] sm:$0xff] }
  0xfe   :  { %v1147_v50 = vpop.f32.mrb[4].mxu0 }
  0xff   :  { %v1148_v51 = vpop.f32.mrb[5].mxu0  ;;  %808 = vst.msk [vmem:[#allocation2] sm:$0xff] %vm20_vm0, %v791_v48  ;;  %v792_v52 = vadd.f32 %v732_v49, %v166_v47  ;;  %v1211_v53 = vpop.f32.mrb[4].mxu1 }
 0x100   :  { %v1149_v54 = vadd.f32 %v1148_v51, %v1147_v50  ;;  %v1150_v55 = vpop.f32.mrb[6].mxu0  ;;  %v1212_v56 = vpop.f32.mrb[5].mxu1 }
 0x101   :  { %v1151_v57 = vpop.f32.mrb[7].mxu0  ;;  %809 = vst.msk [vmem:[#allocation2 + $0x8] sm:$0xff] %vm20_vm0, %v792_v52  ;;  %v1213_v58 = vadd.f32 %v1212_v56, %v1211_v53  ;;  %v1214_v59 = vpop.f32.mrb[6].mxu1 }
 0x102   :  { %v1152_v60 = vadd.f32 %v1151_v57, %v1150_v55  ;;  %v1215_v62 = vpop.f32.mrb[7].mxu1 }
 0x103   :  { %v737_v63 = vadd.f32 %v1213_v58, %v1149_v54  ;;  %v1216_v0 = vadd.f32 %v1215_v62, %v1214_v59 }
 0x105   :  { %v793_v2 = vadd.f32 %v737_v63, %v167_v61  ;;  %v740_v3 = vadd.f32 %v1216_v0, %v1152_v60 }
 0x106   :  { %v1153_v4 = vpop.f32.mrb[8].mxu0  ;;  %v1522_v5 = vld [vmem:[#allocation2] sm:$0xff] }
 0x107   :  { %v1154_v6 = vpop.f32.mrb[9].mxu0  ;;  %v1109_v7 = vpack.c.bf16 %v1522_v5, %v1522_v5  ;;  %810 = vst.msk [vmem:[#allocation2 + $0x10] sm:$0xff] %vm20_vm0, %v793_v2  ;;  %v794_v8 = vadd.f32 %v740_v3, %v168_v1  ;;  %v1217_v9 = vpop.f32.mrb[8].mxu1  ;;  %v963_v49 = vmul.f32 %v1522_v5, %v1522_v5  ;;  %v924_v63 = vsel %vm20_vm0, %v1522_v5, 0.0 }
 0x108   :  { %v1156_v10 = vpop.f32.mrb[10].mxu0  ;;  %v828_v11 = vld [vmem:[#allocation2 + $0x8] sm:$0xff]  ;;  %v1155_v12 = vadd.f32 %v1154_v6, %v1153_v4  ;;  %v1218_v13 = vpop.f32.mrb[9].mxu1 }
 0x109   :  { %v1157_v14 = vpop.f32.mrb[11].mxu0  ;;  %908 = vst.msk [vmem:[%s1647_s2] sm:$0xf] %vm907_vm1, %v1109_v7  ;;  %v1110_v15 = vpack.c.bf16 %v828_v11, %v828_v11  ;;  %v1220_v16 = vpop.f32.mrb[10].mxu1  ;;  %v1219_v17 = vadd.f32 %v1218_v13, %v1217_v9  ;;  %v964_v46 = vmul.f32 %v828_v11, %v828_v11  ;;  %v925_v52 = vsel %vm20_vm0, %v828_v11, 0.0  ;;  %v173_v11 = vld [vmem:[#allocation2 + $0x40] sm:$0xff] }
 0x10a   :  { %811 = vst.msk [vmem:[#allocation2 + $0x18] sm:$0xff] %vm20_vm0, %v794_v8  ;;  %v1158_v18 = vadd.f32 %v1157_v14, %v1156_v10  ;;  %v1221_v19 = vpop.f32.mrb[11].mxu1  ;;  %v926_v4 = vadd.f32 %v925_v52, %v924_v63  ;;  %v979_v9 = vsel %vm20_vm0, %v963_v49, 0.0 }
 0x10b   :  { %909 = vst.msk [vmem:[%s1647_s2 + $0x4] sm:$0xf] %vm907_vm1, %v1110_v15  ;;  %v1222_v21 = vadd.f32 %v1221_v19, %v1220_v16  ;;  %v745_v22 = vadd.f32 %v1219_v17, %v1155_v12  ;;  %v980_v0 = vsel %vm20_vm0, %v964_v46, 0.0  ;;  %v174_v16 = vld [vmem:[#allocation2 + $0x48] sm:$0xff] }
 0x10c   :  { %v981_v13 = vadd.f32 %v980_v0, %v979_v9 }
 0x10d   :  { %v748_v24 = vadd.f32 %v1222_v21, %v1158_v18  ;;  %v795_v27 = vadd.f32 %v745_v22, %v169_v20 }
 0x10e   :  { %v1159_v25 = vpop.f32.mrb[12].mxu0  ;;  %v829_v26 = vld [vmem:[#allocation2 + $0x10] sm:$0xff] }
 0x10f   :  { %v1160_v28 = vpop.f32.mrb[13].mxu0  ;;  %v1111_v29 = vpack.c.bf16 %v829_v26, %v829_v26  ;;  %v796_v30 = vadd.f32 %v748_v24, %v170_v23  ;;  %v1223_v31 = vpop.f32.mrb[12].mxu1  ;;  %812 = vst.msk [vmem:[#allocation2 + $0x20] sm:$0xff] %vm20_vm0, %v795_v27  ;;  %v965_v53 = vmul.f32 %v829_v26, %v829_v26  ;;  %v927_v1 = vsel %vm20_vm0, %v829_v26, 0.0 }
 0x110   :  { %v1162_v32 = vpop.f32.mrb[14].mxu0  ;;  %v1161_v34 = vadd.f32 %v1160_v28, %v1159_v25  ;;  %v1224_v35 = vpop.f32.mrb[13].mxu1  ;;  %v928_v14 = vadd.f32 %v927_v1, %v926_v4 }
 0x111   :  { %v830_v33 = vld [vmem:[#allocation2 + $0x18] sm:$0xff]  ;;  %v1163_v36 = vpop.f32.mrb[15].mxu0  ;;  %910 = vst.msk [vmem:[%s1647_s2 + $0x8] sm:$0xf] %vm907_vm1, %v1111_v29  ;;  %v1226_v38 = vpop.f32.mrb[14].mxu1  ;;  %v1225_v39 = vadd.f32 %v1224_v35, %v1223_v31  ;;  %v982_v5 = vsel %vm20_vm0, %v965_v53, 0.0 }
 0x112   :  { %v1112_v37 = vpack.c.bf16 %v830_v33, %v830_v33  ;;  %813 = vst.msk [vmem:[#allocation2 + $0x28] sm:$0xff] %vm20_vm0, %v796_v30  ;;  %v1164_v40 = vadd.f32 %v1163_v36, %v1162_v32  ;;  %v1227_v41 = vpop.f32.mrb[15].mxu1  ;;  %v966_v10 = vmul.f32 %v830_v33, %v830_v33  ;;  %v929_v17 = vsel %vm20_vm0, %v830_v33, 0.0 }
 0x113   :  { %v1228_v43 = vadd.f32 %v1227_v41, %v1226_v38  ;;  %v753_v44 = vadd.f32 %v1225_v39, %v1161_v34  ;;  %v983_v21 = vadd.f32 %v982_v5, %v981_v13  ;;  %v930_v31 = vadd.f32 %v929_v17, %v928_v14  ;;  %v177_v17 = vld [vmem:[#allocation2 + $0x60] sm:$0xff] }
 0x114   :  { %911 = vst.msk [vmem:[%s1647_s2 + $0xc] sm:$0xf] %vm907_vm1, %v1112_v37  ;;  %v984_v24 = vsel %vm20_vm0, %v966_v10, 0.0 }
 0x115   :  { %v756_v47 = vadd.f32 %v1228_v43, %v1164_v40  ;;  %v797_v50 = vadd.f32 %v753_v44, %v171_v42  ;;  %v985_v40 = vadd.f32 %v984_v24, %v983_v21  ;;  %v178_v21 = vld [vmem:[#allocation2 + $0x68] sm:$0xff] }
 0x116   :  { %v1165_v48 = vpop.f32.mrb[16].mxu0  ;;  %v831_v54 = vld [vmem:[#allocation2 + $0x20] sm:$0xff] }
 0x117   :  { %v1166_v51 = vpop.f32.mrb[17].mxu0  ;;  %v798_v55 = vadd.f32 %v756_v47, %v172_v45  ;;  %v1229_v56 = vpop.f32.mrb[16].mxu1  ;;  %v1113_v59 = vpack.c.bf16 %v831_v54, %v831_v54  ;;  %814 = vst.msk [vmem:[#allocation2 + $0x30] sm:$0xff] %vm20_vm0, %v797_v50  ;;  %v967_v18 = vmul.f32 %v831_v54, %v831_v54  ;;  %v931_v25 = vsel %vm20_vm0, %v831_v54, 0.0  ;;  %v175_v47 = vld [vmem:[#allocation2 + $0x50] sm:$0xff] }
 0x118   :  { %v1167_v57 = vadd.f32 %v1166_v51, %v1165_v48  ;;  %v1168_v58 = vpop.f32.mrb[18].mxu0  ;;  %v1230_v61 = vpop.f32.mrb[17].mxu1  ;;  %v932_v41 = vadd.f32 %v931_v25, %v930_v31  ;;  %v176_v51 = vld [vmem:[#allocation2 + $0x58] sm:$0xff] }
 0x119   :  { %v832_v60 = vld [vmem:[#allocation2 + $0x28] sm:$0xff]  ;;  %v1169_v62 = vpop.f32.mrb[19].mxu0  ;;  %815 = vst.msk [vmem:[#allocation2 + $0x38] sm:$0xff] %vm20_vm0, %v798_v55  ;;  %v1232_v3 = vpop.f32.mrb[18].mxu1  ;;  %v1231_v6 = vadd.f32 %v1230_v61, %v1229_v56  ;;  %v986_v36 = vsel %vm20_vm0, %v967_v18, 0.0 }
 0x11a   :  { %v1114_v2 = vpack.c.bf16 %v832_v60, %v832_v60  ;;  %912 = vst.msk [vmem:[%s1647_s2 + $0x10] sm:$0xf] %vm907_vm1, %v1113_v59  ;;  %v1170_v7 = vadd.f32 %v1169_v62, %v1168_v58  ;;  %v1233_v8 = vpop.f32.mrb[19].mxu1  ;;  %v968_v37 = vmul.f32 %v832_v60, %v832_v60  ;;  %v933_v45 = vsel %vm20_vm0, %v832_v60, 0.0 }
 0x11b   :  { %v1234_v12 = vadd.f32 %v1233_v8, %v1232_v3  ;;  %v761_v15 = vadd.f32 %v1231_v6, %v1167_v57  ;;  %v987_v49 = vadd.f32 %v986_v36, %v985_v40  ;;  %v934_v55 = vadd.f32 %v933_v45, %v932_v41 }
 0x11c   :  { %913 = vst.msk [vmem:[%s1647_s2 + $0x14] sm:$0xf] %vm907_vm1, %v1114_v2  ;;  %v988_v52 = vsel %vm20_vm0, %v968_v37, 0.0 }
 0x11d   :  { %v764_v19 = vadd.f32 %v1234_v12, %v1170_v7  ;;  %v799_v22 = vadd.f32 %v761_v15, %v173_v11  ;;  %v989_v2 = vadd.f32 %v988_v52, %v987_v49 }
 0x11e   :  { %v1171_v20 = vpop.f32.mrb[20].mxu0  ;;  %v833_v26 = vld [vmem:[#allocation2 + $0x30] sm:$0xff] }
 0x11f   :  { %v1172_v23 = vpop.f32.mrb[21].mxu0  ;;  %v800_v27 = vadd.f32 %v764_v19, %v174_v16  ;;  %v1235_v28 = vpop.f32.mrb[20].mxu1  ;;  %v1115_v32 = vpack.c.bf16 %v833_v26, %v833_v26  ;;  %816 = vst.msk [vmem:[#allocation2 + $0x40] sm:$0xff] %vm20_vm0, %v799_v22  ;;  %v969_v46 = vmul.f32 %v833_v26, %v833_v26  ;;  %v935_v56 = vsel %vm20_vm0, %v833_v26, 0.0 }
 0x120   :  { %v1173_v29 = vadd.f32 %v1172_v23, %v1171_v20  ;;  %v1174_v30 = vpop.f32.mrb[22].mxu0  ;;  %v834_v34 = vld [vmem:[#allocation2 + $0x38] sm:$0xff]  ;;  %v1236_v33 = vpop.f32.mrb[21].mxu1  ;;  %v936_v8 = vadd.f32 %v935_v56, %v934_v55 }
 0x121   :  { %v1175_v35 = vpop.f32.mrb[23].mxu0  ;;  %v1116_v38 = vpack.c.bf16 %v834_v34, %v834_v34  ;;  %817 = vst.msk [vmem:[#allocation2 + $0x48] sm:$0xff] %vm20_vm0, %v800_v27  ;;  %v1238_v39 = vpop.f32.mrb[22].mxu1  ;;  %v1237_v42 = vadd.f32 %v1236_v33, %v1235_v28  ;;  %v990_v59 = vsel %vm20_vm0, %v969_v46, 0.0  ;;  %v970_v60 = vmul.f32 %v834_v34, %v834_v34 }
 0x122   :  { %914 = vst.msk [vmem:[%s1647_s2 + $0x18] sm:$0xf] %vm907_vm1, %v1115_v32  ;;  %v1176_v43 = vadd.f32 %v1175_v35, %v1174_v30  ;;  %v1239_v44 = vpop.f32.mrb[23].mxu1  ;;  %v991_v11 = vadd.f32 %v990_v59, %v989_v2  ;;  %v937_v12 = vsel %vm20_vm0, %v834_v34, 0.0 }
 0x123   :  { %915 = vst.msk [vmem:[%s1647_s2 + $0x1c] sm:$0xf] %vm907_vm1, %v1116_v38  ;;  %v1240_v48 = vadd.f32 %v1239_v44, %v1238_v39  ;;  %v769_v50 = vadd.f32 %v1237_v42, %v1173_v29  ;;  %v992_v16 = vsel %vm20_vm0, %v970_v60, 0.0  ;;  %v938_v22 = vadd.f32 %v937_v12, %v936_v8 }
 0x124   :  { %v993_v27 = vadd.f32 %v992_v16, %v991_v11 }
 0x125   :  { %v772_v53 = vadd.f32 %v1240_v48, %v1176_v43  ;;  %v801_v57 = vadd.f32 %v769_v50, %v175_v47 }
 0x126   :  { %v1177_v54 = vpop.f32.mrb[24].mxu0  ;;  %v835_v61 = vld [vmem:[#allocation2 + $0x40] sm:$0xff] }
 0x127   :  { %v1178_v58 = vpop.f32.mrb[25].mxu0  ;;  %v802_v62 = vadd.f32 %v772_v53, %v176_v51  ;;  %v1241_v63 = vpop.f32.mrb[24].mxu1  ;;  %v1117_v3 = vpack.c.bf16 %v835_v61, %v835_v61  ;;  %818 = vst.msk [vmem:[#allocation2 + $0x50] sm:$0xff] %vm20_vm0, %v801_v57  ;;  %v971_v9 = vmul.f32 %v835_v61, %v835_v61  ;;  %v939_v19 = vsel %vm20_vm0, %v835_v61, 0.0  ;;  %v179_v53 = vld [vmem:[#allocation2 + $0x70] sm:$0xff]  ;;  %v180_v57 = vld [vmem:[#allocation2 + $0x78] sm:$0xff] }
 0x128   :  { %v1179_v0 = vadd.f32 %v1178_v58, %v1177_v54  ;;  %v1180_v1 = vpop.f32.mrb[26].mxu0  ;;  %v836_v4 = vld [vmem:[#allocation2 + $0x48] sm:$0xff]  ;;  %v1242_v6 = vpop.f32.mrb[25].mxu1  ;;  %v940_v30 = vadd.f32 %v939_v19, %v938_v22 }
 0x129   :  { %v1181_v7 = vpop.f32.mrb[27].mxu0  ;;  %v1118_v5 = vpack.c.bf16 %v836_v4, %v836_v4  ;;  %819 = vst.msk [vmem:[#allocation2 + $0x58] sm:$0xff] %vm20_vm0, %v802_v62  ;;  %v1244_v10 = vpop.f32.mrb[26].mxu1  ;;  %v1243_v13 = vadd.f32 %v1242_v6, %v1241_v63  ;;  %v994_v23 = vsel %vm20_vm0, %v971_v9, 0.0  ;;  %v972_v24 = vmul.f32 %v836_v4, %v836_v4 }
 0x12a   :  { %916 = vst.msk [vmem:[%s1647_s2 + $0x20] sm:$0xf] %vm907_vm1, %v1117_v3  ;;  %v1182_v14 = vadd.f32 %v1181_v7, %v1180_v1  ;;  %v1245_v15 = vpop.f32.mrb[27].mxu1  ;;  %v995_v36 = vadd.f32 %v994_v23, %v993_v27  ;;  %v941_v37 = vsel %vm20_vm0, %v836_v4, 0.0 }
 0x12b   :  { %917 = vst.msk [vmem:[%s1647_s2 + $0x24] sm:$0xf] %vm907_vm1, %v1118_v5  ;;  %v1246_v18 = vadd.f32 %v1245_v15, %v1244_v10  ;;  %v777_v20 = vadd.f32 %v1243_v13, %v1179_v0  ;;  %v996_v43 = vsel %vm20_vm0, %v972_v24, 0.0  ;;  %v942_v50 = vadd.f32 %v941_v37, %v940_v30 }
 0x12c   :  { %v997_v55 = vadd.f32 %v996_v43, %v995_v36 }
 0x12d   :  { %v780_v25 = vadd.f32 %v1246_v18, %v1182_v14  ;;  %v803_v28 = vadd.f32 %v777_v20, %v177_v17 }
 0x12e   :  { %v1183_v26 = vpop.f32.mrb[28].mxu0  ;;  %v837_v31 = vld [vmem:[#allocation2 + $0x50] sm:$0xff] }
 0x12f   :  { %v1184_v29 = vpop.f32.mrb[29].mxu0  ;;  %v804_v32 = vadd.f32 %v780_v25, %v178_v21  ;;  %v1247_v34 = vpop.f32.mrb[28].mxu1  ;;  %v1119_v38 = vpack.c.bf16 %v837_v31, %v837_v31  ;;  %v973_v39 = vmul.f32 %v837_v31, %v837_v31  ;;  %820 = vst.msk [vmem:[#allocation2 + $0x60] sm:$0xff] %vm20_vm0, %v803_v28  ;;  %v943_v46 = vsel %vm20_vm0, %v837_v31, 0.0 }
 0x130   :  { %v1185_v33 = vadd.f32 %v1184_v29, %v1183_v26  ;;  %v1186_v35 = vpop.f32.mrb[30].mxu0  ;;  %v838_v40 = vld [vmem:[#allocation2 + $0x58] sm:$0xff]  ;;  %v1248_v41 = vpop.f32.mrb[29].mxu1  ;;  %v944_v58 = vadd.f32 %v943_v46, %v942_v50 }
 0x131   :  { %v1187_v42 = vpop.f32.mrb[31].mxu0  ;;  %v1120_v44 = vpack.c.bf16 %v838_v40, %v838_v40  ;;  %821 = vst.msk [vmem:[#allocation2 + $0x68] sm:$0xff] %vm20_vm0, %v804_v32  ;;  %v1250_v45 = vpop.f32.mrb[30].mxu1  ;;  %v1249_v47 = vadd.f32 %v1248_v41, %v1247_v34  ;;  %v998_v51 = vsel %vm20_vm0, %v973_v39, 0.0  ;;  %v974_v52 = vmul.f32 %v838_v40, %v838_v40 }
 0x132   :  { %918 = vst.msk [vmem:[%s1647_s2 + $0x28] sm:$0xf] %vm907_vm1, %v1119_v38  ;;  %v1188_v48 = vadd.f32 %v1187_v42, %v1186_v35  ;;  %v1251_v49 = vpop.f32.mrb[31].mxu1  ;;  %v999_v60 = vadd.f32 %v998_v51, %v997_v55  ;;  %v945_v61 = vsel %vm20_vm0, %v838_v40, 0.0 }
 0x133   :  { %919 = vst.msk [vmem:[%s1647_s2 + $0x2c] sm:$0xf] %vm907_vm1, %v1120_v44  ;;  %v1252_v54 = vadd.f32 %v1251_v49, %v1250_v45  ;;  %v785_v56 = vadd.f32 %v1249_v47, %v1185_v33  ;;  %v1000_v63 = vsel %vm20_vm0, %v974_v52, 0.0  ;;  %v946_v7 = vadd.f32 %v945_v61, %v944_v58 }
 0x134   :  { %v1001_v5 = vadd.f32 %v1000_v63, %v999_v60 }
 0x135   :  { %v788_v59 = vadd.f32 %v1252_v54, %v1188_v48  ;;  %v805_v62 = vadd.f32 %v785_v56, %v179_v53 }
 0x136   :  { %v839_v0 = vld [vmem:[#allocation2 + $0x60] sm:$0xff] }
 0x137   :  { %v806_v1 = vadd.f32 %v788_v59, %v180_v57  ;;  %v1121_v2 = vpack.c.bf16 %v839_v0, %v839_v0  ;;  %v947_v3 = vsel %vm20_vm0, %v839_v0, 0.0  ;;  %v975_v4 = vmul.f32 %v839_v0, %v839_v0  ;;  %822 = vst.msk [vmem:[#allocation2 + $0x70] sm:$0xff] %vm20_vm0, %v805_v62 }
 0x138   :  { %v840_v6 = vld [vmem:[#allocation2 + $0x68] sm:$0xff]  ;;  %v948_v11 = vadd.f32 %v947_v3, %v946_v7 }
 0x139   :  { %v1122_v8 = vpack.c.bf16 %v840_v6, %v840_v6  ;;  %v976_v9 = vmul.f32 %v840_v6, %v840_v6  ;;  %823 = vst.msk [vmem:[#allocation2 + $0x78] sm:$0xff] %vm20_vm0, %v806_v1  ;;  %v1002_v10 = vsel %vm20_vm0, %v975_v4, 0.0  ;;  %v949_v13 = vsel %vm20_vm0, %v840_v6, 0.0 }
 0x13a   :  { %920 = vst.msk [vmem:[%s1647_s2 + $0x30] sm:$0xf] %vm907_vm1, %v1121_v2  ;;  %v1003_v12 = vadd.f32 %v1002_v10, %v1001_v5  ;;  %v950_v15 = vadd.f32 %v949_v13, %v948_v11 }
 0x13b   :  { %921 = vst.msk [vmem:[%s1647_s2 + $0x34] sm:$0xf] %vm907_vm1, %v1122_v8  ;;  %v1004_v14 = vsel %vm20_vm0, %v976_v9, 0.0 }
 0x13c   :  { %v1005_v17 = vadd.f32 %v1004_v14, %v1003_v12 }
 0x13e   :  { %v841_v16 = vld [vmem:[#allocation2 + $0x70] sm:$0xff] }
 0x13f   :  { %v1123_v18 = vpack.c.bf16 %v841_v16, %v841_v16  ;;  %v951_v19 = vsel %vm20_vm0, %v841_v16, 0.0  ;;  %v977_v20 = vmul.f32 %v841_v16, %v841_v16 }
 0x140   :  { %v842_v21 = vld [vmem:[#allocation2 + $0x78] sm:$0xff]  ;;  %v952_v22 = vadd.f32 %v951_v19, %v950_v15 }
 0x141   :  { %v1124_v23 = vpack.c.bf16 %v842_v21, %v842_v21  ;;  %v953_v24 = vsel %vm20_vm0, %v842_v21, 0.0  ;;  %v978_v25 = vmul.f32 %v842_v21, %v842_v21  ;;  %922 = vst.msk [vmem:[%s1647_s2 + $0x38] sm:$0xf] %vm907_vm1, %v1123_v18  ;;  %v1006_v26 = vsel %vm20_vm0, %v977_v20, 0.0 }
 0x142   :  { %v1007_v27 = vadd.f32 %v1006_v26, %v1005_v17  ;;  %v954_v28 = vadd.f32 %v953_v24, %v952_v22 }
 0x143   :  { %923 = vst.msk [vmem:[%s1647_s2 + $0x3c] sm:$0xf] %vm907_vm1, %v1124_v23  ;;  %v1008_v29 = vsel %vm20_vm0, %v978_v25, 0.0 }
 0x144   :  { %v955_v30 = vrot.slane %v954_v28, 4  ;;  %v1009_v31 = vadd.f32 %v1008_v29, %v1007_v27 }
 0x146   :  { %v956_v32 = vadd.f32 %v955_v30, %v954_v28  ;;  %v1010_v34 = vrot.slane %v1009_v31, 4 }
 0x148   :  { %v957_v33 = vrot.slane %v956_v32, 2  ;;  %v1011_v35 = vadd.f32 %v1010_v34, %v1009_v31 }
 0x14a   :  { %v958_v36 = vadd.f32 %v957_v33, %v956_v32  ;;  %v1012_v37 = vrot.slane %v1011_v35, 2 }
 0x14c   :  { %v959_v38 = vrot.slane %v958_v36, 1  ;;  %v1013_v39 = vadd.f32 %v1012_v37, %v1011_v35 }
 0x14e   :  { %v960_v40 = vadd.f32 %v959_v38, %v958_v36  ;;  %v1014_v41 = vrot.slane %v1013_v39, 1 }
 0x150   :  { %962 = vst.msk [vmem:[%s1648_s3] sm:$0x1] %vm961_vm2, %v960_v40  ;;  %v1015_v42 = vadd.f32 %v1014_v41, %v1013_v39 }
 0x152   :  { %1016 = vst.msk [vmem:[%s1649_s4] sm:$0x1] %vm961_vm2, %v1015_v42 }

// kernel: tile.28
= control target key start
LH: loop header
LB: loop body
LE: loop exit
PB: predicated region body
PF: predicated region fallthrough
CT: control target
= control target key end

     0   :  { %s28_s0 = inlined_call_operand.vmem [shape: f32[128], index: 0, kind: input, shape index: {}]   ;;  %s29_s1 = inlined_call_operand.vmem [shape: f32[16,128], index: 1, kind: output, shape index: {}]  }
   0x1   :  { %v4_v0 = vld [vmem:[%s28_s0] ss:$0 sm:$0xff] }
   0x2   :  { %5 = vst [vmem:[%s29_s1] sm:$0xff] %v4_v0  ;;  %8 = vst [vmem:[%s29_s1 + $0x8] sm:$0xff] %v4_v0 }

// kernel: mul.7
= control target key start
LH: loop header
LB: loop body
LE: loop exit
PB: predicated region body
PF: predicated region fallthrough
CT: control target
= control target key end

     0   :  { %v222_v12 = vmov 0.0   ;;  %s398_s0 = inlined_call_operand.vmem [shape: f32[2048,1], index: 0, kind: input, shape index: {}]   ;;  %s399_s1 = inlined_call_operand.vmem [shape: f32[2048,1], index: 1, kind: input, shape index: {}]   ;;  %s400_s2 = inlined_call_operand.vmem [shape: bf16[2048,1], index: 2, kind: output, shape index: {}]  }
   0x1   :  { %v3_v0 = vld [vmem:[%s398_s0] sm:$0x1]  ;;  %v176_v2 = vld [vmem:[%s398_s0 + $0x1] sm:$0x1]  ;;  %v179_v5 = vld [vmem:[%s398_s0 + $0x2] sm:$0x1] }
   0x2   :  { %v4_v1 = vld [vmem:[%s399_s1] sm:$0x1]  ;;  %v177_v4 = vld [vmem:[%s399_s1 + $0x1] sm:$0x1]  ;;  %v180_v6 = vld [vmem:[%s399_s1 + $0x2] sm:$0x1] }
   0x3   :  { %v7_v3 = vmul.f32 %v4_v1, %v3_v0  ;;  %v17_v7 = vmul.f32 %v177_v4, %v176_v2  ;;  %v28_v8 = vmul.f32 %v180_v6, %v179_v5  ;;  %v182_v9 = vld [vmem:[%s398_s0 + $0x3] sm:$0x1]  ;;  %v185_v11 = vld [vmem:[%s398_s0 + $0x4] sm:$0x1]  ;;  %v188_v16 = vld [vmem:[%s398_s0 + $0x5] sm:$0x1] }
   0x4   :  { %v183_v10 = vld [vmem:[%s399_s1 + $0x3] sm:$0x1]  ;;  %v186_v15 = vld [vmem:[%s399_s1 + $0x4] sm:$0x1]  ;;  %v189_v17 = vld [vmem:[%s399_s1 + $0x5] sm:$0x1] }
   0x5   :  { %v9_v13 = vpack.c.bf16 %v222_v12, %v7_v3  ;;  %v39_v14 = vmul.f32 %v183_v10, %v182_v9  ;;  %v20_v18 = vpack.c.bf16 %v222_v12, %v17_v7  ;;  %v31_v19 = vpack.c.bf16 %v222_v12, %v28_v8  ;;  %v191_v22 = vld [vmem:[%s398_s0 + $0x6] sm:$0x1]  ;;  %v194_v24 = vld [vmem:[%s398_s0 + $0x7] sm:$0x1]  ;;  %v197_v28 = vld [vmem:[%s398_s0 + $0x8] sm:$0x1] }
   0x6   :  { %v50_v20 = vmul.f32 %v186_v15, %v185_v11  ;;  %v61_v21 = vmul.f32 %v189_v17, %v188_v16  ;;  %v192_v23 = vld [vmem:[%s399_s1 + $0x6] sm:$0x1]  ;;  %v195_v27 = vld [vmem:[%s399_s1 + $0x7] sm:$0x1]  ;;  %v198_v29 = vld [vmem:[%s399_s1 + $0x8] sm:$0x1] }
   0x7   :  { %10 = vst [vmem:[%s400_s2] sm:$0x1] %v9_v13  ;;  %v42_v25 = vpack.c.bf16 %v222_v12, %v39_v14  ;;  %v72_v26 = vmul.f32 %v192_v23, %v191_v22  ;;  %178 = vst [vmem:[%s400_s2 + $0x1] sm:$0x1] %v20_v18  ;;  %v83_v32 = vmul.f32 %v195_v27, %v194_v24  ;;  %v200_v34 = vld [vmem:[%s398_s0 + $0x9] sm:$0x1] }
   0x8   :  { %181 = vst [vmem:[%s400_s2 + $0x2] sm:$0x1] %v31_v19  ;;  %v53_v30 = vpack.c.bf16 %v222_v12, %v50_v20  ;;  %v64_v31 = vpack.c.bf16 %v222_v12, %v61_v21  ;;  %v94_v33 = vmul.f32 %v198_v29, %v197_v28  ;;  %v201_v35 = vld [vmem:[%s399_s1 + $0x9] sm:$0x1]  ;;  %v203_v36 = vld [vmem:[%s398_s0 + $0xa] sm:$0x1] }
   0x9   :  { %184 = vst [vmem:[%s400_s2 + $0x3] sm:$0x1] %v42_v25  ;;  %v75_v37 = vpack.c.bf16 %v222_v12, %v72_v26  ;;  %v105_v38 = vmul.f32 %v201_v35, %v200_v34  ;;  %v204_v39 = vld [vmem:[%s399_s1 + $0xa] sm:$0x1]  ;;  %v206_v40 = vld [vmem:[%s398_s0 + $0xb] sm:$0x1]  ;;  %v86_v42 = vpack.c.bf16 %v222_v12, %v83_v32 }
   0xa   :  { %v207_v41 = vld [vmem:[%s399_s1 + $0xb] sm:$0x1]  ;;  %187 = vst [vmem:[%s400_s2 + $0x4] sm:$0x1] %v53_v30  ;;  %190 = vst [vmem:[%s400_s2 + $0x5] sm:$0x1] %v64_v31  ;;  %v97_v43 = vpack.c.bf16 %v222_v12, %v94_v33  ;;  %v116_v44 = vmul.f32 %v204_v39, %v203_v36 }
   0xb   :  { %v127_v45 = vmul.f32 %v207_v41, %v206_v40  ;;  %v209_v46 = vld [vmem:[%s398_s0 + $0xc] sm:$0x1]  ;;  %v212_v48 = vld [vmem:[%s398_s0 + $0xd] sm:$0x1]  ;;  %193 = vst [vmem:[%s400_s2 + $0x6] sm:$0x1] %v75_v37  ;;  %v108_v49 = vpack.c.bf16 %v222_v12, %v105_v38 }
   0xc   :  { %v210_v47 = vld [vmem:[%s399_s1 + $0xc] sm:$0x1]  ;;  %v213_v51 = vld [vmem:[%s399_s1 + $0xd] sm:$0x1]  ;;  %v215_v52 = vld [vmem:[%s398_s0 + $0xe] sm:$0x1]  ;;  %v119_v54 = vpack.c.bf16 %v222_v12, %v116_v44 }
   0xd   :  { %v138_v50 = vmul.f32 %v210_v47, %v209_v46  ;;  %v216_v53 = vld [vmem:[%s399_s1 + $0xe] sm:$0x1]  ;;  %196 = vst [vmem:[%s400_s2 + $0x7] sm:$0x1] %v86_v42  ;;  %199 = vst [vmem:[%s400_s2 + $0x8] sm:$0x1] %v97_v43  ;;  %v130_v55 = vpack.c.bf16 %v222_v12, %v127_v45  ;;  %v149_v56 = vmul.f32 %v213_v51, %v212_v48 }
   0xe   :  { %v160_v57 = vmul.f32 %v216_v53, %v215_v52  ;;  %v218_v58 = vld [vmem:[%s398_s0 + $0xf] sm:$0x1]  ;;  %202 = vst [vmem:[%s400_s2 + $0x9] sm:$0x1] %v108_v49  ;;  %205 = vst [vmem:[%s400_s2 + $0xa] sm:$0x1] %v119_v54 }
   0xf   :  { %v219_v59 = vld [vmem:[%s399_s1 + $0xf] sm:$0x1]  ;;  %v141_v60 = vpack.c.bf16 %v222_v12, %v138_v50  ;;  %208 = vst [vmem:[%s400_s2 + $0xb] sm:$0x1] %v130_v55  ;;  %v152_v62 = vpack.c.bf16 %v222_v12, %v149_v56 }
  0x10   :  { %v171_v61 = vmul.f32 %v219_v59, %v218_v58  ;;  %v163_v63 = vpack.c.bf16 %v222_v12, %v160_v57 }
  0x11   :  { %211 = vst [vmem:[%s400_s2 + $0xc] sm:$0x1] %v141_v60  ;;  %214 = vst [vmem:[%s400_s2 + $0xd] sm:$0x1] %v152_v62 }
  0x12   :  { %v174_v0 = vpack.c.bf16 %v222_v12, %v171_v61  ;;  %217 = vst [vmem:[%s400_s2 + $0xe] sm:$0x1] %v163_v63 }
  0x14   :  { %220 = vst [vmem:[%s400_s2 + $0xf] sm:$0x1] %v174_v0 }

// kernel: discriminator_forward.8
= control target key start
LH: loop header
LB: loop body
LE: loop exit
PB: predicated region body
PF: predicated region fallthrough
CT: control target
= control target key end

     0   :  { %s1503_s1 = inlined_call_operand.vmem [shape: bf16[1024,128], index: 1, kind: input, shape index: {}]   ;;  %s1504_s0 = inlined_call_operand.vmem [shape: bf16[32,1024], index: 0, kind: input, shape index: {}]   ;;  %s1505_s2 = inlined_call_operand.vmem [shape: bf16[32,128], index: 2, kind: output, shape index: {0}]   ;;  %s1506_s3 = inlined_call_operand.vmem [shape: f32[1,1,128], index: 3, kind: output, shape index: {1}]   ;;  %s1507_s4 = inlined_call_operand.vmem [shape: f32[1,1,128], index: 4, kind: output, shape index: {2}]  }
   0x1   :  { %v1162_v0 = vld [vmem:[%s1503_s1 + $0x40] sm:$0xff]   ;;  %v1166_v4 = vld [vmem:[%s1503_s1 + $0x48] sm:$0xff]   ;;  %v1170_v8 = vld [vmem:[%s1503_s1 + $0x50] sm:$0xff]  }
   0x2   :  { %v1163_v1 = vld [vmem:[%s1503_s1 + $0xc0] sm:$0xff]   ;;  %1050 = vmatprep.subr.bf16.mxu0 %v1162_v0  ;;  %v1167_v5 = vld [vmem:[%s1503_s1 + $0xc8] sm:$0xff]   ;;  %v1171_v9 = vld [vmem:[%s1503_s1 + $0xd0] sm:$0xff]  }
   0x3   :  { %v1164_v2 = vld [vmem:[%s1503_s1] sm:$0xff]   ;;  %1078 = vmatprep.subr.bf16.mxu1 %v1163_v1  ;;  %v1168_v6 = vld [vmem:[%s1503_s1 + $0x8] sm:$0xff]   ;;  %v1172_v10 = vld [vmem:[%s1503_s1 + $0x10] sm:$0xff]  }
   0x4   :  { %v1165_v3 = vld [vmem:[%s1503_s1 + $0x80] sm:$0xff]   ;;  %1051 = vmatpush3.bf16.msra.mxu0 %v1164_v2  ;;  %v1169_v7 = vld [vmem:[%s1503_s1 + $0x88] sm:$0xff]   ;;  %v1173_v11 = vld [vmem:[%s1503_s1 + $0x90] sm:$0xff]  }
   0x5   :  { %1079 = vmatpush3.bf16.msra.mxu1 %v1165_v3  ;;  %1052 = vmatprep.subr.bf16.mxu0 %v1166_v4  ;;  %v1174_v12 = vld [vmem:[%s1503_s1 + $0x58] sm:$0xff]   ;;  %v1178_v16 = vld [vmem:[%s1503_s1 + $0x60] sm:$0xff]   ;;  %v1182_v20 = vld [vmem:[%s1503_s1 + $0x68] sm:$0xff]  }
   0x6   :  { %1080 = vmatprep.subr.bf16.mxu1 %v1167_v5  ;;  %v1175_v13 = vld [vmem:[%s1503_s1 + $0xd8] sm:$0xff]   ;;  %v1179_v17 = vld [vmem:[%s1503_s1 + $0xe0] sm:$0xff]   ;;  %v1183_v21 = vld [vmem:[%s1503_s1 + $0xe8] sm:$0xff]  }
   0x7   :  { %v1176_v14 = vld [vmem:[%s1503_s1 + $0x18] sm:$0xff]   ;;  %v1180_v18 = vld [vmem:[%s1503_s1 + $0x20] sm:$0xff]   ;;  %v1184_v22 = vld [vmem:[%s1503_s1 + $0x28] sm:$0xff]  }
   0x8   :  { %1053 = vmatpush3.bf16.msra.mxu0 %v1168_v6  ;;  %v1177_v15 = vld [vmem:[%s1503_s1 + $0x98] sm:$0xff]   ;;  %v1181_v19 = vld [vmem:[%s1503_s1 + $0xa0] sm:$0xff]   ;;  %v1185_v23 = vld [vmem:[%s1503_s1 + $0xa8] sm:$0xff]  }
   0x9   :  { %1081 = vmatpush3.bf16.msra.mxu1 %v1169_v7  ;;  %1054 = vmatprep.subr.bf16.mxu0 %v1170_v8  ;;  %v1186_v24 = vld [vmem:[%s1503_s1 + $0x70] sm:$0xff]   ;;  %v1190_v28 = vld [vmem:[%s1503_s1 + $0x78] sm:$0xff]   ;;  %v24_v32 = vld [vmem:[%s1504_s0] sm:$0xff] }
   0xa   :  { %1082 = vmatprep.subr.bf16.mxu1 %v1171_v9  ;;  %v1187_v25 = vld [vmem:[%s1503_s1 + $0xf0] sm:$0xff]   ;;  %v1191_v29 = vld [vmem:[%s1503_s1 + $0xf8] sm:$0xff]   ;;  %v28_v33 = vld [vmem:[%s1504_s0 + $0x20] sm:$0xff]  ;;  %vm40_vm0 = vcmp.ge.bf16.partialorder %v24_v32, 0  ;;  %v56_v35 = vmul.bf16 1045249613, %v24_v32 }
   0xb   :  { %v1188_v26 = vld [vmem:[%s1503_s1 + $0x30] sm:$0xff]   ;;  %v1192_v30 = vld [vmem:[%s1503_s1 + $0x38] sm:$0xff]   ;;  %v25_v34 = vld [vmem:[%s1504_s0 + $0x8] sm:$0xff]  ;;  %vm44_vm1 = vcmp.ge.bf16.partialorder %v28_v33, 0  ;;  %v60_v36 = vmul.bf16 1045249613, %v28_v33 }
   0xc   :  { %1055 = vmatpush3.bf16.msra.mxu0 %v1172_v10  ;;  %v1189_v27 = vld [vmem:[%s1503_s1 + $0xb0] sm:$0xff]   ;;  %v1193_v31 = vld [vmem:[%s1503_s1 + $0xb8] sm:$0xff]   ;;  %v29_v37 = vld [vmem:[%s1504_s0 + $0x28] sm:$0xff]  ;;  %vm41_vm2 = vcmp.ge.bf16.partialorder %v25_v34, 0  ;;  %v57_v38 = vmul.bf16 1045249613, %v25_v34  ;;  %v72_v39 = vsel %vm40_vm0, %v24_v32, %v56_v35 }
   0xd   :  { %1083 = vmatpush3.bf16.msra.mxu1 %v1173_v11  ;;  %1056 = vmatprep.subr.bf16.mxu0 %v1174_v12  ;;  %v76_v40 = vsel %vm44_vm1, %v28_v33, %v60_v36  ;;  %vm45_vm3 = vcmp.ge.bf16.partialorder %v29_v37, 0  ;;  %v61_v41 = vmul.bf16 1045249613, %v29_v37  ;;  %v1194_v42 = vld [vmem:[%s1503_s1 + $0x140] sm:$0xff]   ;;  %v1198_v52 = vld [vmem:[%s1503_s1 + $0x148] sm:$0xff]   ;;  %v1202_v56 = vld [vmem:[%s1503_s1 + $0x150] sm:$0xff]  }
   0xe   :  { %1084 = vmatprep.subr.bf16.mxu1 %v1175_v13  ;;  %v951_v43 = vcombine.low %v72_v39, %v76_v40  ;;  %v952_v44 = vcombine.high %v72_v39, %v76_v40  ;;  %v73_v45 = vsel %vm41_vm2, %v25_v34, %v57_v38  ;;  %v1195_v46 = vld [vmem:[%s1503_s1 + $0x1c0] sm:$0xff]   ;;  %v1199_v53 = vld [vmem:[%s1503_s1 + $0x1c8] sm:$0xff]   ;;  %v1203_v57 = vld [vmem:[%s1503_s1 + $0x1d0] sm:$0xff]  }
   0xf   :  { %v77_v47 = vsel %vm45_vm3, %v29_v37, %v61_v41  ;;  %v1196_v48 = vld [vmem:[%s1503_s1 + $0x100] sm:$0xff]   ;;  %v1200_v54 = vld [vmem:[%s1503_s1 + $0x108] sm:$0xff]   ;;  %v1204_v58 = vld [vmem:[%s1503_s1 + $0x110] sm:$0xff]  }
  0x10   :  { %1057 = vmatpush3.bf16.msra.mxu0 %v1176_v14  ;;  %716 = vmatprep.mubr.bf16.mxu0 %v952_v44  ;;  %v953_v49 = vcombine.low %v73_v45, %v77_v47  ;;  %v954_v50 = vcombine.high %v73_v45, %v77_v47  ;;  %v1197_v51 = vld [vmem:[%s1503_s1 + $0x180] sm:$0xff]   ;;  %v1201_v55 = vld [vmem:[%s1503_s1 + $0x188] sm:$0xff]   ;;  %v1205_v59 = vld [vmem:[%s1503_s1 + $0x190] sm:$0xff]  }
  0x11   :  { %1085 = vmatpush3.bf16.msra.mxu1 %v1177_v15  ;;  %1058 = vmatprep.subr.bf16.mxu0 %v1178_v16  ;;  %v1206_v60 = vld [vmem:[%s1503_s1 + $0x158] sm:$0xff]   ;;  %v1210_v0 = vld [vmem:[%s1503_s1 + $0x160] sm:$0xff]   ;;  %v33_v6 = vld [vmem:[%s1504_s0 + $0x48] sm:$0xff] }
  0x12   :  { %1086 = vmatprep.subr.bf16.mxu1 %v1179_v17  ;;  %765 = vmatprep.mubr.bf16.mxu1 %v954_v50  ;;  %v1207_v61 = vld [vmem:[%s1503_s1 + $0x1d8] sm:$0xff]   ;;  %v1211_v1 = vld [vmem:[%s1503_s1 + $0x1e0] sm:$0xff]   ;;  %v37_v9 = vld [vmem:[%s1504_s0 + $0x68] sm:$0xff]  ;;  %vm49_vm6 = vcmp.ge.bf16.partialorder %v33_v6, 0  ;;  %v65_v10 = vmul.bf16 1045249613, %v33_v6 }
  0x13   :  { %v1208_v62 = vld [vmem:[%s1503_s1 + $0x118] sm:$0xff]   ;;  %v1212_v2 = vld [vmem:[%s1503_s1 + $0x120] sm:$0xff]   ;;  %vm53_vm7 = vcmp.ge.bf16.partialorder %v37_v9, 0  ;;  %v69_v13 = vmul.bf16 1045249613, %v37_v9  ;;  %v1214_v14 = vld [vmem:[%s1503_s1 + $0x168] sm:$0xff]  }
  0x14   :  { %1059 = vmatpush3.bf16.msra.mxu0 %v1180_v18  ;;  %v1209_v63 = vld [vmem:[%s1503_s1 + $0x198] sm:$0xff]   ;;  %v1213_v3 = vld [vmem:[%s1503_s1 + $0x1a0] sm:$0xff]   ;;  %v81_v16 = vsel %vm49_vm6, %v33_v6, %v65_v10  ;;  %v1215_v17 = vld [vmem:[%s1503_s1 + $0x1e8] sm:$0xff]  }
  0x15   :  { %1087 = vmatpush3.bf16.msra.mxu1 %v1181_v19  ;;  %1060 = vmatprep.subr.bf16.mxu0 %v1182_v20  ;;  %v32_v4 = vld [vmem:[%s1504_s0 + $0x40] sm:$0xff]  ;;  %v85_v19 = vsel %vm53_vm7, %v37_v9, %v69_v13  ;;  %v1216_v20 = vld [vmem:[%s1503_s1 + $0x128] sm:$0xff]   ;;  %v26_v32 = vld [vmem:[%s1504_s0 + $0x10] sm:$0xff] }
  0x16   :  { %1088 = vmatprep.subr.bf16.mxu1 %v1183_v21  ;;  %v36_v5 = vld [vmem:[%s1504_s0 + $0x60] sm:$0xff]  ;;  %vm48_vm4 = vcmp.ge.bf16.partialorder %v32_v4, 0  ;;  %v64_v7 = vmul.bf16 1045249613, %v32_v4  ;;  %v962_v21 = vcombine.high %v81_v16, %v85_v19  ;;  %v30_v33 = vld [vmem:[%s1504_s0 + $0x30] sm:$0xff]  ;;  %v27_v34 = vld [vmem:[%s1504_s0 + $0x18] sm:$0xff] }
  0x17   :  { %vm52_vm5 = vcmp.ge.bf16.partialorder %v36_v5, 0  ;;  %v68_v8 = vmul.bf16 1045249613, %v36_v5  ;;  %vm42_vm8 = vcmp.ge.bf16.partialorder %v26_v32, 0  ;;  %vm46_vm9 = vcmp.ge.bf16.partialorder %v30_v33, 0  ;;  %v31_v37 = vld [vmem:[%s1504_s0 + $0x38] sm:$0xff] }
  0x18   :  { %1061 = vmatpush3.bf16.msra.mxu0 %v1184_v22  ;;  %v80_v11 = vsel %vm48_vm4, %v32_v4, %v64_v7  ;;  %v961_v22 = vcombine.low %v81_v16, %v85_v19  ;;  %v58_v35 = vmul.bf16 1045249613, %v26_v32  ;;  %v62_v36 = vmul.bf16 1045249613, %v30_v33  ;;  %v34_v39 = vld [vmem:[%s1504_s0 + $0x50] sm:$0xff]  ;;  %v35_v44 = vld [vmem:[%s1504_s0 + $0x58] sm:$0xff] }
  0x19   :  { %1089 = vmatpush3.bf16.msra.mxu1 %v1185_v23  ;;  %1062 = vmatprep.subr.bf16.mxu0 %v1186_v24  ;;  %v84_v12 = vsel %vm52_vm5, %v36_v5, %v68_v8  ;;  %v1217_v23 = vld [vmem:[%s1503_s1 + $0x1a8] sm:$0xff]   ;;  %v1218_v24 = vld [vmem:[%s1503_s1 + $0x170] sm:$0xff]   ;;  %vm43_vm10 = vcmp.ge.bf16.partialorder %v27_v34, 0  ;;  %v59_v38 = vmul.bf16 1045249613, %v27_v34  ;;  %vm47_vm11 = vcmp.ge.bf16.partialorder %v31_v37, 0 }
  0x1a   :  { %1090 = vmatprep.subr.bf16.mxu1 %v1187_v25  ;;  %v960_v15 = vcombine.high %v80_v11, %v84_v12  ;;  %v959_v18 = vcombine.low %v80_v11, %v84_v12  ;;  %v1219_v25 = vld [vmem:[%s1503_s1 + $0x1f0] sm:$0xff]   ;;  %v74_v41 = vsel %vm42_vm8, %v26_v32, %v58_v35  ;;  %v39_v45 = vld [vmem:[%s1504_s0 + $0x78] sm:$0xff]  ;;  %vm50_vm12 = vcmp.ge.bf16.partialorder %v34_v39, 0 }
  0x1b   :  { %v38_v40 = vld [vmem:[%s1504_s0 + $0x70] sm:$0xff]  ;;  %v66_v50 = vmul.bf16 1045249613, %v34_v39  ;;  %vm51_vm14 = vcmp.ge.bf16.partialorder %v35_v44, 0  ;;  %vm55_vm15 = vcmp.ge.bf16.partialorder %v39_v45, 0 }
  0x1c   :  { %1063 = vmatpush3.bf16.msra.mxu0 %v1188_v26  ;;  %v1220_v26 = vld [vmem:[%s1503_s1 + $0x130] sm:$0xff]   ;;  %vm54_vm13 = vcmp.ge.bf16.partialorder %v38_v40, 0 }
  0x1d   :  { %1091 = vmatpush3.bf16.msra.mxu1 %v1189_v27  ;;  %1064 = vmatprep.subr.bf16.mxu0 %v1190_v28  ;;  %v1221_v27 = vld [vmem:[%s1503_s1 + $0x1b0] sm:$0xff]   ;;  %v1222_v28 = vld [vmem:[%s1503_s1 + $0x178] sm:$0xff]  }
  0x1e   :  { %1092 = vmatprep.subr.bf16.mxu1 %v1191_v29  ;;  %v1223_v29 = vld [vmem:[%s1503_s1 + $0x1f8] sm:$0xff]  }
  0x20   :  { %1065 = vmatpush3.bf16.msra.mxu0 %v1192_v30  ;;  %v1224_v30 = vld [vmem:[%s1503_s1 + $0x138] sm:$0xff]  }
  0x21   :  { %1093 = vmatpush3.bf16.msra.mxu1 %v1193_v31  ;;  %1106 = vmatprep.subr.bf16.mxu0 %v1194_v42  ;;  %v1225_v31 = vld [vmem:[%s1503_s1 + $0x1b8] sm:$0xff]   ;;  %v78_v42 = vsel %vm46_vm9, %v30_v33, %v62_v36 }
  0x22   :  { %1134 = vmatprep.subr.bf16.mxu1 %v1195_v46  ;;  %v955_v46 = vcombine.low %v74_v41, %v78_v42  ;;  %v956_v47 = vcombine.high %v74_v41, %v78_v42 }
  0x23   :  { %717 = vmatmul.mubr.bf16.vlgmr.msra.gmra.mrb[0].mxu0 %v951_v43  ;;  %v63_v43 = vmul.bf16 1045249613, %v31_v37 }
  0x24   :  { %1107 = vmatpush3.bf16.msra.mxu0 %v1196_v48  ;;  %766 = vmatmul.mubr.bf16.vlgmr.msra.gmra.mrb[0].mxu1 %v953_v49  ;;  %v75_v48 = vsel %vm43_vm10, %v27_v34, %v59_v38 }
  0x25   :  { %1108 = vmatprep.subr.bf16.mxu0 %v1198_v52  ;;  %1135 = vmatpush3.bf16.msra.mxu1 %v1197_v51  ;;  %v79_v49 = vsel %vm47_vm11, %v31_v37, %v63_v43  ;;  %v70_v51 = vmul.bf16 1045249613, %v38_v40 }
  0x26   :  { %1136 = vmatprep.subr.bf16.mxu1 %v1199_v53  ;;  %724 = vmatprep.mubr.bf16.mxu0 %v960_v15  ;;  %v957_v52 = vcombine.low %v75_v48, %v79_v49  ;;  %v958_v53 = vcombine.high %v75_v48, %v79_v49 }
  0x27   :  { %773 = vmatprep.mubr.bf16.mxu1 %v962_v21 }
  0x28   :  { %1109 = vmatpush3.bf16.msra.mxu0 %v1200_v54  ;;  %v82_v54 = vsel %vm50_vm12, %v34_v39, %v66_v50 }
  0x29   :  { %1110 = vmatprep.subr.bf16.mxu0 %v1202_v56  ;;  %1137 = vmatpush3.bf16.msra.mxu1 %v1201_v55  ;;  %v86_v55 = vsel %vm54_vm13, %v38_v40, %v70_v51  ;;  %v67_v56 = vmul.bf16 1045249613, %v35_v44 }
  0x2a   :  { %1138 = vmatprep.subr.bf16.mxu1 %v1203_v57  ;;  %v71_v57 = vmul.bf16 1045249613, %v39_v45 }
  0x2b   :  { %725 = vmatmul.mubr.bf16.gmra.mrb[4].mxu0 %v959_v18 }
  0x2c   :  { %1111 = vmatpush3.bf16.msra.mxu0 %v1204_v58  ;;  %774 = vmatmul.mubr.bf16.gmra.mrb[4].mxu1 %v961_v22  ;;  %v964_v58 = vcombine.high %v82_v54, %v86_v55 }
  0x2d   :  { %1112 = vmatprep.subr.bf16.mxu0 %v1206_v60  ;;  %1139 = vmatpush3.bf16.msra.mxu1 %v1205_v59  ;;  %v83_v59 = vsel %vm51_vm14, %v35_v44, %v67_v56  ;;  %v87_v60 = vsel %vm55_vm15, %v39_v45, %v71_v57 }
  0x2e   :  { %1140 = vmatprep.subr.bf16.mxu1 %v1207_v61  ;;  %814 = vmatprep.mubr.bf16.mxu0 %v956_v47  ;;  %v966_v61 = vcombine.high %v83_v59, %v87_v60 }
  0x2f   :  { %863 = vmatprep.mubr.bf16.mxu1 %v958_v53 }
  0x30   :  { %1113 = vmatpush3.bf16.msra.mxu0 %v1208_v62  ;;  %v963_v62 = vcombine.low %v82_v54, %v86_v55 }
  0x31   :  { %1114 = vmatprep.subr.bf16.mxu0 %v1210_v0  ;;  %1141 = vmatpush3.bf16.msra.mxu1 %v1209_v63  ;;  %v965_v63 = vcombine.low %v83_v59, %v87_v60 }
  0x32   :  { %1142 = vmatprep.subr.bf16.mxu1 %v1211_v1 }
  0x34   :  { %1115 = vmatpush3.bf16.msra.mxu0 %v1212_v2 }
  0x35   :  { %1143 = vmatpush3.bf16.msra.mxu1 %v1213_v3  ;;  %1116 = vmatprep.subr.bf16.mxu0 %v1214_v14 }
  0x36   :  { %1144 = vmatprep.subr.bf16.mxu1 %v1215_v17 }
  0x38   :  { %1117 = vmatpush3.bf16.msra.mxu0 %v1216_v20 }
  0x39   :  { %1118 = vmatprep.subr.bf16.mxu0 %v1218_v24  ;;  %1145 = vmatpush3.bf16.msra.mxu1 %v1217_v23 }
  0x3a   :  { %1146 = vmatprep.subr.bf16.mxu1 %v1219_v25 }
  0x3c   :  { %1119 = vmatpush3.bf16.msra.mxu0 %v1220_v26 }
  0x3d   :  { %1120 = vmatprep.subr.bf16.mxu0 %v1222_v28  ;;  %1147 = vmatpush3.bf16.msra.mxu1 %v1221_v27 }
  0x3e   :  { %1148 = vmatprep.subr.bf16.mxu1 %v1223_v29 }
  0x40   :  { %1121 = vmatpush3.bf16.msra.mxu0 %v1224_v30 }
  0x41   :  { %1149 = vmatpush3.bf16.msra.mxu1 %v1225_v31 }
  0x43   :  { %815 = vmatmul.mubr.bf16.vlgmr.msra.gmra.mrb[8].mxu0 %v955_v46 }
  0x44   :  { %864 = vmatmul.mubr.bf16.vlgmr.msra.gmra.mrb[8].mxu1 %v957_v52  ;;  %822 = vmatprep.mubr.bf16.mxu0 %v964_v58 }
  0x45   :  { %871 = vmatprep.mubr.bf16.mxu1 %v966_v61 }
  0x4b   :  { %823 = vmatmul.mubr.bf16.gmra.mrb[12].mxu0 %v963_v62 }
  0x4c   :  { %872 = vmatmul.mubr.bf16.gmra.mrb[12].mxu1 %v965_v63 }
  0xf6   :  { %v1066_v0 = vpop.f32.mrb[0].mxu0 }
  0xf7   :  { %v1067_v1 = vpop.f32.mrb[1].mxu0  ;;  %v1094_v2 = vpop.f32.mrb[0].mxu1 }
  0xf8   :  { %v1068_v3 = vadd.f32 %v1067_v1, %v1066_v0  ;;  %v1069_v4 = vpop.f32.mrb[2].mxu0  ;;  %v1095_v5 = vpop.f32.mrb[1].mxu1 }
  0xf9   :  { %v1070_v6 = vpop.f32.mrb[3].mxu0  ;;  %v1096_v7 = vadd.f32 %v1095_v5, %v1094_v2  ;;  %v1097_v8 = vpop.f32.mrb[2].mxu1 }
  0xfa   :  { %v1071_v9 = vadd.f32 %v1070_v6, %v1069_v4  ;;  %v1098_v10 = vpop.f32.mrb[3].mxu1 }
  0xfb   :  { %v768_v11 = vadd.f32 %v1096_v7, %v1068_v3  ;;  %v1099_v12 = vadd.f32 %v1098_v10, %v1097_v8 }
  0xfd   :  { %v771_v13 = vadd.f32 %v1099_v12, %v1071_v9 }
  0xfe   :  { %v1072_v14 = vpop.f32.mrb[4].mxu0 }
  0xff   :  { %v1073_v15 = vpop.f32.mrb[5].mxu0  ;;  %v1100_v16 = vpop.f32.mrb[4].mxu1 }
 0x100   :  { %v1074_v17 = vadd.f32 %v1073_v15, %v1072_v14  ;;  %v1075_v18 = vpop.f32.mrb[6].mxu0  ;;  %v1101_v19 = vpop.f32.mrb[5].mxu1 }
 0x101   :  { %v1076_v20 = vpop.f32.mrb[7].mxu0  ;;  %v1102_v21 = vadd.f32 %v1101_v19, %v1100_v16  ;;  %v1103_v22 = vpop.f32.mrb[6].mxu1 }
 0x102   :  { %v1077_v23 = vadd.f32 %v1076_v20, %v1075_v18  ;;  %v1104_v24 = vpop.f32.mrb[7].mxu1 }
 0x103   :  { %v776_v25 = vadd.f32 %v1102_v21, %v1074_v17  ;;  %v1105_v26 = vadd.f32 %v1104_v24, %v1103_v22 }
 0x105   :  { %v779_v27 = vadd.f32 %v1105_v26, %v1077_v23 }
 0x116   :  { %v1122_v28 = vpop.f32.mrb[8].mxu0 }
 0x117   :  { %v1123_v29 = vpop.f32.mrb[9].mxu0  ;;  %v1150_v30 = vpop.f32.mrb[8].mxu1 }
 0x118   :  { %v1124_v31 = vadd.f32 %v1123_v29, %v1122_v28  ;;  %v1125_v32 = vpop.f32.mrb[10].mxu0  ;;  %v1151_v33 = vpop.f32.mrb[9].mxu1 }
 0x119   :  { %v1126_v34 = vpop.f32.mrb[11].mxu0  ;;  %v1152_v36 = vadd.f32 %v1151_v33, %v1150_v30  ;;  %v1153_v37 = vpop.f32.mrb[10].mxu1 }
 0x11a   :  { %v817_v35 = vadd.f32 %v1124_v31, %v768_v11  ;;  %v1127_v38 = vadd.f32 %v1126_v34, %v1125_v32  ;;  %v1154_v39 = vpop.f32.mrb[11].mxu1 }
 0x11b   :  { %v1155_v42 = vadd.f32 %v1154_v39, %v1153_v37 }
 0x11c   :  { %v866_v40 = vadd.f32 %v1152_v36, %v817_v35  ;;  %v820_v41 = vadd.f32 %v1127_v38, %v771_v13 }
 0x11e   :  { %v869_v43 = vadd.f32 %v1155_v42, %v820_v41  ;;  %v1128_v44 = vpop.f32.mrb[12].mxu0  ;;  %v925_v45 = vmul.f32 %v866_v40, %v866_v40 }
 0x11f   :  { %v1129_v46 = vpop.f32.mrb[13].mxu0  ;;  %v1156_v50 = vpop.f32.mrb[12].mxu1 }
 0x120   :  { %v1042_v47 = vpack.c.bf16 %v869_v43, %v866_v40  ;;  %v915_v48 = vadd.f32 %v869_v43, %v866_v40  ;;  %v926_v49 = vmul.f32 %v869_v43, %v869_v43  ;;  %v1130_v51 = vadd.f32 %v1129_v46, %v1128_v44  ;;  %v1131_v52 = vpop.f32.mrb[14].mxu0  ;;  %v1157_v53 = vpop.f32.mrb[13].mxu1 }
 0x121   :  { %v1132_v54 = vpop.f32.mrb[15].mxu0  ;;  %v1158_v57 = vadd.f32 %v1157_v53, %v1156_v50  ;;  %v1159_v58 = vpop.f32.mrb[14].mxu1 }
 0x122   :  { %1043 = vst [vmem:[%s1505_s2] sm:$0xff] %v1042_v47   ;;  %v929_v55 = vadd.f32 %v926_v49, %v925_v45  ;;  %v825_v56 = vadd.f32 %v1130_v51, %v776_v25  ;;  %v1133_v59 = vadd.f32 %v1132_v54, %v1131_v52  ;;  %v1160_v60 = vpop.f32.mrb[15].mxu1 }
 0x123   :  { %v1161_v63 = vadd.f32 %v1160_v60, %v1159_v58 }
 0x124   :  { %v874_v61 = vadd.f32 %v1158_v57, %v825_v56  ;;  %v828_v62 = vadd.f32 %v1133_v59, %v779_v27 }
 0x126   :  { %v916_v0 = vadd.f32 %v915_v48, %v874_v61  ;;  %v927_v1 = vmul.f32 %v874_v61, %v874_v61  ;;  %v877_v2 = vadd.f32 %v1161_v63, %v828_v62 }
 0x128   :  { %v930_v3 = vadd.f32 %v929_v55, %v927_v1  ;;  %v1047_v4 = vpack.c.bf16 %v877_v2, %v874_v61  ;;  %v917_v5 = vadd.f32 %v916_v0, %v877_v2  ;;  %v928_v6 = vmul.f32 %v877_v2, %v877_v2 }
 0x12a   :  { %1049 = vst [vmem:[%s1505_s2 + $0x8] sm:$0xff] %v1047_v4   ;;  %v918_v7 = vrot.slane %v917_v5, 4  ;;  %v931_v8 = vadd.f32 %v930_v3, %v928_v6 }
 0x12c   :  { %v919_v9 = vadd.f32 %v918_v7, %v917_v5  ;;  %v932_v10 = vrot.slane %v931_v8, 4 }
 0x12e   :  { %v920_v11 = vrot.slane %v919_v9, 2  ;;  %v933_v12 = vadd.f32 %v932_v10, %v931_v8 }
 0x130   :  { %v921_v13 = vadd.f32 %v920_v11, %v919_v9  ;;  %v934_v14 = vrot.slane %v933_v12, 2 }
 0x132   :  { %v922_v15 = vrot.slane %v921_v13, 1  ;;  %v935_v16 = vadd.f32 %v934_v14, %v933_v12 }
 0x134   :  { %v923_v17 = vadd.f32 %v922_v15, %v921_v13  ;;  %v936_v18 = vrot.slane %v935_v16, 1 }
 0x136   :  { %924 = vst [vmem:[%s1506_s3] sm:$0x1] %v923_v17  ;;  %v937_v19 = vadd.f32 %v936_v18, %v935_v16 }
 0x138   :  { %938 = vst [vmem:[%s1507_s4] sm:$0x1] %v937_v19 }

// kernel: discriminator_forward.9
= control target key start
LH: loop header
LB: loop body
LE: loop exit
PB: predicated region body
PF: predicated region fallthrough
CT: control target
= control target key end

     0   :  { %v1958_v25 = vmov 1966171168   ;;  %v295_v27 = vlaneseq  ;;  %vm22_vm2 = vcmask 1024   ;;  %s2413_s1 = inlined_call_operand.vmem [shape: bf16[2048,1], index: 1, kind: input, shape index: {}]   ;;  %s2414_s0 = inlined_call_operand.vmem [shape: bf16[2,2048], index: 0, kind: input, shape index: {}]   ;;  %s2415_s2 = inlined_call_operand.<no memory space> [shape: f32[1,1], index: 2, kind: input, shape index: {}]   ;;  %s2416_s3 = inlined_call_operand.vmem [shape: f32[2,1], index: 3, kind: output, shape index: {}]  }
   0x1   :  { %v1826_v0 = vld [vmem:[%s2413_s1 + $0x40] sm:$0xff]   ;;  %v1830_v4 = vld [vmem:[%s2413_s1 + $0x48] sm:$0xff]   ;;  %v1834_v8 = vld [vmem:[%s2413_s1 + $0x50] sm:$0xff]   ;;  %v293_v26 = vunpack.c.l.s4 %v1958_v25 }
   0x2   :  { %v1827_v1 = vld [vmem:[%s2413_s1 + $0xc0] sm:$0xff]   ;;  %1648 = vmatprep.subr.bf16.mxu0 %v1826_v0  ;;  %v1831_v5 = vld [vmem:[%s2413_s1 + $0xc8] sm:$0xff]   ;;  %v1835_v9 = vld [vmem:[%s2413_s1 + $0xd0] sm:$0xff]   ;;  %v296_v33 = vshrl.u32 %v295_v27, 7 }
   0x3   :  { %v1828_v2 = vld [vmem:[%s2413_s1] sm:$0xff]   ;;  %1670 = vmatprep.subr.bf16.mxu1 %v1827_v1  ;;  %v1832_v6 = vld [vmem:[%s2413_s1 + $0x8] sm:$0xff]   ;;  %v1836_v10 = vld [vmem:[%s2413_s1 + $0x10] sm:$0xff]   ;;  %v294_v32 = vunpack.c.0.s8 %v293_v26 }
   0x4   :  { %v1829_v3 = vld [vmem:[%s2413_s1 + $0x80] sm:$0xff]   ;;  %1649 = vmatpush3.bf16.msra.mxu0 %v1828_v2  ;;  %v1833_v7 = vld [vmem:[%s2413_s1 + $0x88] sm:$0xff]   ;;  %v1837_v11 = vld [vmem:[%s2413_s1 + $0x90] sm:$0xff]  }
   0x5   :  { %1671 = vmatpush3.bf16.msra.mxu1 %v1829_v3  ;;  %1650 = vmatprep.subr.bf16.mxu0 %v1830_v4  ;;  %v1838_v12 = vld [vmem:[%s2413_s1 + $0x58] sm:$0xff]   ;;  %v1842_v16 = vld [vmem:[%s2413_s1 + $0x60] sm:$0xff]   ;;  %v1846_v20 = vld [vmem:[%s2413_s1 + $0x68] sm:$0xff]   ;;  %v2079_v38 = vsub.s32 %v294_v32, %v296_v33 }
   0x6   :  { %1672 = vmatprep.subr.bf16.mxu1 %v1831_v5  ;;  %v1839_v13 = vld [vmem:[%s2413_s1 + $0xd8] sm:$0xff]   ;;  %v1843_v17 = vld [vmem:[%s2413_s1 + $0xe0] sm:$0xff]   ;;  %v1847_v21 = vld [vmem:[%s2413_s1 + $0xe8] sm:$0xff]  }
   0x7   :  { %v1840_v14 = vld [vmem:[%s2413_s1 + $0x18] sm:$0xff]   ;;  %v1844_v18 = vld [vmem:[%s2413_s1 + $0x20] sm:$0xff]   ;;  %v1848_v22 = vld [vmem:[%s2413_s1 + $0x28] sm:$0xff]  }
   0x8   :  { %1651 = vmatpush3.bf16.msra.mxu0 %v1832_v6  ;;  %v1841_v15 = vld [vmem:[%s2413_s1 + $0x98] sm:$0xff]   ;;  %v1845_v19 = vld [vmem:[%s2413_s1 + $0xa0] sm:$0xff]   ;;  %v1849_v23 = vld [vmem:[%s2413_s1 + $0xa8] sm:$0xff]  }
   0x9   :  { %1673 = vmatpush3.bf16.msra.mxu1 %v1833_v7  ;;  %1652 = vmatprep.subr.bf16.mxu0 %v1834_v8  ;;  %v1850_v24 = vld [vmem:[%s2413_s1 + $0x70] sm:$0xff]   ;;  %v1854_v31 = vld [vmem:[%s2413_s1 + $0x78] sm:$0xff]   ;;  %v24_v37 = vld [vmem:[%s2414_s0] sm:$0xff] }
   0xa   :  { %1674 = vmatprep.subr.bf16.mxu1 %v1835_v9  ;;  %v1851_v28 = vld [vmem:[%s2413_s1 + $0xf0] sm:$0xff]   ;;  %v1855_v34 = vld [vmem:[%s2413_s1 + $0xf8] sm:$0xff]   ;;  %vm26_vm0 = vcmp.ge.bf16.partialorder %v24_v37, 0  ;;  %v28_v39 = vmul.bf16 1045249613, %v24_v37  ;;  %v1858_v40 = vld [vmem:[%s2413_s1 + $0x140] sm:$0xff]  }
   0xb   :  { %v1852_v29 = vld [vmem:[%s2413_s1 + $0x30] sm:$0xff]   ;;  %v1856_v35 = vld [vmem:[%s2413_s1 + $0x38] sm:$0xff]   ;;  %v1859_v42 = vld [vmem:[%s2413_s1 + $0x1c0] sm:$0xff]  }
   0xc   :  { %1653 = vmatpush3.bf16.msra.mxu0 %v1836_v10  ;;  %v1853_v30 = vld [vmem:[%s2413_s1 + $0xb0] sm:$0xff]   ;;  %v1857_v36 = vld [vmem:[%s2413_s1 + $0xb8] sm:$0xff]   ;;  %v30_v41 = vsel %vm26_vm0, %v24_v37, %v28_v39  ;;  %v25_v43 = vld [vmem:[%s2414_s0 + $0x8] sm:$0xff] }
   0xd   :  { %1675 = vmatpush3.bf16.msra.mxu1 %v1837_v11  ;;  %1654 = vmatprep.subr.bf16.mxu0 %v1838_v12  ;;  %v291_v44 = vcombine.high %v30_v41, %v30_v41  ;;  %v298_v45 = vrot.slane %v30_v41, %v2079_v38  ;;  %v29_v49 = vmul.bf16 1045249613, %v25_v43  ;;  %v1860_v51 = vld [vmem:[%s2413_s1 + $0x100] sm:$0xff]   ;;  %v1862_v54 = vld [vmem:[%s2413_s1 + $0x148] sm:$0xff]   ;;  %v1866_v61 = vld [vmem:[%s2413_s1 + $0x150] sm:$0xff]   ;;  %vm27_vm1 = vcmp.ge.bf16.partialorder %v25_v43, 0 }
   0xe   :  { %1676 = vmatprep.subr.bf16.mxu1 %v1839_v13  ;;  %v1861_v56 = vld [vmem:[%s2413_s1 + $0x180] sm:$0xff]   ;;  %v1863_v58 = vld [vmem:[%s2413_s1 + $0x1c8] sm:$0xff]   ;;  %v1867_v63 = vld [vmem:[%s2413_s1 + $0x1d0] sm:$0xff]  }
   0xf   :  { %v306_v46 = vcombine.high %v298_v45, %v298_v45  ;;  %v314_v47 = vrot.slane %v298_v45, %v2079_v38  ;;  %v2093_v48 = vrot.slane %v291_v44, %v2079_v38  ;;  %v1864_v59 = vld [vmem:[%s2413_s1 + $0x108] sm:$0xff]   ;;  %v1868_v0 = vld [vmem:[%s2413_s1 + $0x110] sm:$0xff]   ;;  %v1870_v1 = vld [vmem:[%s2413_s1 + $0x158] sm:$0xff]   ;;  %v2159_v12 = vsel %vm27_vm1, %v25_v43, %v29_v49 }
  0x10   :  { %1655 = vmatpush3.bf16.msra.mxu0 %v1840_v14  ;;  %v1865_v62 = vld [vmem:[%s2413_s1 + $0x188] sm:$0xff]   ;;  %v1869_v2 = vld [vmem:[%s2413_s1 + $0x190] sm:$0xff]   ;;  %v1871_v3 = vld [vmem:[%s2413_s1 + $0x1d8] sm:$0xff]  }
  0x11   :  { %1677 = vmatpush3.bf16.msra.mxu1 %v1841_v15  ;;  %1656 = vmatprep.subr.bf16.mxu0 %v1842_v16  ;;  %v328_v50 = vrot.slane %v306_v46, %v2079_v38  ;;  %v307_v52 = vcombine.high %v2093_v48, %v2093_v48  ;;  %v336_v53 = vcombine.high %v314_v47, %v314_v47  ;;  %v1872_v4 = vld [vmem:[%s2413_s1 + $0x118] sm:$0xff]   ;;  %v1874_v5 = vld [vmem:[%s2413_s1 + $0x160] sm:$0xff]   ;;  %v1878_v9 = vld [vmem:[%s2413_s1 + $0x168] sm:$0xff]  }
  0x12   :  { %1678 = vmatprep.subr.bf16.mxu1 %v1843_v17  ;;  %v1873_v6 = vld [vmem:[%s2413_s1 + $0x198] sm:$0xff]   ;;  %v1875_v7 = vld [vmem:[%s2413_s1 + $0x1e0] sm:$0xff]   ;;  %v1879_v11 = vld [vmem:[%s2413_s1 + $0x1e8] sm:$0xff]   ;;  %v2172_v16 = vrot.slane %v2159_v12, %v2079_v38 }
  0x13   :  { %1205 = vmatprep.mubr.bf16.mxu0 %v328_v50  ;;  %v338_v55 = vcombine.high %v328_v50, %v328_v50  ;;  %v335_v57 = vrot.slane %v307_v52, %v2079_v38  ;;  %v1876_v8 = vld [vmem:[%s2413_s1 + $0x120] sm:$0xff]   ;;  %v1880_v13 = vld [vmem:[%s2413_s1 + $0x128] sm:$0xff]   ;;  %v1882_v14 = vld [vmem:[%s2413_s1 + $0x170] sm:$0xff]  }
  0x14   :  { %1657 = vmatpush3.bf16.msra.mxu0 %v1844_v18  ;;  %v1877_v10 = vld [vmem:[%s2413_s1 + $0x1a0] sm:$0xff]   ;;  %v1881_v15 = vld [vmem:[%s2413_s1 + $0x1a8] sm:$0xff]   ;;  %v1883_v17 = vld [vmem:[%s2413_s1 + $0x1f0] sm:$0xff]  }
  0x15   :  { %1679 = vmatpush3.bf16.msra.mxu1 %v1845_v19  ;;  %1658 = vmatprep.subr.bf16.mxu0 %v1846_v20  ;;  %v339_v60 = vcombine.high %v335_v57, %v335_v57  ;;  %v1884_v18 = vld [vmem:[%s2413_s1 + $0x130] sm:$0xff]   ;;  %v1886_v19 = vld [vmem:[%s2413_s1 + $0x178] sm:$0xff]   ;;  %v1890_v25 = vld [vmem:[%s2413_s1 + $0x240] sm:$0xff]  }
  0x16   :  { %1680 = vmatprep.subr.bf16.mxu1 %v1847_v21  ;;  %1245 = vmatprep.mubr.bf16.mxu1 %v338_v55  ;;  %v1885_v20 = vld [vmem:[%s2413_s1 + $0x1b0] sm:$0xff]   ;;  %v355_v21 = vcombine.high %v2172_v16, %v2172_v16  ;;  %v1889_v26 = vld [vmem:[%s2413_s1 + $0x1b8] sm:$0xff]   ;;  %v1893_v32 = vld [vmem:[%s2413_s1 + $0x280] sm:$0xff]  }
  0x17   :  { %v1897_v37 = vld [vmem:[%s2413_s1 + $0x288] sm:$0xff]   ;;  %v1899_v39 = vld [vmem:[%s2413_s1 + $0x2d0] sm:$0xff]   ;;  %v1902_v41 = vld [vmem:[%s2413_s1 + $0x258] sm:$0xff]  }
  0x18   :  { %1659 = vmatpush3.bf16.msra.mxu0 %v1848_v22  ;;  %v1887_v22 = vld [vmem:[%s2413_s1 + $0x1f8] sm:$0xff]   ;;  %v377_v27 = vrot.slane %v355_v21, %v2079_v38  ;;  %v1906_v45 = vld [vmem:[%s2413_s1 + $0x260] sm:$0xff]   ;;  %v1910_v49 = vld [vmem:[%s2413_s1 + $0x268] sm:$0xff]  }
  0x19   :  { %1681 = vmatpush3.bf16.msra.mxu1 %v1849_v23  ;;  %1660 = vmatprep.subr.bf16.mxu0 %v1850_v24  ;;  %v1888_v23 = vld [vmem:[%s2413_s1 + $0x138] sm:$0xff]   ;;  %v321_v24 = vrot.slane %v2093_v48, %v2079_v38  ;;  %v1908_v48 = vld [vmem:[%s2413_s1 + $0x220] sm:$0xff]   ;;  %v1911_v52 = vld [vmem:[%s2413_s1 + $0x2e8] sm:$0xff]  }
  0x1a   :  { %1682 = vmatprep.subr.bf16.mxu1 %v1851_v28  ;;  %v1891_v28 = vld [vmem:[%s2413_s1 + $0x2c0] sm:$0xff]   ;;  %v387_v33 = vcombine.high %v377_v27, %v377_v27  ;;  %v1903_v43 = vld [vmem:[%s2413_s1 + $0x2d8] sm:$0xff]   ;;  %v1913_v55 = vld [vmem:[%s2413_s1 + $0x2a8] sm:$0xff]  }
  0x1b   :  { %v1904_v44 = vld [vmem:[%s2413_s1 + $0x218] sm:$0xff]   ;;  %v1909_v50 = vld [vmem:[%s2413_s1 + $0x2a0] sm:$0xff]  }
  0x1c   :  { %1661 = vmatpush3.bf16.msra.mxu0 %v1852_v29  ;;  %v1892_v29 = vld [vmem:[%s2413_s1 + $0x200] sm:$0xff]   ;;  %v1905_v46 = vld [vmem:[%s2413_s1 + $0x298] sm:$0xff]  }
  0x1d   :  { %1683 = vmatpush3.bf16.msra.mxu1 %v1853_v30  ;;  %1662 = vmatprep.subr.bf16.mxu0 %v1854_v31  ;;  %v337_v30 = vcombine.high %v321_v24, %v321_v24  ;;  %v1894_v31 = vld [vmem:[%s2413_s1 + $0x248] sm:$0xff]   ;;  %v1937_v21 = vld [vmem:[%s2413_s1 + $0x398] sm:$0xff]  }
  0x1e   :  { %1684 = vmatprep.subr.bf16.mxu1 %v1855_v34  ;;  %v1895_v34 = vld [vmem:[%s2413_s1 + $0x2c8] sm:$0xff]  }
  0x20   :  { %1663 = vmatpush3.bf16.msra.mxu0 %v1856_v35  ;;  %v1896_v35 = vld [vmem:[%s2413_s1 + $0x208] sm:$0xff]  }
  0x21   :  { %1685 = vmatpush3.bf16.msra.mxu1 %v1857_v36  ;;  %1692 = vmatprep.subr.bf16.mxu0 %v1858_v40  ;;  %v1898_v36 = vld [vmem:[%s2413_s1 + $0x250] sm:$0xff]  }
  0x22   :  { %1714 = vmatprep.subr.bf16.mxu1 %v1859_v42  ;;  %v1900_v40 = vld [vmem:[%s2413_s1 + $0x210] sm:$0xff]  }
  0x23   :  { %1206 = vmatmul.mubr.bf16.vlgmr.msra.gmra.mrb[0].mxu0 %v314_v47  ;;  %v1901_v42 = vld [vmem:[%s2413_s1 + $0x290] sm:$0xff]   ;;  %v1907_v47 = vld [vmem:[%s2413_s1 + $0x2e0] sm:$0xff]  }
  0x24   :  { %1693 = vmatpush3.bf16.msra.mxu0 %v1860_v51  ;;  %1246 = vmatmul.mubr.bf16.vlgmr.msra.gmra.mrb[0].mxu1 %v336_v53  ;;  %v340_v51 = vcombine.high %v2159_v12, %v2159_v12  ;;  %v1912_v53 = vld [vmem:[%s2413_s1 + $0x228] sm:$0xff]   ;;  %v1930_v12 = vld [vmem:[%s2413_s1 + $0x350] sm:$0xff]  }
  0x25   :  { %1694 = vmatprep.subr.bf16.mxu0 %v1862_v54  ;;  %1715 = vmatpush3.bf16.msra.mxu1 %v1861_v56  ;;  %v1914_v54 = vld [vmem:[%s2413_s1 + $0x270] sm:$0xff]  }
  0x26   :  { %1285 = vmatprep.mubr.bf16.mxu0 %v335_v57  ;;  %1716 = vmatprep.subr.bf16.mxu1 %v1863_v58  ;;  %v2278_v56 = vrot.slane %v340_v51, %v2079_v38  ;;  %v1915_v57 = vld [vmem:[%s2413_s1 + $0x2f0] sm:$0xff]  }
  0x27   :  { %1325 = vmatprep.mubr.bf16.mxu1 %v339_v60  ;;  %v1916_v58 = vld [vmem:[%s2413_s1 + $0x230] sm:$0xff]  }
  0x28   :  { %1695 = vmatpush3.bf16.msra.mxu0 %v1864_v59  ;;  %v1918_v59 = vld [vmem:[%s2413_s1 + $0x278] sm:$0xff]   ;;  %v1917_v60 = vld [vmem:[%s2413_s1 + $0x2b0] sm:$0xff]  }
  0x29   :  { %1696 = vmatprep.subr.bf16.mxu0 %v1866_v61  ;;  %1717 = vmatpush3.bf16.msra.mxu1 %v1865_v62  ;;  %v356_v61 = vcombine.high %v2278_v56, %v2278_v56  ;;  %v1919_v62 = vld [vmem:[%s2413_s1 + $0x2f8] sm:$0xff]  }
  0x2a   :  { %1718 = vmatprep.subr.bf16.mxu1 %v1867_v63  ;;  %v1920_v63 = vld [vmem:[%s2413_s1 + $0x238] sm:$0xff]  }
  0x2c   :  { %1697 = vmatpush3.bf16.msra.mxu0 %v1868_v0  ;;  %v363_v0 = vrot.slane %v2172_v16, %v2079_v38  ;;  %v1934_v16 = vld [vmem:[%s2413_s1 + $0x358] sm:$0xff]  }
  0x2d   :  { %1698 = vmatprep.subr.bf16.mxu0 %v1870_v1  ;;  %1719 = vmatpush3.bf16.msra.mxu1 %v1869_v2  ;;  %v1922_v1 = vld [vmem:[%s2413_s1 + $0x340] sm:$0xff]   ;;  %v1921_v2 = vld [vmem:[%s2413_s1 + $0x2b8] sm:$0xff]  }
  0x2e   :  { %1720 = vmatprep.subr.bf16.mxu1 %v1871_v3  ;;  %v384_v3 = vrot.slane %v356_v61, %v2079_v38 }
  0x30   :  { %1699 = vmatpush3.bf16.msra.mxu0 %v1872_v4  ;;  %v1923_v4 = vld [vmem:[%s2413_s1 + $0x3c0] sm:$0xff]  }
  0x31   :  { %1700 = vmatprep.subr.bf16.mxu0 %v1874_v5  ;;  %1721 = vmatpush3.bf16.msra.mxu1 %v1873_v6  ;;  %v1924_v5 = vld [vmem:[%s2413_s1 + $0x300] sm:$0xff]   ;;  %v385_v6 = vcombine.high %v363_v0, %v363_v0 }
  0x32   :  { %1722 = vmatprep.subr.bf16.mxu1 %v1875_v7  ;;  %v1926_v7 = vld [vmem:[%s2413_s1 + $0x348] sm:$0xff]  }
  0x34   :  { %1701 = vmatpush3.bf16.msra.mxu0 %v1876_v8  ;;  %v1925_v8 = vld [vmem:[%s2413_s1 + $0x380] sm:$0xff]  }
  0x35   :  { %1702 = vmatprep.subr.bf16.mxu0 %v1878_v9  ;;  %1723 = vmatpush3.bf16.msra.mxu1 %v1877_v10  ;;  %v388_v9 = vcombine.high %v384_v3, %v384_v3  ;;  %v1927_v10 = vld [vmem:[%s2413_s1 + $0x3c8] sm:$0xff]  }
  0x36   :  { %1724 = vmatprep.subr.bf16.mxu1 %v1879_v11  ;;  %v1928_v11 = vld [vmem:[%s2413_s1 + $0x308] sm:$0xff]  }
  0x38   :  { %1703 = vmatpush3.bf16.msra.mxu0 %v1880_v13  ;;  %v1929_v13 = vld [vmem:[%s2413_s1 + $0x388] sm:$0xff]  }
  0x39   :  { %1704 = vmatprep.subr.bf16.mxu0 %v1882_v14  ;;  %1725 = vmatpush3.bf16.msra.mxu1 %v1881_v15  ;;  %v1931_v14 = vld [vmem:[%s2413_s1 + $0x3d0] sm:$0xff]  }
  0x3a   :  { %1726 = vmatprep.subr.bf16.mxu1 %v1883_v17  ;;  %v1932_v15 = vld [vmem:[%s2413_s1 + $0x310] sm:$0xff]  }
  0x3b   :  { %v1933_v17 = vld [vmem:[%s2413_s1 + $0x390] sm:$0xff]  }
  0x3c   :  { %1705 = vmatpush3.bf16.msra.mxu0 %v1884_v18  ;;  %v1935_v18 = vld [vmem:[%s2413_s1 + $0x3d8] sm:$0xff]  }
  0x3d   :  { %1706 = vmatprep.subr.bf16.mxu0 %v1886_v19  ;;  %1727 = vmatpush3.bf16.msra.mxu1 %v1885_v20  ;;  %v1936_v19 = vld [vmem:[%s2413_s1 + $0x318] sm:$0xff]   ;;  %v1938_v20 = vld [vmem:[%s2413_s1 + $0x360] sm:$0xff]  }
  0x3e   :  { %1728 = vmatprep.subr.bf16.mxu1 %v1887_v22  ;;  %v1939_v22 = vld [vmem:[%s2413_s1 + $0x3e0] sm:$0xff]  }
  0x40   :  { %1707 = vmatpush3.bf16.msra.mxu0 %v1888_v23  ;;  %v1940_v23 = vld [vmem:[%s2413_s1 + $0x320] sm:$0xff]  }
  0x41   :  { %1736 = vmatprep.subr.bf16.mxu0 %v1890_v25  ;;  %1729 = vmatpush3.bf16.msra.mxu1 %v1889_v26  ;;  %v1941_v25 = vld [vmem:[%s2413_s1 + $0x3a0] sm:$0xff]   ;;  %v1943_v26 = vld [vmem:[%s2413_s1 + $0x3e8] sm:$0xff]  }
  0x42   :  { %1758 = vmatprep.subr.bf16.mxu1 %v1891_v28  ;;  %v1946_v28 = vld [vmem:[%s2413_s1 + $0x370] sm:$0xff]  }
  0x43   :  { %1286 = vmatmul.mubr.bf16.vlgmr.msra.gmra.mrb[4].mxu0 %v321_v24  ;;  %v1942_v24 = vld [vmem:[%s2413_s1 + $0x368] sm:$0xff]  }
  0x44   :  { %1737 = vmatpush3.bf16.msra.mxu0 %v1892_v29  ;;  %1365 = vmatprep.mubr.bf16.mxu0 %v377_v27  ;;  %v1944_v27 = vld [vmem:[%s2413_s1 + $0x328] sm:$0xff]  }
  0x45   :  { %1326 = vmatmul.mubr.bf16.vlgmr.msra.gmra.mrb[4].mxu1 %v337_v30  ;;  %1738 = vmatprep.subr.bf16.mxu0 %v1894_v31  ;;  %v1945_v29 = vld [vmem:[%s2413_s1 + $0x3a8] sm:$0xff]   ;;  %v1947_v30 = vld [vmem:[%s2413_s1 + $0x3f0] sm:$0xff]  }
  0x46   :  { %1759 = vmatpush3.bf16.msra.mxu1 %v1893_v32  ;;  %1405 = vmatprep.mubr.bf16.mxu1 %v387_v33  ;;  %v1948_v31 = vld [vmem:[%s2413_s1 + $0x330] sm:$0xff]   ;;  %v1950_v32 = vld [vmem:[%s2413_s1 + $0x378] sm:$0xff]  }
  0x47   :  { %1760 = vmatprep.subr.bf16.mxu1 %v1895_v34  ;;  %v1949_v33 = vld [vmem:[%s2413_s1 + $0x3b0] sm:$0xff]   ;;  %v1951_v34 = vld [vmem:[%s2413_s1 + $0x3f8] sm:$0xff]  }
  0x48   :  { %1739 = vmatpush3.bf16.msra.mxu0 %v1896_v35  ;;  %v1952_v35 = vld [vmem:[%s2413_s1 + $0x338] sm:$0xff]  }
  0x49   :  { %1740 = vmatprep.subr.bf16.mxu0 %v1898_v36  ;;  %v370_v36 = vrot.slane %v2278_v56, %v2079_v38 }
  0x4a   :  { %1761 = vmatpush3.bf16.msra.mxu1 %v1897_v37  ;;  %v1953_v37 = vld [vmem:[%s2413_s1 + $0x3b8] sm:$0xff]  }
  0x4b   :  { %1762 = vmatprep.subr.bf16.mxu1 %v1899_v39  ;;  %v386_v39 = vcombine.high %v370_v36, %v370_v36 }
  0x4c   :  { %1741 = vmatpush3.bf16.msra.mxu0 %v1900_v40  ;;  %v1959_v40 = vmov 0.0  }
  0x4d   :  { %1742 = vmatprep.subr.bf16.mxu0 %v1902_v41  ;;  %23 = vst.msk [vmem:[#allocation2] sm:$0x3] %vm22_vm2, %v1959_v40  ;;  %v8_v41 = vstv %s2415_s2 }
  0x4e   :  { %1763 = vmatpush3.bf16.msra.mxu1 %v1901_v42  ;;  %9 = vst [vmem:[#allocation3] sm:$0x1] %v8_v41 }
  0x4f   :  { %1764 = vmatprep.subr.bf16.mxu1 %v1903_v43 }
  0x50   :  { %1743 = vmatpush3.bf16.msra.mxu0 %v1904_v44 }
  0x51   :  { %1744 = vmatprep.subr.bf16.mxu0 %v1906_v45 }
  0x52   :  { %1765 = vmatpush3.bf16.msra.mxu1 %v1905_v46 }
  0x53   :  { %1766 = vmatprep.subr.bf16.mxu1 %v1907_v47 }
  0x54   :  { %1745 = vmatpush3.bf16.msra.mxu0 %v1908_v48 }
  0x55   :  { %1746 = vmatprep.subr.bf16.mxu0 %v1910_v49 }
  0x56   :  { %1767 = vmatpush3.bf16.msra.mxu1 %v1909_v50 }
  0x57   :  { %1768 = vmatprep.subr.bf16.mxu1 %v1911_v52 }
  0x58   :  { %1747 = vmatpush3.bf16.msra.mxu0 %v1912_v53 }
  0x59   :  { %1748 = vmatprep.subr.bf16.mxu0 %v1914_v54 }
  0x5a   :  { %1769 = vmatpush3.bf16.msra.mxu1 %v1913_v55 }
  0x5b   :  { %1770 = vmatprep.subr.bf16.mxu1 %v1915_v57 }
  0x5c   :  { %1749 = vmatpush3.bf16.msra.mxu0 %v1916_v58 }
  0x5d   :  { %1750 = vmatprep.subr.bf16.mxu0 %v1918_v59 }
  0x5e   :  { %1771 = vmatpush3.bf16.msra.mxu1 %v1917_v60 }
  0x5f   :  { %1772 = vmatprep.subr.bf16.mxu1 %v1919_v62 }
  0x60   :  { %1751 = vmatpush3.bf16.msra.mxu0 %v1920_v63 }
  0x61   :  { %1780 = vmatprep.subr.bf16.mxu0 %v1922_v1 }
  0x62   :  { %1773 = vmatpush3.bf16.msra.mxu1 %v1921_v2 }
  0x63   :  { %1366 = vmatmul.mubr.bf16.vlgmr.msra.gmra.mrb[8].mxu0 %v363_v0  ;;  %1802 = vmatprep.subr.bf16.mxu1 %v1923_v4 }
  0x64   :  { %1781 = vmatpush3.bf16.msra.mxu0 %v1924_v5  ;;  %1445 = vmatprep.mubr.bf16.mxu0 %v384_v3 }
  0x65   :  { %1406 = vmatmul.mubr.bf16.vlgmr.msra.gmra.mrb[8].mxu1 %v385_v6  ;;  %1782 = vmatprep.subr.bf16.mxu0 %v1926_v7 }
  0x66   :  { %1803 = vmatpush3.bf16.msra.mxu1 %v1925_v8  ;;  %1485 = vmatprep.mubr.bf16.mxu1 %v388_v9 }
  0x67   :  { %1804 = vmatprep.subr.bf16.mxu1 %v1927_v10 }
  0x68   :  { %1783 = vmatpush3.bf16.msra.mxu0 %v1928_v11 }
  0x69   :  { %1784 = vmatprep.subr.bf16.mxu0 %v1930_v12 }
  0x6a   :  { %1805 = vmatpush3.bf16.msra.mxu1 %v1929_v13 }
  0x6b   :  { %1806 = vmatprep.subr.bf16.mxu1 %v1931_v14 }
  0x6c   :  { %1785 = vmatpush3.bf16.msra.mxu0 %v1932_v15 }
  0x6d   :  { %1786 = vmatprep.subr.bf16.mxu0 %v1934_v16 }
  0x6e   :  { %1807 = vmatpush3.bf16.msra.mxu1 %v1933_v17 }
  0x6f   :  { %1808 = vmatprep.subr.bf16.mxu1 %v1935_v18 }
  0x70   :  { %1787 = vmatpush3.bf16.msra.mxu0 %v1936_v19 }
  0x71   :  { %1788 = vmatprep.subr.bf16.mxu0 %v1938_v20 }
  0x72   :  { %1809 = vmatpush3.bf16.msra.mxu1 %v1937_v21 }
  0x73   :  { %1810 = vmatprep.subr.bf16.mxu1 %v1939_v22  ;;  %v32_v22 = vld [vmem:[#allocation2] sm:$0x3] }
  0x74   :  { %1789 = vmatpush3.bf16.msra.mxu0 %v1940_v23 }
  0x75   :  { %1790 = vmatprep.subr.bf16.mxu0 %v1942_v24 }
  0x76   :  { %1811 = vmatpush3.bf16.msra.mxu1 %v1941_v25 }
  0x77   :  { %1812 = vmatprep.subr.bf16.mxu1 %v1943_v26  ;;  %v1647_v26 = vld [vmem:[#allocation3] ss:$0 sm:$0xff] }
  0x78   :  { %1791 = vmatpush3.bf16.msra.mxu0 %v1944_v27 }
  0x79   :  { %1792 = vmatprep.subr.bf16.mxu0 %v1946_v28 }
  0x7a   :  { %1813 = vmatpush3.bf16.msra.mxu1 %v1945_v29 }
  0x7b   :  { %1814 = vmatprep.subr.bf16.mxu1 %v1947_v30 }
  0x7c   :  { %1793 = vmatpush3.bf16.msra.mxu0 %v1948_v31 }
  0x7d   :  { %1794 = vmatprep.subr.bf16.mxu0 %v1950_v32 }
  0x7e   :  { %1815 = vmatpush3.bf16.msra.mxu1 %v1949_v33 }
  0x7f   :  { %1816 = vmatprep.subr.bf16.mxu1 %v1951_v34 }
  0x80   :  { %1795 = vmatpush3.bf16.msra.mxu0 %v1952_v35 }
  0x82   :  { %1817 = vmatpush3.bf16.msra.mxu1 %v1953_v37 }
  0x83   :  { %1446 = vmatmul.mubr.bf16.vlgmr.msra.gmra.mrb[12].mxu0 %v370_v36 }
  0x85   :  { %1486 = vmatmul.mubr.bf16.vlgmr.msra.gmra.mrb[12].mxu1 %v386_v39 }
  0xf6   :  { %v1664_v38 = vpop.f32.mrb[0].mxu0 }
  0xf7   :  { %v1665_v42 = vpop.f32.mrb[1].mxu0  ;;  %v1686_v43 = vpop.f32.mrb[0].mxu1 }
  0xf8   :  { %v1666_v44 = vadd.f32 %v1665_v42, %v1664_v38  ;;  %v1667_v45 = vpop.f32.mrb[2].mxu0  ;;  %v1687_v46 = vpop.f32.mrb[1].mxu1 }
  0xf9   :  { %v1668_v47 = vpop.f32.mrb[3].mxu0  ;;  %v1688_v48 = vadd.f32 %v1687_v46, %v1686_v43  ;;  %v1689_v49 = vpop.f32.mrb[2].mxu1 }
  0xfa   :  { %v1690_v50 = vpop.f32.mrb[3].mxu1 }
  0xfb   :  { %v1248_v51 = vadd.f32 %v1688_v48, %v1666_v44 }
 0x116   :  { %v1708_v52 = vpop.f32.mrb[4].mxu0 }
 0x117   :  { %v1709_v53 = vpop.f32.mrb[5].mxu0 }
 0x118   :  { %v1730_v54 = vpop.f32.mrb[4].mxu1  ;;  %v1710_v55 = vadd.f32 %v1709_v53, %v1708_v52  ;;  %v1711_v56 = vpop.f32.mrb[6].mxu0 }
 0x119   :  { %v1731_v57 = vpop.f32.mrb[5].mxu1  ;;  %v1712_v58 = vpop.f32.mrb[7].mxu0 }
 0x11a   :  { %v1288_v59 = vadd.f32 %v1710_v55, %v1248_v51  ;;  %v1732_v60 = vadd.f32 %v1731_v57, %v1730_v54  ;;  %v1733_v61 = vpop.f32.mrb[6].mxu1 }
 0x11b   :  { %v1734_v62 = vpop.f32.mrb[7].mxu1 }
 0x11c   :  { %v1328_v63 = vadd.f32 %v1732_v60, %v1288_v59 }
 0x136   :  { %v1752_v0 = vpop.f32.mrb[8].mxu0 }
 0x137   :  { %v1753_v1 = vpop.f32.mrb[9].mxu0 }
 0x138   :  { %v1774_v2 = vpop.f32.mrb[8].mxu1  ;;  %v1754_v3 = vadd.f32 %v1753_v1, %v1752_v0  ;;  %v1755_v4 = vpop.f32.mrb[10].mxu0 }
 0x139   :  { %v1775_v5 = vpop.f32.mrb[9].mxu1  ;;  %v1756_v6 = vpop.f32.mrb[11].mxu0 }
 0x13a   :  { %v1368_v7 = vadd.f32 %v1754_v3, %v1328_v63  ;;  %v1776_v8 = vadd.f32 %v1775_v5, %v1774_v2  ;;  %v1777_v9 = vpop.f32.mrb[10].mxu1 }
 0x13b   :  { %v1778_v10 = vpop.f32.mrb[11].mxu1 }
 0x13c   :  { %v1408_v11 = vadd.f32 %v1776_v8, %v1368_v7 }
 0x156   :  { %v1796_v12 = vpop.f32.mrb[12].mxu0 }
 0x157   :  { %v1797_v13 = vpop.f32.mrb[13].mxu0 }
 0x158   :  { %v1818_v14 = vpop.f32.mrb[12].mxu1  ;;  %v1798_v15 = vadd.f32 %v1797_v13, %v1796_v12  ;;  %v1799_v16 = vpop.f32.mrb[14].mxu0 }
 0x159   :  { %v1819_v17 = vpop.f32.mrb[13].mxu1  ;;  %v1800_v18 = vpop.f32.mrb[15].mxu0 }
 0x15a   :  { %v1448_v19 = vadd.f32 %v1798_v15, %v1408_v11  ;;  %v1820_v20 = vadd.f32 %v1819_v17, %v1818_v14  ;;  %v1821_v21 = vpop.f32.mrb[14].mxu1 }
 0x15b   :  { %v1822_v23 = vpop.f32.mrb[15].mxu1 }
 0x15c   :  { %v1488_v24 = vadd.f32 %v1820_v20, %v1448_v19 }
 0x15e   :  { %v1493_v25 = vadd.f32 %v1488_v24, %v32_v22 }
 0x160   :  { %1495 = vst.msk [vmem:[#allocation2] sm:$0x3] %vm22_vm2, %v1493_v25 }
 0x167   :  { %v1499_v27 = vld [vmem:[#allocation2] sm:$0x3] }
 0x168   :  { %v1507_v28 = vadd.f32 %v1647_v26, %v1499_v27 }
 0x16a   :  { %v1508_v29 = vsub.f32 0.0, %v1507_v28 }
 0x16c   :  { %v1509_v30 = vmul.f32 1.442695, %v1508_v29 }
 0x16e   :  { %1954 = vpow2.f32 %v1509_v30 }
 0x178   :  { %v1955_v31 = vpop.eup %1954 }
 0x179   :  { %v1511_v32 = vadd.f32 1.0, %v1955_v31 }
 0x17b   :  { %1956 = vrcp.f32 %v1511_v32 }
 0x185   :  { %v1957_v33 = vpop.eup %1956 }
 0x186   :  { %1514 = vst.msk [vmem:[%s2416_s3] sm:$0x3] %vm22_vm2, %v1957_v33 }

</bundles_post_ra>
